<compile_context>
chip_gen: v7x
topology: tpu7x:2x2x1
jax: 0.10.0
libtpu: 0.0.40
codegen_flags: <defaults>
</compile_context>

<pallas_src>
import functools
import math

import jax
import jax.numpy as jnp
from jax import lax
from jax.experimental import pallas as pl
from jax.experimental.pallas import tpu as pltpu

_MASK_VALUE = -1e30  # finite "minus infinity": avoids inf-inf NaNs, bf16-safe.


def _pick_tile(dim, target):
    """Largest divisor of `dim` that is <= target (keeps the grid exact)."""
    t = min(dim, target)
    while dim % t:
        t -= 1
    return t


# ---------------------------------------------------------------------------
# Tiled linear:  y = x @ w_t + b   (w_t already laid out as (K, N))
# ---------------------------------------------------------------------------

def _linear_kernel(x_ref, w_ref, b_ref, o_ref, acc_ref):
    k_step = pl.program_id(2)

    @pl.when(k_step == 0)
    def _init():
        acc_ref[...] = jnp.zeros_like(acc_ref)

    # head-major input blocks are (1, tm, tk); plain blocks are (tm, tk)
    x = x_ref[0] if len(x_ref.shape) == 3 else x_ref[...]
    acc_ref[...] += jnp.dot(x, w_ref[...], preferred_element_type=jnp.float32)

    @pl.when(k_step == pl.num_programs(2) - 1)
    def _finalize():
        y = (acc_ref[...] + b_ref[...].astype(jnp.float32)).astype(o_ref.dtype)
        if len(o_ref.shape) == 3:         # head-major output block (1, tm, hd)
            o_ref[0] = y
        else:                             # plain (tm, tn) output block
            o_ref[...] = y


def fused_linear(x, w_t, b, *, tm=256, tn=256, tk=512, out_head_dim=None,
                 out_dtype=None):
    """Tiled MXU matmul + bias.

    x   : (M, K) activations, or head-major (G, M, hd) with K = G*hd
          (the head-merge transpose is fused into the input index_map).
    w_t : (K, N) weight, pre-transposed from torch's (N, K) layout.
    b   : (N,) bias.
    out_head_dim : if set to hd, the output is written head-major as
          (N // hd, M, hd) so a downstream kernel can consume per-head blocks
          with no XLA transpose; otherwise the output is (M, N).
    """
    K, N = w_t.shape
    out_dtype = out_dtype or x.dtype

    if x.ndim == 3:                       # head-major input: (G, M, hd)
        g_in, M, hd_in = x.shape
        assert g_in * hd_in == K, (x.shape, w_t.shape)
        tk = hd_in                        # one head per K step
    else:
        M, k2 = x.shape
        assert k2 == K, (x.shape, w_t.shape)
        tk = _pick_tile(K, tk)

    tm = _pick_tile(M, tm)
    if out_head_dim is not None:
        assert N % out_head_dim == 0
        tn = out_head_dim
    else:
        tn = _pick_tile(N, tn)

    grid = (M // tm, N // tn, K // tk)

    if x.ndim == 3:
        x_spec = pl.BlockSpec((1, tm, tk), lambda i, j, k: (k, i, 0))
    else:
        x_spec = pl.BlockSpec((tm, tk), lambda i, j, k: (i, k))
    w_spec = pl.BlockSpec((tk, tn), lambda i, j, k: (k, j))
    b_spec = pl.BlockSpec((1, tn), lambda i, j, k: (0, j))

    if out_head_dim is not None:
        out_shape = jax.ShapeDtypeStruct((N // tn, M, tn), out_dtype)
        out_spec = pl.BlockSpec((1, tm, tn), lambda i, j, k: (j, i, 0))
    else:
        out_shape = jax.ShapeDtypeStruct((M, N), out_dtype)
        out_spec = pl.BlockSpec((tm, tn), lambda i, j, k: (i, j))

    itemsize = jnp.dtype(x.dtype).itemsize
    cost = pl.CostEstimate(
        flops=2 * M * N * K,
        transcendentals=0,
        bytes_accessed=int((M * K + K * N + N + M * N) * itemsize),
    )

    # TODO(synk): raise vmem_limit_bytes + use larger tiles on v6e; shrink for v7x/v5e.
    return pl.pallas_call(
        _linear_kernel,
        out_shape=out_shape,
        grid=grid,
        in_specs=[x_spec, w_spec, b_spec],
        out_specs=out_spec,
        scratch_shapes=[pltpu.VMEM((tm, tn), jnp.float32)],
        compiler_params=pltpu.CompilerParams(
            dimension_semantics=("parallel", "parallel", "arbitrary")),
        cost_estimate=cost,
    )(x, w_t, b.reshape(1, N))


# ---------------------------------------------------------------------------
# Flash-style causal attention (online softmax, causal block skipping)
# ---------------------------------------------------------------------------

def _flash_kernel(q_ref, k_ref, v_ref, o_ref, m_sc, l_sc, acc_sc):
    qi = pl.program_id(2)
    ki = pl.program_id(3)

    @pl.when(ki == 0)
    def _init():
        m_sc[...] = jnp.full_like(m_sc, _MASK_VALUE)
        l_sc[...] = jnp.zeros_like(l_sc)
        acc_sc[...] = jnp.zeros_like(acc_sc)

    def _accumulate(apply_causal_mask):
        q = q_ref[0]                                   # (tS, hd)
        k = k_ref[0]                                   # (tS, hd)
        v = v_ref[0]                                   # (tS, hd)
        scale = 1.0 / math.sqrt(q.shape[-1])
        # scale folded into q (tS*hd muls, not tS*tS); contraction over hd with
        # no explicit k transpose.
        s = lax.dot_general((q * scale).astype(q.dtype), k,
                            (((1,), (1,)), ((), ())),
                            preferred_element_type=jnp.float32)   # (tS, tS)
        if apply_causal_mask:              # only the diagonal block needs a mask
            row = lax.broadcasted_iota(jnp.int32, s.shape, 0)
            col = lax.broadcasted_iota(jnp.int32, s.shape, 1)
            s = jnp.where(col <= row, s, _MASK_VALUE)
        m_prev = m_sc[...]
        m_new = jnp.maximum(m_prev, jnp.max(s, axis=-1, keepdims=True))
        alpha = jnp.exp(m_prev - m_new)
        p = jnp.exp(s - m_new)
        l_sc[...] = alpha * l_sc[...] + jnp.sum(p, axis=-1, keepdims=True)
        acc_sc[...] = alpha * acc_sc[...] + jnp.dot(
            p.astype(v.dtype), v, preferred_element_type=jnp.float32)
        m_sc[...] = m_new

    @pl.when(ki < qi)          # fully-visible block: no mask work at all
    def _off_diag():
        _accumulate(apply_causal_mask=False)

    @pl.when(ki == qi)         # diagonal block: apply the in-tile causal mask
    def _diag():
        _accumulate(apply_causal_mask=True)

    # ki > qi blocks are fully masked -> skipped entirely (and their DMA is
    # elided by the clamped index_map in the wrapper).

    @pl.when(ki == pl.num_programs(3) - 1)
    def _finalize():
        inv_l = pl.reciprocal(l_sc[...], approx=True)   # EUP, not a VALU divide
        o_ref[0] = (acc_sc[...] * inv_l).astype(o_ref.dtype)


def flash_attention(qkv_h, *, batch, seq, n_head, tile_seq=128, out_dtype=None):
    """Causal flash attention.

    qkv_h : (3H, B*T, hd) head-major projections; rows [0,H) = q heads,
            [H,2H) = k heads, [2H,3H) = v heads.
    Returns (H, B*T, hd) head-major attention output.
    """
    three_h, M, hd = qkv_h.shape
    H = n_head
    assert three_h == 3 * H and M == batch * seq
    out_dtype = out_dtype or qkv_h.dtype

    tS = _pick_tile(seq, tile_seq)
    nS = seq // tS
    grid = (batch, H, nS, nS)

    def q_map(b, h, qi, ki):
        return (h, b * nS + qi, 0)

    def k_map(b, h, qi, ki):
        # clamp skipped (ki > qi) steps to the diagonal block so the pipeline
        # re-uses the resident block instead of fetching dead data.
        return (H + h, b * nS + jnp.minimum(ki, qi), 0)

    def v_map(b, h, qi, ki):
        return (2 * H + h, b * nS + jnp.minimum(ki, qi), 0)

    def o_map(b, h, qi, ki):
        return (h, b * nS + qi, 0)

    itemsize = jnp.dtype(qkv_h.dtype).itemsize
    cost = pl.CostEstimate(
        flops=int(2 * batch * H * seq * seq * hd),        # causal ~ half of dense
        transcendentals=int(batch * H * seq * seq // 2),
        bytes_accessed=int(4 * batch * seq * H * hd * itemsize),
    )

    return pl.pallas_call(
        _flash_kernel,
        out_shape=jax.ShapeDtypeStruct((H, M, hd), out_dtype),
        grid=grid,
        in_specs=[pl.BlockSpec((1, tS, hd), q_map),
                  pl.BlockSpec((1, tS, hd), k_map),
                  pl.BlockSpec((1, tS, hd), v_map)],
        out_specs=pl.BlockSpec((1, tS, hd), o_map),
        scratch_shapes=[pltpu.VMEM((tS, 1), jnp.float32),    # running max
                        pltpu.VMEM((tS, 1), jnp.float32),    # running sum
                        pltpu.VMEM((tS, hd), jnp.float32)],  # output accumulator
        compiler_params=pltpu.CompilerParams(
            dimension_semantics=("parallel", "parallel", "parallel", "arbitrary")),
        cost_estimate=cost,
    )(qkv_h, qkv_h, qkv_h)


# ---------------------------------------------------------------------------
# Module forward
# ---------------------------------------------------------------------------

def prepare_params(params):
    """One-time weight prep: transpose torch (out,in) -> (in,out) so kernels
    never transpose on the hot path."""
    return {
        "c_attn_wT": jnp.asarray(params["c_attn_w"]).T,   # (C, 3C)
        "c_attn_b": jnp.asarray(params["c_attn_b"]),
        "c_proj_wT": jnp.asarray(params["c_proj_w"]).T,   # (C, C)
        "c_proj_b": jnp.asarray(params["c_proj_b"]),
    }


def causal_self_attention(x, params_t, n_head, *, tile_m=256, tile_seq=128):
    """Pallas forward pass matching torch CausalSelfAttention."""
    B, T, C = x.shape
    assert C % n_head == 0
    hd = C // n_head
    M = B * T

    # 1) qkv projection, written head-major (3H, B*T, hd): the qkv split and the
    #    (B,T,H,hd)->(B,H,T,hd) transposes are absorbed into the output layout.
    qkv_h = fused_linear(x.reshape(M, C), params_t["c_attn_wT"],
                         params_t["c_attn_b"], tm=tile_m, tk=512,
                         out_head_dim=hd)

    # 2) causal flash attention reading q/k/v straight from the head-major tensor.
    y_h = flash_attention(qkv_h, batch=B, seq=T, n_head=n_head,
                          tile_seq=tile_seq, out_dtype=x.dtype)

    # 3) output projection consuming head-major activations (head merge fused
    #    into the input index_map); output is plain (B*T, C).
    y = fused_linear(y_h, params_t["c_proj_wT"], params_t["c_proj_b"],
                     tm=tile_m, tn=256, out_dtype=x.dtype)
    return y.reshape(B, T, C)


# ---------------------------------------------------------------------------
# Pure-JAX reference (correctness check)
# ---------------------------------------------------------------------------

def reference_forward(x, params, n_head):
    B, T, C = x.shape
    hd = C // n_head
    with jax.default_matmul_precision("float32"):
        qkv = x @ params["c_attn_w"].T + params["c_attn_b"]
        q, k, v = jnp.split(qkv, 3, axis=2)
        q = q.reshape(B, T, n_head, hd).transpose(0, 2, 1, 3)
        k = k.reshape(B, T, n_head, hd).transpose(0, 2, 1, 3)
        v = v.reshape(B, T, n_head, hd).transpose(0, 2, 1, 3)
        s = jnp.einsum("bhqd,bhkd->bhqk", q, k) / math.sqrt(hd)
        mask = jnp.tril(jnp.ones((T, T), dtype=bool))
        s = jnp.where(mask[None, None], s, -jnp.inf)
        p = jax.nn.softmax(s, axis=-1)
        y = jnp.einsum("bhqk,bhkd->bhqd", p, v)
        y = y.transpose(0, 2, 1, 3).reshape(B, T, C)
        return y @ params["c_proj_w"].T + params["c_proj_b"]


# ---------------------------------------------------------------------------
# Main
# ---------------------------------------------------------------------------

if __name__ == "__main__":
    # Small config consistent with the module (n_embd % n_head == 0, T <= block_size).
    # head_dim = 128 keeps every block lane-aligned; T = 256 gives 2x2 q/kv tiles so
    # both the causal block-skip and diagonal-mask paths are exercised.
    B, T = 2, 256
    n_embd, n_head = 256, 2

    key = jax.random.PRNGKey(0)
    kx, k1, k2, k3, k4 = jax.random.split(key, 5)

    x = jax.random.normal(kx, (B, T, n_embd), dtype=jnp.float32)
    params = {
        "c_attn_w": 0.02 * jax.random.normal(k1, (3 * n_embd, n_embd), jnp.float32),
        "c_attn_b": 0.02 * jax.random.normal(k2, (3 * n_embd,), jnp.float32),
        "c_proj_w": 0.02 * jax.random.normal(k3, (n_embd, n_embd), jnp.float32),
        "c_proj_b": 0.02 * jax.random.normal(k4, (n_embd,), jnp.float32),
    }
    params_t = prepare_params(params)   # one-time (K, N) weight layout

    fwd = jax.jit(functools.partial(causal_self_attention, n_head=n_head))
    y = jax.block_until_ready(fwd(x, params_t))

    y_ref = reference_forward(x, params, n_head)
    assert y.shape == (B, T, n_embd)
    # Tolerance accounts for MXU matmul pass ordering + approximate EUP reciprocal.
    err = float(jnp.max(jnp.abs(y - y_ref)))
    assert jnp.allclose(y, y_ref, atol=5e-3, rtol=5e-3), \
        f"mismatch vs reference (max abs err {err})"

    print("KERNEL_OK")
</pallas_src>

<mosaic_0001>
module attributes {stable_mosaic.version = 11 : i64} {
  func.func @_linear_kernel(%arg0: i32, %arg1: i32, %arg2: i32, %arg3: memref<1x256x128xf32, #tpu.memory_space<vmem>>, %arg4: memref<128x256xf32, #tpu.memory_space<vmem>>, %arg5: memref<1x256xf32, #tpu.memory_space<vmem>>, %arg6: memref<256x256xf32, #tpu.memory_space<vmem>>, %arg7: memref<256x256xf32, #tpu.memory_space<vmem>>) attributes {dimension_semantics = [#tpu.dimension_semantics<parallel>, #tpu.dimension_semantics<parallel>, #tpu.dimension_semantics<arbitrary>], iteration_bounds = array<i64: 2, 1, 2>, scalar_prefetch = 0 : i64, scratch_operands = 1 : i64, tpu.core_type = #tpu.core_type<tc>, window_params = [{transform_indices = @transform_0, window_bounds = array<i64: 1, 256, 128>}, {transform_indices = @transform_1, window_bounds = array<i64: 128, 256>}, {transform_indices = @transform_2, window_bounds = array<i64: 1, 256>}, {transform_indices = @transform_3, window_bounds = array<i64: 256, 256>}]} {
    %c0_i32 = arith.constant 0 : i32
    %0 = arith.cmpi eq, %arg2, %c0_i32 : i32
    %1 = arith.extui %0 : i1 to i32
    %c0_i32_0 = arith.constant 0 : i32
    %2 = arith.cmpi ne, %1, %c0_i32_0 : i32
    scf.if %2 {
      %cst_10 = arith.constant 0.000000e+00 : f32
      %13 = vector.broadcast %cst_10 : f32 to vector<256x256xf32>
      %c0_11 = arith.constant 0 : index
      %c0_12 = arith.constant 0 : index
      %14 = vector.load %arg7[%c0_11, %c0_12] : memref<256x256xf32, #tpu.memory_space<vmem>>, vector<256x256xf32>
      tpu.vector_store %arg7[%c0_11, %c0_12], %13 {strides = array<i32>} : memref<256x256xf32, #tpu.memory_space<vmem>>, vector<256x256xf32>,
    } else {
    }
    %c0 = arith.constant 0 : index
    %c0_1 = arith.constant 0 : index
    %c0_2 = arith.constant 0 : index
    %3 = vector.load %arg3[%c0, %c0_1, %c0_2] : memref<1x256x128xf32, #tpu.memory_space<vmem>>, vector<1x256x128xf32>
    %4 = vector.shape_cast %3 : vector<1x256x128xf32> to vector<256x128xf32>
    %c0_3 = arith.constant 0 : index
    %c0_4 = arith.constant 0 : index
    %5 = vector.load %arg7[%c0_3, %c0_4] : memref<256x256xf32, #tpu.memory_space<vmem>>, vector<256x256xf32>
    %c0_5 = arith.constant 0 : index
    %c0_6 = arith.constant 0 : index
    %6 = vector.load %arg4[%c0_5, %c0_6] : memref<128x256xf32, #tpu.memory_space<vmem>>, vector<128x256xf32>
    %cst = arith.constant dense<0.000000e+00> : vector<256x256xf32>
    %7 = tpu.matmul %4, %6, %cst {dimension_numbers = #tpu.dot_dimension_numbers<[1], [0], [0], [1], [0, 0, 1, 1], [], []>} : vector<256x128xf32>, vector<128x256xf32>, vector<256x256xf32> -> vector<256x256xf32>
    %8 = arith.addf %5, %7 : vector<256x256xf32>
    %c0_7 = arith.constant 0 : index
    %c0_8 = arith.constant 0 : index
    %9 = vector.load %arg7[%c0_7, %c0_8] : memref<256x256xf32, #tpu.memory_space<vmem>>, vector<256x256xf32>
    tpu.vector_store %arg7[%c0_7, %c0_8], %8 {strides = array<i32>} : memref<256x256xf32, #tpu.memory_space<vmem>>, vector<256x256xf32>,
    %c1_i32 = arith.constant 1 : i32
    %10 = arith.cmpi eq, %arg2, %c1_i32 : i32
    %11 = arith.extui %10 : i1 to i32
    %c0_i32_9 = arith.constant 0 : i32
    %12 = arith.cmpi ne, %11, %c0_i32_9 : i32
    scf.if %12 {
      %c0_10 = arith.constant 0 : index
      %c0_11 = arith.constant 0 : index
      %13 = vector.load %arg7[%c0_10, %c0_11] : memref<256x256xf32, #tpu.memory_space<vmem>>, vector<256x256xf32>
      %c0_12 = arith.constant 0 : index
      %c0_13 = arith.constant 0 : index
      %14 = vector.load %arg5[%c0_12, %c0_13] : memref<1x256xf32, #tpu.memory_space<vmem>>, vector<1x256xf32>
      %15 = vector.broadcast %14 : vector<1x256xf32> to vector<256x256xf32>
      %16 = arith.addf %13, %15 : vector<256x256xf32>
      %c0_14 = arith.constant 0 : index
      %c0_15 = arith.constant 0 : index
      %17 = vector.load %arg6[%c0_14, %c0_15] : memref<256x256xf32, #tpu.memory_space<vmem>>, vector<256x256xf32>
      tpu.vector_store %arg6[%c0_14, %c0_15], %16 {strides = array<i32>} : memref<256x256xf32, #tpu.memory_space<vmem>>, vector<256x256xf32>,
    } else {
    }
    return
  }
  func.func @transform_0(%arg0: i32, %arg1: i32, %arg2: i32) -> (i32, i32, i32) {
    %c0_i32 = arith.constant 0 : i32
    %c0_i32_0 = arith.constant 0 : i32
    return %arg2, %arg0, %c0_i32 : i32, i32, i32
  }
  func.func @transform_1(%arg0: i32, %arg1: i32, %arg2: i32) -> (i32, i32) {
    %c0_i32 = arith.constant 0 : i32
    return %arg2, %arg1 : i32, i32
  }
  func.func @transform_2(%arg0: i32, %arg1: i32, %arg2: i32) -> (i32, i32) {
    %c0_i32 = arith.constant 0 : i32
    %c0_i32_0 = arith.constant 0 : i32
    return %c0_i32, %arg1 : i32, i32
  }
  func.func @transform_3(%arg0: i32, %arg1: i32, %arg2: i32) -> (i32, i32) {
    %c0_i32 = arith.constant 0 : i32
    return %arg0, %arg1 : i32, i32
  }
}

module attributes {stable_mosaic.version = 11 : i64} {
  func.func @_flash_kernel(%arg0: i32, %arg1: i32, %arg2: i32, %arg3: i32, %arg4: memref<1x128x128xf32, #tpu.memory_space<vmem>>, %arg5: memref<1x128x128xf32, #tpu.memory_space<vmem>>, %arg6: memref<1x128x128xf32, #tpu.memory_space<vmem>>, %arg7: memref<1x128x128xf32, #tpu.memory_space<vmem>>, %arg8: memref<128x1xf32, #tpu.memory_space<vmem>>, %arg9: memref<128x1xf32, #tpu.memory_space<vmem>>, %arg10: memref<128x128xf32, #tpu.memory_space<vmem>>) attributes {dimension_semantics = [#tpu.dimension_semantics<parallel>, #tpu.dimension_semantics<parallel>, #tpu.dimension_semantics<parallel>, #tpu.dimension_semantics<arbitrary>], iteration_bounds = array<i64: 2, 2, 2, 2>, scalar_prefetch = 0 : i64, scratch_operands = 3 : i64, tpu.core_type = #tpu.core_type<tc>, window_params = [{transform_indices = @transform_0, window_bounds = array<i64: 1, 128, 128>}, {transform_indices = @transform_1, window_bounds = array<i64: 1, 128, 128>}, {transform_indices = @transform_2, window_bounds = array<i64: 1, 128, 128>}, {transform_indices = @transform_3, window_bounds = array<i64: 1, 128, 128>}]} {
    %c0_i32 = arith.constant 0 : i32
    %0 = arith.cmpi eq, %arg3, %c0_i32 : i32
    %1 = arith.extui %0 : i1 to i32
    %c0_i32_0 = arith.constant 0 : i32
    %2 = arith.cmpi ne, %1, %c0_i32_0 : i32
    scf.if %2 {
      %cst = arith.constant -1.000000e+30 : f32
      %12 = vector.broadcast %cst : f32 to vector<128x1xf32>
      %c0 = arith.constant 0 : index
      %c0_4 = arith.constant 0 : index
      %13 = vector.load %arg8[%c0, %c0_4] : memref<128x1xf32, #tpu.memory_space<vmem>>, vector<128x1xf32>
      tpu.vector_store %arg8[%c0, %c0_4], %12 {strides = array<i32>} : memref<128x1xf32, #tpu.memory_space<vmem>>, vector<128x1xf32>,
      %cst_5 = arith.constant 0.000000e+00 : f32
      %14 = vector.broadcast %cst_5 : f32 to vector<128x1xf32>
      %c0_6 = arith.constant 0 : index
      %c0_7 = arith.constant 0 : index
      %15 = vector.load %arg9[%c0_6, %c0_7] : memref<128x1xf32, #tpu.memory_space<vmem>>, vector<128x1xf32>
      tpu.vector_store %arg9[%c0_6, %c0_7], %14 {strides = array<i32>} : memref<128x1xf32, #tpu.memory_space<vmem>>, vector<128x1xf32>,
      %cst_8 = arith.constant 0.000000e+00 : f32
      %16 = vector.broadcast %cst_8 : f32 to vector<128x128xf32>
      %c0_9 = arith.constant 0 : index
      %c0_10 = arith.constant 0 : index
      %17 = vector.load %arg10[%c0_9, %c0_10] : memref<128x128xf32, #tpu.memory_space<vmem>>, vector<128x128xf32>
      tpu.vector_store %arg10[%c0_9, %c0_10], %16 {strides = array<i32>} : memref<128x128xf32, #tpu.memory_space<vmem>>, vector<128x128xf32>,
    } else {
    }
    %3 = arith.cmpi slt, %arg3, %arg2 : i32
    %4 = arith.extui %3 : i1 to i32
    %c0_i32_1 = arith.constant 0 : i32
    %5 = arith.cmpi ne, %4, %c0_i32_1 : i32
    scf.if %5 {
      %c0 = arith.constant 0 : index
      %c0_4 = arith.constant 0 : index
      %c0_5 = arith.constant 0 : index
      %12 = vector.load %arg4[%c0, %c0_4, %c0_5] : memref<1x128x128xf32, #tpu.memory_space<vmem>>, vector<1x128x128xf32>
      %13 = vector.shape_cast %12 : vector<1x128x128xf32> to vector<128x128xf32>
      %c0_6 = arith.constant 0 : index
      %c0_7 = arith.constant 0 : index
      %c0_8 = arith.constant 0 : index
      %14 = vector.load %arg5[%c0_6, %c0_7, %c0_8] : memref<1x128x128xf32, #tpu.memory_space<vmem>>, vector<1x128x128xf32>
      %15 = vector.shape_cast %14 : vector<1x128x128xf32> to vector<128x128xf32>
      %c0_9 = arith.constant 0 : index
      %c0_10 = arith.constant 0 : index
      %c0_11 = arith.constant 0 : index
      %16 = vector.load %arg6[%c0_9, %c0_10, %c0_11] : memref<1x128x128xf32, #tpu.memory_space<vmem>>, vector<1x128x128xf32>
      %17 = vector.shape_cast %16 : vector<1x128x128xf32> to vector<128x128xf32>
      %cst = arith.constant 0.0883883461 : f32
      %18 = vector.broadcast %cst : f32 to vector<128x128xf32>
      %19 = arith.mulf %13, %18 : vector<128x128xf32>
      %cst_12 = arith.constant dense<0.000000e+00> : vector<128x128xf32>
      %20 = tpu.matmul %19, %15, %cst_12 {dimension_numbers = #tpu.dot_dimension_numbers<[1], [1], [0], [0], [0, 0, 1, 0], [], []>} : vector<128x128xf32>, vector<128x128xf32>, vector<128x128xf32> -> vector<128x128xf32>
      %c0_13 = arith.constant 0 : index
      %c0_14 = arith.constant 0 : index
      %21 = vector.load %arg8[%c0_13, %c0_14] : memref<128x1xf32, #tpu.memory_space<vmem>>, vector<128x1xf32>
      %cst_15 = arith.constant dense<0xFF800000> : vector<128xf32>
      %22 = vector.multi_reduction <maximumf>, %20, %cst_15 [1] : vector<128x128xf32> to vector<128xf32>
      %23 = vector.shape_cast %22 : vector<128xf32> to vector<128x1xf32>
      %24 = arith.maximumf %21, %23 : vector<128x1xf32>
      %25 = arith.subf %21, %24 : vector<128x1xf32>
      %26 = math.exp %25 : vector<128x1xf32>
      %27 = vector.broadcast %24 : vector<128x1xf32> to vector<128x128xf32>
      %28 = arith.subf %20, %27 : vector<128x128xf32>
      %29 = math.exp %28 : vector<128x128xf32>
      %c0_16 = arith.constant 0 : index
      %c0_17 = arith.constant 0 : index
      %30 = vector.load %arg9[%c0_16, %c0_17] : memref<128x1xf32, #tpu.memory_space<vmem>>, vector<128x1xf32>
      %31 = arith.mulf %26, %30 : vector<128x1xf32>
      %cst_18 = arith.constant dense<0.000000e+00> : vector<128xf32>
      %32 = vector.multi_reduction <add>, %29, %cst_18 [1] : vector<128x128xf32> to vector<128xf32>
      %33 = vector.shape_cast %32 : vector<128xf32> to vector<128x1xf32>
      %34 = arith.addf %31, %33 : vector<128x1xf32>
      %c0_19 = arith.constant 0 : index
      %c0_20 = arith.constant 0 : index
      %35 = vector.load %arg9[%c0_19, %c0_20] : memref<128x1xf32, #tpu.memory_space<vmem>>, vector<128x1xf32>
      tpu.vector_store %arg9[%c0_19, %c0_20], %34 {strides = array<i32>} : memref<128x1xf32, #tpu.memory_space<vmem>>, vector<128x1xf32>,
      %c0_21 = arith.constant 0 : index
      %c0_22 = arith.constant 0 : index
      %36 = vector.load %arg10[%c0_21, %c0_22] : memref<128x128xf32, #tpu.memory_space<vmem>>, vector<128x128xf32>
      %37 = vector.broadcast %26 : vector<128x1xf32> to vector<128x128xf32>
      %38 = arith.mulf %37, %36 : vector<128x128xf32>
      %cst_23 = arith.constant dense<0.000000e+00> : vector<128x128xf32>
      %39 = tpu.matmul %29, %17, %cst_23 {dimension_numbers = #tpu.dot_dimension_numbers<[1], [0], [0], [1], [0, 0, 1, 1], [], []>} : vector<128x128xf32>, vector<128x128xf32>, vector<128x128xf32> -> vector<128x128xf32>
      %40 = arith.addf %38, %39 : vector<128x128xf32>
      %c0_24 = arith.constant 0 : index
      %c0_25 = arith.constant 0 : index
      %41 = vector.load %arg10[%c0_24, %c0_25] : memref<128x128xf32, #tpu.memory_space<vmem>>, vector<128x128xf32>
      tpu.vector_store %arg10[%c0_24, %c0_25], %40 {strides = array<i32>} : memref<128x128xf32, #tpu.memory_space<vmem>>, vector<128x128xf32>,
      %c0_26 = arith.constant 0 : index
      %c0_27 = arith.constant 0 : index
      %42 = vector.load %arg8[%c0_26, %c0_27] : memref<128x1xf32, #tpu.memory_space<vmem>>, vector<128x1xf32>
      tpu.vector_store %arg8[%c0_26, %c0_27], %24 {strides = array<i32>} : memref<128x1xf32, #tpu.memory_space<vmem>>, vector<128x1xf32>,
    } else {
    }
    %6 = arith.cmpi eq, %arg3, %arg2 : i32
    %7 = arith.extui %6 : i1 to i32
    %c0_i32_2 = arith.constant 0 : i32
    %8 = arith.cmpi ne, %7, %c0_i32_2 : i32
    scf.if %8 {
      %c0 = arith.constant 0 : index
      %c0_4 = arith.constant 0 : index
      %c0_5 = arith.constant 0 : index
      %12 = vector.load %arg4[%c0, %c0_4, %c0_5] : memref<1x128x128xf32, #tpu.memory_space<vmem>>, vector<1x128x128xf32>
      %13 = vector.shape_cast %12 : vector<1x128x128xf32> to vector<128x128xf32>
      %c0_6 = arith.constant 0 : index
      %c0_7 = arith.constant 0 : index
      %c0_8 = arith.constant 0 : index
      %14 = vector.load %arg5[%c0_6, %c0_7, %c0_8] : memref<1x128x128xf32, #tpu.memory_space<vmem>>, vector<1x128x128xf32>
      %15 = vector.shape_cast %14 : vector<1x128x128xf32> to vector<128x128xf32>
      %c0_9 = arith.constant 0 : index
      %c0_10 = arith.constant 0 : index
      %c0_11 = arith.constant 0 : index
      %16 = vector.load %arg6[%c0_9, %c0_10, %c0_11] : memref<1x128x128xf32, #tpu.memory_space<vmem>>, vector<1x128x128xf32>
      %17 = vector.shape_cast %16 : vector<1x128x128xf32> to vector<128x128xf32>
      %cst = arith.constant 0.0883883461 : f32
      %18 = vector.broadcast %cst : f32 to vector<128x128xf32>
      %19 = arith.mulf %13, %18 : vector<128x128xf32>
      %cst_12 = arith.constant dense<0.000000e+00> : vector<128x128xf32>
      %20 = tpu.matmul %19, %15, %cst_12 {dimension_numbers = #tpu.dot_dimension_numbers<[1], [1], [0], [0], [0, 0, 1, 0], [], []>} : vector<128x128xf32>, vector<128x128xf32>, vector<128x128xf32> -> vector<128x128xf32>
      %21 = tpu.iota {dimensions = array<i32: 0>} : vector<128x128xi32>
      %22 = tpu.iota {dimensions = array<i32: 1>} : vector<128x128xi32>
      %23 = arith.cmpi sle, %22, %21 : vector<128x128xi32>
      %cst_13 = arith.constant -1.000000e+30 : f32
      %24 = vector.broadcast %cst_13 : f32 to vector<128x128xf32>
      %25 = arith.select %23, %20, %24 : vector<128x128xi1>, vector<128x128xf32>
      %c0_14 = arith.constant 0 : index
      %c0_15 = arith.constant 0 : index
      %26 = vector.load %arg8[%c0_14, %c0_15] : memref<128x1xf32, #tpu.memory_space<vmem>>, vector<128x1xf32>
      %cst_16 = arith.constant dense<0xFF800000> : vector<128xf32>
      %27 = vector.multi_reduction <maximumf>, %25, %cst_16 [1] : vector<128x128xf32> to vector<128xf32>
      %28 = vector.shape_cast %27 : vector<128xf32> to vector<128x1xf32>
      %29 = arith.maximumf %26, %28 : vector<128x1xf32>
      %30 = arith.subf %26, %29 : vector<128x1xf32>
      %31 = math.exp %30 : vector<128x1xf32>
      %32 = vector.broadcast %29 : vector<128x1xf32> to vector<128x128xf32>
      %33 = arith.subf %25, %32 : vector<128x128xf32>
      %34 = math.exp %33 : vector<128x128xf32>
      %c0_17 = arith.constant 0 : index
      %c0_18 = arith.constant 0 : index
      %35 = vector.load %arg9[%c0_17, %c0_18] : memref<128x1xf32, #tpu.memory_space<vmem>>, vector<128x1xf32>
      %36 = arith.mulf %31, %35 : vector<128x1xf32>
      %cst_19 = arith.constant dense<0.000000e+00> : vector<128xf32>
      %37 = vector.multi_reduction <add>, %34, %cst_19 [1] : vector<128x128xf32> to vector<128xf32>
      %38 = vector.shape_cast %37 : vector<128xf32> to vector<128x1xf32>
      %39 = arith.addf %36, %38 : vector<128x1xf32>
      %c0_20 = arith.constant 0 : index
      %c0_21 = arith.constant 0 : index
      %40 = vector.load %arg9[%c0_20, %c0_21] : memref<128x1xf32, #tpu.memory_space<vmem>>, vector<128x1xf32>
      tpu.vector_store %arg9[%c0_20, %c0_21], %39 {strides = array<i32>} : memref<128x1xf32, #tpu.memory_space<vmem>>, vector<128x1xf32>,
      %c0_22 = arith.constant 0 : index
      %c0_23 = arith.constant 0 : index
      %41 = vector.load %arg10[%c0_22, %c0_23] : memref<128x128xf32, #tpu.memory_space<vmem>>, vector<128x128xf32>
      %42 = vector.broadcast %31 : vector<128x1xf32> to vector<128x128xf32>
      %43 = arith.mulf %42, %41 : vector<128x128xf32>
      %cst_24 = arith.constant dense<0.000000e+00> : vector<128x128xf32>
      %44 = tpu.matmul %34, %17, %cst_24 {dimension_numbers = #tpu.dot_dimension_numbers<[1], [0], [0], [1], [0, 0, 1, 1], [], []>} : vector<128x128xf32>, vector<128x128xf32>, vector<128x128xf32> -> vector<128x128xf32>
      %45 = arith.addf %43, %44 : vector<128x128xf32>
      %c0_25 = arith.constant 0 : index
      %c0_26 = arith.constant 0 : index
      %46 = vector.load %arg10[%c0_25, %c0_26] : memref<128x128xf32, #tpu.memory_space<vmem>>, vector<128x128xf32>
      tpu.vector_store %arg10[%c0_25, %c0_26], %45 {strides = array<i32>} : memref<128x128xf32, #tpu.memory_space<vmem>>, vector<128x128xf32>,
      %c0_27 = arith.constant 0 : index
      %c0_28 = arith.constant 0 : index
      %47 = vector.load %arg8[%c0_27, %c0_28] : memref<128x1xf32, #tpu.memory_space<vmem>>, vector<128x1xf32>
      tpu.vector_store %arg8[%c0_27, %c0_28], %29 {strides = array<i32>} : memref<128x1xf32, #tpu.memory_space<vmem>>, vector<128x1xf32>,
    } else {
    }
    %c1_i32 = arith.constant 1 : i32
    %9 = arith.cmpi eq, %arg3, %c1_i32 : i32
    %10 = arith.extui %9 : i1 to i32
    %c0_i32_3 = arith.constant 0 : i32
    %11 = arith.cmpi ne, %10, %c0_i32_3 : i32
    scf.if %11 {
      %c0 = arith.constant 0 : index
      %c0_4 = arith.constant 0 : index
      %12 = vector.load %arg9[%c0, %c0_4] : memref<128x1xf32, #tpu.memory_space<vmem>>, vector<128x1xf32>
      %13 = tpu.reciprocal %12 {approx = true} : vector<128x1xf32> -> vector<128x1xf32>
      %c0_5 = arith.constant 0 : index
      %c0_6 = arith.constant 0 : index
      %14 = vector.load %arg10[%c0_5, %c0_6] : memref<128x128xf32, #tpu.memory_space<vmem>>, vector<128x128xf32>
      %15 = vector.broadcast %13 : vector<128x1xf32> to vector<128x128xf32>
      %16 = arith.mulf %14, %15 : vector<128x128xf32>
      %c0_7 = arith.constant 0 : index
      %c0_8 = arith.constant 0 : index
      %c0_9 = arith.constant 0 : index
      %17 = vector.load %arg7[%c0_7, %c0_8, %c0_9] : memref<1x128x128xf32, #tpu.memory_space<vmem>>, vector<1x128x128xf32>
      %18 = vector.shape_cast %17 : vector<1x128x128xf32> to vector<128x128xf32>
      %19 = vector.shape_cast %16 : vector<128x128xf32> to vector<1x128x128xf32>
      tpu.vector_store %arg7[%c0_7, %c0_8, %c0_9], %19 {strides = array<i32>} : memref<1x128x128xf32, #tpu.memory_space<vmem>>, vector<1x128x128xf32>,
    } else {
    }
    return
  }
  func.func @transform_0(%arg0: i32, %arg1: i32, %arg2: i32, %arg3: i32) -> (i32, i32, i32) {
    %c2_i32 = arith.constant 2 : i32
    %0 = arith.muli %arg0, %c2_i32 : i32
    %1 = arith.addi %0, %arg2 : i32
    %c0_i32 = arith.constant 0 : i32
    %c0_i32_0 = arith.constant 0 : i32
    return %arg1, %1, %c0_i32 : i32, i32, i32
  }
  func.func @transform_1(%arg0: i32, %arg1: i32, %arg2: i32, %arg3: i32) -> (i32, i32, i32) {
    %c2_i32 = arith.constant 2 : i32
    %0 = arith.addi %c2_i32, %arg1 : i32
    %c2_i32_0 = arith.constant 2 : i32
    %1 = arith.muli %arg0, %c2_i32_0 : i32
    %2 = arith.minsi %arg3, %arg2 : i32
    %3 = arith.addi %1, %2 : i32
    %c0_i32 = arith.constant 0 : i32
    %c0_i32_1 = arith.constant 0 : i32
    return %0, %3, %c0_i32 : i32, i32, i32
  }
  func.func @transform_2(%arg0: i32, %arg1: i32, %arg2: i32, %arg3: i32) -> (i32, i32, i32) {
    %c4_i32 = arith.constant 4 : i32
    %0 = arith.addi %c4_i32, %arg1 : i32
    %c2_i32 = arith.constant 2 : i32
    %1 = arith.muli %arg0, %c2_i32 : i32
    %2 = arith.minsi %arg3, %arg2 : i32
    %3 = arith.addi %1, %2 : i32
    %c0_i32 = arith.constant 0 : i32
    %c0_i32_0 = arith.constant 0 : i32
    return %0, %3, %c0_i32 : i32, i32, i32
  }
  func.func @transform_3(%arg0: i32, %arg1: i32, %arg2: i32, %arg3: i32) -> (i32, i32, i32) {
    %c2_i32 = arith.constant 2 : i32
    %0 = arith.muli %arg0, %c2_i32 : i32
    %1 = arith.addi %0, %arg2 : i32
    %c0_i32 = arith.constant 0 : i32
    %c0_i32_0 = arith.constant 0 : i32
    return %arg1, %1, %c0_i32 : i32, i32, i32
  }
}

module attributes {stable_mosaic.version = 11 : i64} {
  func.func @_linear_kernel(%arg0: i32, %arg1: i32, %arg2: i32, %arg3: memref<256x256xf32, #tpu.memory_space<vmem>>, %arg4: memref<256x128xf32, #tpu.memory_space<vmem>>, %arg5: memref<1x128xf32, #tpu.memory_space<vmem>>, %arg6: memref<1x256x128xf32, #tpu.memory_space<vmem>>, %arg7: memref<256x128xf32, #tpu.memory_space<vmem>>) attributes {dimension_semantics = [#tpu.dimension_semantics<parallel>, #tpu.dimension_semantics<parallel>, #tpu.dimension_semantics<arbitrary>], iteration_bounds = array<i64: 2, 6, 1>, scalar_prefetch = 0 : i64, scratch_operands = 1 : i64, tpu.core_type = #tpu.core_type<tc>, window_params = [{transform_indices = @transform_0, window_bounds = array<i64: 256, 256>}, {transform_indices = @transform_1, window_bounds = array<i64: 256, 128>}, {transform_indices = @transform_2, window_bounds = array<i64: 1, 128>}, {transform_indices = @transform_3, window_bounds = array<i64: 1, 256, 128>}]} {
    %c0_i32 = arith.constant 0 : i32
    %0 = arith.cmpi eq, %arg2, %c0_i32 : i32
    %1 = arith.extui %0 : i1 to i32
    %c0_i32_0 = arith.constant 0 : i32
    %2 = arith.cmpi ne, %1, %c0_i32_0 : i32
    scf.if %2 {
      %cst_10 = arith.constant 0.000000e+00 : f32
      %12 = vector.broadcast %cst_10 : f32 to vector<256x128xf32>
      %c0_11 = arith.constant 0 : index
      %c0_12 = arith.constant 0 : index
      %13 = vector.load %arg7[%c0_11, %c0_12] : memref<256x128xf32, #tpu.memory_space<vmem>>, vector<256x128xf32>
      tpu.vector_store %arg7[%c0_11, %c0_12], %12 {strides = array<i32>} : memref<256x128xf32, #tpu.memory_space<vmem>>, vector<256x128xf32>,
    } else {
    }
    %c0 = arith.constant 0 : index
    %c0_1 = arith.constant 0 : index
    %3 = vector.load %arg3[%c0, %c0_1] : memref<256x256xf32, #tpu.memory_space<vmem>>, vector<256x256xf32>
    %c0_2 = arith.constant 0 : index
    %c0_3 = arith.constant 0 : index
    %4 = vector.load %arg7[%c0_2, %c0_3] : memref<256x128xf32, #tpu.memory_space<vmem>>, vector<256x128xf32>
    %c0_4 = arith.constant 0 : index
    %c0_5 = arith.constant 0 : index
    %5 = vector.load %arg4[%c0_4, %c0_5] : memref<256x128xf32, #tpu.memory_space<vmem>>, vector<256x128xf32>
    %cst = arith.constant dense<0.000000e+00> : vector<256x128xf32>
    %6 = tpu.matmul %3, %5, %cst {dimension_numbers = #tpu.dot_dimension_numbers<[1], [0], [0], [1], [0, 0, 1, 1], [], []>} : vector<256x256xf32>, vector<256x128xf32>, vector<256x128xf32> -> vector<256x128xf32>
    %7 = arith.addf %4, %6 : vector<256x128xf32>
    %c0_6 = arith.constant 0 : index
    %c0_7 = arith.constant 0 : index
    %8 = vector.load %arg7[%c0_6, %c0_7] : memref<256x128xf32, #tpu.memory_space<vmem>>, vector<256x128xf32>
    tpu.vector_store %arg7[%c0_6, %c0_7], %7 {strides = array<i32>} : memref<256x128xf32, #tpu.memory_space<vmem>>, vector<256x128xf32>,
    %c0_i32_8 = arith.constant 0 : i32
    %9 = arith.cmpi eq, %arg2, %c0_i32_8 : i32
    %10 = arith.extui %9 : i1 to i32
    %c0_i32_9 = arith.constant 0 : i32
    %11 = arith.cmpi ne, %10, %c0_i32_9 : i32
    scf.if %11 {
      %c0_10 = arith.constant 0 : index
      %c0_11 = arith.constant 0 : index
      %12 = vector.load %arg7[%c0_10, %c0_11] : memref<256x128xf32, #tpu.memory_space<vmem>>, vector<256x128xf32>
      %c0_12 = arith.constant 0 : index
      %c0_13 = arith.constant 0 : index
      %13 = vector.load %arg5[%c0_12, %c0_13] : memref<1x128xf32, #tpu.memory_space<vmem>>, vector<1x128xf32>
      %14 = vector.broadcast %13 : vector<1x128xf32> to vector<256x128xf32>
      %15 = arith.addf %12, %14 : vector<256x128xf32>
      %c0_14 = arith.constant 0 : index
      %c0_15 = arith.constant 0 : index
      %c0_16 = arith.constant 0 : index
      %16 = vector.load %arg6[%c0_14, %c0_15, %c0_16] : memref<1x256x128xf32, #tpu.memory_space<vmem>>, vector<1x256x128xf32>
      %17 = vector.shape_cast %16 : vector<1x256x128xf32> to vector<256x128xf32>
      %18 = vector.shape_cast %15 : vector<256x128xf32> to vector<1x256x128xf32>
      tpu.vector_store %arg6[%c0_14, %c0_15, %c0_16], %18 {strides = array<i32>} : memref<1x256x128xf32, #tpu.memory_space<vmem>>, vector<1x256x128xf32>,
    } else {
    }
    return
  }
  func.func @transform_0(%arg0: i32, %arg1: i32, %arg2: i32) -> (i32, i32) {
    %c0_i32 = arith.constant 0 : i32
    return %arg0, %arg2 : i32, i32
  }
  func.func @transform_1(%arg0: i32, %arg1: i32, %arg2: i32) -> (i32, i32) {
    %c0_i32 = arith.constant 0 : i32
    return %arg2, %arg1 : i32, i32
  }
  func.func @transform_2(%arg0: i32, %arg1: i32, %arg2: i32) -> (i32, i32) {
    %c0_i32 = arith.constant 0 : i32
    %c0_i32_0 = arith.constant 0 : i32
    return %c0_i32, %arg1 : i32, i32
  }
  func.func @transform_3(%arg0: i32, %arg1: i32, %arg2: i32) -> (i32, i32, i32) {
    %c0_i32 = arith.constant 0 : i32
    %c0_i32_0 = arith.constant 0 : i32
    return %arg1, %arg0, %c0_i32 : i32, i32, i32
  }
}

</mosaic_0001>

<bundles_post_ra>
// kernel: causal_self_attention.3
= control target key start
LH: loop header
LB: loop body
LE: loop exit
PB: predicated region body
PF: predicated region fallthrough
CT: control target
= control target key end

     0   :  { %s1832_s0 = inlined_call_operand.hbm [shape: f32[512,256], index: 0, kind: input, shape index: {}]   ;;  %s1833_s1 = inlined_call_operand.hbm [shape: f32[256,768], index: 1, kind: input, shape index: {}]   ;;  %s1834_s2 = inlined_call_operand.vmem [shape: f32[1,768], index: 2, kind: input, shape index: {}]   ;;  %s1835_s3 = inlined_call_operand.vmem [shape: f32[6,512,128], index: 3, kind: output, shape index: {}]  }
   0x1   :  { %1840 = sst [smem:[#allocation9_spill]] %s1832_s0 }
   0x2   :  { %8 = vsyncpa [#allocation4], 0 }
   0x3   :  { %10 = vsyncpa [#allocation4 + $0x1], 0 }
   0x4   :  { %11 = vsyncpa [#allocation6], 0 }
   0x5   :  { %13 = vsyncpa [#allocation6 + $0x1], 0  ;;  %s1372_s12 = smov 0   ;;  %s1374_s13 = smov 0  }
   0x6   :  { %s1376_s14 = smov 0   ;;  %s1378_s15 = smov 0  }
   0x7   :  { %s1380_s16 = smov 0   ;;  %s1382_s17 = smov 0  }
   0x8   :  { %s1384_s18 = smov 0   ;;  %s1386_s19 = smov 0  }
   0x9   :  { %s1388_s20 = smov 0   ;;  %s1390_s21 = smov 0  }
   0xa   :  { %s1392_s22 = smov 0  }
   0xb LB: > { %s981_s23 = sadd.s32 4294967295, %s1342_s22   ;;  %s38_s24 = sadd.s32 1, %s1338_s21  ;;  %s1342_s22 = sphi %s1392_s22, %s19_s22   ;;  %s1338_s21 = sphi %s1390_s21, %s1863_s21   ;;  %s1334_s20 = sphi %s1388_s20, %s1862_s20   ;;  %s1330_s19 = sphi %s1386_s19, %s1861_s19   ;;  %s1326_s18 = sphi %s1384_s18, %s1860_s18   ;;  %s1322_s17 = sphi %s1382_s17, %s1859_s17   ;;  %s1318_s16 = sphi %s1380_s16, %s1858_s16   ;;  %s1314_s15 = sphi %s1378_s15, %s1857_s15   ;;  %s1310_s14 = sphi %s1376_s14, %s1856_s14   ;;  %s1306_s13 = sphi %s1374_s13, %s1855_s13   ;;  %s1302_s12 = sphi %s1372_s12, %s1854_s12  }
   0xc   : > { %s47_s25 = sadd.s32 1, %s1322_s17  ;;  %p54_p0 = scmp.ne.s32.totalorder %s1322_s17, %s1318_s16 }
   0xd   : > { %p1837_p1 = scmp.eq.s32.totalorder %s1342_s22, 0  ;;  %p60_p2 = scmp.ne.s32.totalorder %s1318_s16, %s1314_s15 }
   0xe   : > { %p1432_p3 = scmp.eq.s32.totalorder %s981_s23, 0  ;;  %p1836_p5 = scmp.lt.s32.totalorder %s1342_s22, 12 }
   0xf   : > { %p56_p4 = por %p1837_p1, %p54_p0  ;;  %s166_s28 = sand.u32 1, %s1322_s17  }
  0x10   : > { %p1441_p6 = por %p1432_p3, %p60_p2  ;;  %s985_s29 = sshll.u32 %s166_s28, 9 }
  0x11   : > { %s1001_s30 = sshll.u32 %s1338_s21, 13  ;;  %s1843_s0 = sld [smem:[#allocation9_spill]] }
  0x12   : > { %s1842_s27 = scalar_select %p1441_p6, 1, 0 }
  0x13   : > { %s170_s7 = scalar_lea.vmem [#allocation3], %s985_s29  ;;  %p1456_p7 = pnand %p1836_p5, %p56_p4 }
  0x14   : > { %s180_s8 = sshll.u32 %s170_s7, 4  ;;  %s1461_s10 = scalar_lea.sflag [#allocation4], %s166_s28  ;;  %s1452_s8 = int_to_ptr.vmem [resolvable:$true] %s180_s8 }
  0x15   : > { %p1190_p10 = pneg %p1456_p7 }
  0x17   : > { %s1450_s6 = scalar_lea.hbm %s1843_s0, %s1001_s30  ;;  %s1193_s29 = scalar_lea.hbm %s1843_s0, 16384 }
  0x18   : > { %s1188_s11 = scalar_lea.hbm %s1450_s6, 8192  ;;  %p1194_p13 = scmp.lt.u32.totalorder %s1450_s6, %s1843_s0 }
  0x19   : > { %p1189_p9 = scmp.ne.s32.totalorder %s1450_s6, %s1188_s11  ;;  %p1195_p0 = scmp.lt.u32.totalorder %s1193_s29, %s1188_s11 }
  0x1a   : > { %p1197_p4 = scmp.lt.u32.totalorder %s1188_s11, %s1450_s6 }
  0x1b   : > { %p1191_p11 = pnand %p1190_p10, %p1189_p9  ;;  %p1196_p2 = por %p1195_p0, %p1194_p13 }
  0x1d   : > { %p1192_p12 = pneg %p1191_p11  ;;  %p1198_p5 = por %p1197_p4, %p1196_p2 }
  0x1f   : > { %p1199_p1 = pnand %p1198_p5, %p1192_p12 }
  0x21   : > { %1202 = shalt.err (!%p1199_p1)
}
  0x22   : > { %s1203_s28 = scalar_lea.vmem %s1452_s8, 8192  ;;  %s1344_s5 = smov [#allocation3]  }
  0x23   : > { %p1204_p9 = scmp.ne.s32.totalorder %s1452_s8, %s1203_s28  ;;  %s1208_s7 = sshll.u32 %s1344_s5, 4  ;;  %s1209_s7 = int_to_ptr.vmem [resolvable:$false] %s1208_s7 }
  0x24   : > { %s1210_s15 = scalar_lea.vmem %s1209_s7, 16384  ;;  %p1211_p6 = scmp.lt.s32.totalorder %s1452_s8, %s1209_s7 }
  0x25   : > { %p1206_p11 = pnand %p1204_p9, %p1190_p10  ;;  %p1212_p13 = scmp.lt.s32.totalorder %s1210_s15, %s1203_s28 }
  0x27   : > { %p1207_p8 = pneg %p1206_p11  ;;  %p1213_p0 = por %p1212_p13, %p1211_p6 }
  0x29   : > { %p1214_p2 = pnand %p1213_p0, %p1207_p8 }
  0x2b   : > { %1217 = shalt.err (!%p1214_p2)
}
  0x2c   : > { %s1345_s11 = smov 256   ;;  %s1346_s23 = smov 16  }
  0x2d   : > { %1089 = dma.hbm_to_vmem [thread:$0]  (!%p1456_p7), %s1450_s6, 8192, %s1452_s8, %s1461_s10, %s1345_s11, %s1345_s11, %s1346_s23  }
  0x2e   : > { %p217_p1 = scmp.lt.s32.totalorder %s1342_s22, 13  ;;  %p1845_p5 = scmp.ge.s32.totalorder %s1342_s22, 1 }
  0x2f   : > { %s34_s30 = sadd.s32 1, %s1334_s20  ;;  %s75_s4 = sadd.s32 1, %s1310_s14 }
  0x30   : > { %p1492_p6 = pnand %p1845_p5, %p217_p1  ;;  %p36_p8 = scmp.ge.s32.totalorder %s34_s30, 6 }
  0x31   : > { %p82_p10 = scmp.ne.s32.totalorder %s1310_s14, %s1306_s13  ;;  %p88_p12 = scmp.ne.s32.totalorder %s1306_s13, %s1302_s12 }
  0x32   : > { %s190_s28 = sand.u32 1, %s1310_s14   ;;  %s1865_s30 = smov (%p36_p8, %s34_s30), 0 }
  0x33   : > { %s1867_s24 = smov (!%p36_p8, %s38_s24), %s1338_s21  ;;  %s71_s6 = ssub.s32 %s1334_s20, %s1865_s30 }
  0x34   : > { %p1847_p7 = scmp.eq.s32.totalorder %s1342_s22, 0  ;;  %p40_p9 = scmp.ge.s32.totalorder %s1867_s24, 2 }
  0x35   : > { %p73_p11 = scmp.eq.s32.totalorder %s71_s6, 0  ;;  %p1518_p13 = por %p88_p12, %p1432_p3 }
  0x36   : > { %p1512_p4 = por %p82_p10, %p1847_p7  ;;  %s1869_s24 = smov (%p40_p9, %s1867_s24), 0 }
  0x37   : > { %s1849_s12 = scalar_select %p1518_p13, 1, 0 }
  0x38   : > { %s1525_s9 = scalar_select %p73_p11, %s1310_s14, %s75_s4  }
  0x39   : > { %s42_s10 = ssub.s32 %s1338_s21, %s1869_s24  ;;  %s989_s5 = sshll.u32 %s190_s28, 8 }
  0x3a   : > { %p45_p0 = scmp.eq.s32.totalorder %s42_s10, 0  ;;  %s990_s7 = sshll.u32 %s1334_s20, 7 }
  0x3b   : > { %s194_s15 = scalar_lea.vmem [#allocation5], %s989_s5  ;;  %s1538_s0 = scalar_lea.hbm %s1833_s1, %s990_s7 }
  0x3c   : > { %s203_s11 = sshll.u32 %s194_s15, 4  ;;  %p1850_p3 = scmp.lt.s32.totalorder %s1342_s22, 12  ;;  %s1540_s11 = int_to_ptr.vmem [resolvable:$true] %s203_s11 }
  0x3d   : > { %s1533_s23 = scalar_select %p45_p0, %s1322_s17, %s47_s25  }
  0x3e   : > { %p1546_p2 = pnand %p1850_p3, %p1512_p4  ;;  %s1550_s25 = scalar_lea.sflag [#allocation6], %s190_s28 }
  0x3f   : > { %s1218_s10 = scalar_lea.hbm %s1538_s0, 4096  ;;  %s1223_s8 = scalar_lea.hbm %s1833_s1, 24576 }
  0x40   : > { %p1219_p1 = scmp.ne.s32.totalorder %s1538_s0, %s1218_s10  ;;  %p1220_p5 = pneg %p1546_p2 }
  0x41   : > { %p1224_p12 = scmp.lt.u32.totalorder %s1538_s0, %s1833_s1  ;;  %p1225_p7 = scmp.lt.u32.totalorder %s1223_s8, %s1218_s10 }
  0x42   : > { %p1221_p8 = pnand %p1220_p5, %p1219_p1  ;;  %p1227_p9 = scmp.lt.u32.totalorder %s1218_s10, %s1538_s0 }
  0x43   : > { %p1226_p4 = por %p1225_p7, %p1224_p12 }
  0x44   : > { %p1222_p10 = pneg %p1221_p8 }
  0x45   : > { %p1228_p11 = por %p1227_p9, %p1226_p4 }
  0x47   : > { %p1229_p0 = pnand %p1228_p11, %p1222_p10 }
  0x49   : > { %1232 = shalt.err (!%p1229_p0)
}
  0x4a   : > { %s1233_s28 = scalar_lea.vmem %s1540_s11, 4096  ;;  %s1347_s26 = smov [#allocation5]  }
  0x4b   : > { %p1234_p3 = scmp.ne.s32.totalorder %s1540_s11, %s1233_s28  ;;  %s1238_s5 = sshll.u32 %s1347_s26, 4  ;;  %s1239_s5 = int_to_ptr.vmem [resolvable:$false] %s1238_s5 }
  0x4c   : > { %s1240_s7 = scalar_lea.vmem %s1239_s5, 8192  ;;  %p1241_p13 = scmp.lt.s32.totalorder %s1540_s11, %s1239_s5 }
  0x4d   : > { %p1236_p1 = pnand %p1234_p3, %p1220_p5  ;;  %p1242_p12 = scmp.lt.s32.totalorder %s1240_s7, %s1233_s28 }
  0x4f   : > { %p1237_p8 = pneg %p1236_p1  ;;  %p1243_p7 = por %p1242_p12, %p1241_p13 }
  0x51   : > { %p1244_p4 = pnand %p1243_p7, %p1237_p8 }
  0x53   : > { %1247 = shalt.err (!%p1244_p4)
}
  0x54   : > { %s1348_s10 = smov 768   ;;  %s1349_s8 = smov 128  }
  0x55   : > { %s1350_s15 = smov 8   ;;  %221 = sbr.rel (%p1492_p6) target bundleno = 438 (0x1b6), region = 32 }
  0x56   : > { %1092 = dma.hbm_to_vmem [thread:$0]  (!%p1546_p2), %s1538_s0, 4096, %s1540_s11, %s1550_s25, %s1348_s10, %s1349_s8, %s1350_s15  }
  0x57   : > { %s223_s6 = sand.u32 (!%p1492_p6), 1, %s1318_s16   ;;  %p1852_p13 = scmp.ne.s32.totalorder (!%p1492_p6), %s1842_s27, 0 }
  0x58   : > { %s992_s26 = sshll.u32 (!%p1492_p6), %s223_s6, 9  ;;  %s224_s28 = scalar_lea.sflag (!%p1492_p6), [#allocation4], %s223_s6 }
  0x59   : > { %s1581_s5 = scalar_lea.vmem (!%p1492_p6), [#allocation3], %s992_s26 }
  0x5c   : > { %1293 = dma.done.wait (%p1852_p13), %s224_s28, 8192  }
  0x5d   : > { %1295 = vsyncadd (%p1852_p13), %s224_s28, 4294959104  ;;  %s232_s7 = sand.u32 1, %s1306_s13   ;;  %p1853_p6 = scmp.ne.s32.totalorder %s1849_s12, 0 }
  0x5e   : > { %s993_s4 = sshll.u32 %s232_s7, 8  ;;  %s233_s0 = scalar_lea.sflag [#allocation6], %s232_s7 }
  0x5f   : > { %s1588_s11 = scalar_lea.vmem [#allocation5], %s993_s4 }
  0x60   : > { %1297 = dma.done.wait (%p1853_p6), %s233_s0, 4096  }
  0x61   : > { %1299 = vsyncadd (%p1853_p6), %s233_s0, 4294963200  ;;  %v1351_v0 = vmov 0.0|0.0   ;;  %v419_v1 = vld [vmem:[%s1588_s11] sm:$0xff]  ;;  %v420_v2 = vld [vmem:[%s1588_s11 + $0x8] sm:$0xff]  ;;  %p274_p2 = scmp.lt.s32.totalorder %s1326_s18, 5  ;;  %s994_s27 = sshll.u32 %s1330_s19, 5 }
  0x62   : > { %1002 = vmatprep.subr.bf16.mxu0 %v1351_v0  ;;  %1050 = vmatprep.subr.bf16.mxu1 %v1351_v0  ;;  %v421_v3 = vld [vmem:[%s1588_s11 + $0x10] sm:$0xff]  ;;  %v1003_v4 = vpack.c.bf16 %v420_v2, %v419_v1  ;;  %v422_v5 = vld [vmem:[%s1588_s11 + $0x18] sm:$0xff]  ;;  %v423_v7 = vld [vmem:[%s1588_s11 + $0x20] sm:$0xff]  ;;  %p280_p5 = scmp.lt.s32.totalorder %s994_s27, 63 }
  0x63   : > { %v1006_v6 = vpack.c.bf16 %v422_v5, %v421_v3  ;;  %v424_v8 = vld [vmem:[%s1588_s11 + $0x28] sm:$0xff]  ;;  %v425_v10 = vld [vmem:[%s1588_s11 + $0x30] sm:$0xff]  ;;  %v426_v11 = vld [vmem:[%s1588_s11 + $0x38] sm:$0xff]  ;;  %s1871_s18 = smov (!%p274_p2, %s1326_s18), 5 }
  0x64   : > { %1004 = vmatpush1.bf16.msra.mxu0 %v1003_v4  ;;  %1066 = vmatpush1.bf16.msra.mxu1 %v1003_v4  ;;  %v1009_v9 = vpack.c.bf16 %v424_v8, %v423_v7  ;;  %v324_v12 = vld [vmem:[%s1581_s5 + $0x8] sm:$0xff]  ;;  %v1012_v13 = vpack.c.bf16 %v426_v11, %v425_v10  ;;  %v427_v15 = vld [vmem:[%s1588_s11 + $0x40] sm:$0xff]  ;;  %v429_v18 = vld [vmem:[%s1588_s11 + $0x50] sm:$0xff]  ;;  %s1873_s27 = smov (!%p280_p5, %s994_s27), 63  ;;  %s995_s29 = sshll.u32 %s1871_s18, 6 }
  0x65   : > { %1005 = vmatprep.subr.bf16.mxu0 %v1351_v0  ;;  %1051 = vmatprep.subr.bf16.mxu1 %v1351_v0  ;;  %v356_v14 = vld [vmem:[%s1581_s5 + $0x108] sm:$0xff]  ;;  %v430_v19 = vld [vmem:[%s1588_s11 + $0x58] sm:$0xff]  ;;  %v431_v21 = vld [vmem:[%s1588_s11 + $0x60] sm:$0xff]  ;;  %s283_s12 = sadd.s32 %s995_s29, %s1873_s27  ;;  %s276_s8 = scalar_lea.vmem %s1834_s2, %s1871_s18 }
  0x66   : > { %v428_v16 = vld [vmem:[%s1588_s11 + $0x48] sm:$0xff]  ;;  %515 = vmatprep.mubr.f32.mxu0 %v324_v12  ;;  %595 = vmatprep.mubr.f32.mxu1 %v356_v14  ;;  %v1018_v20 = vpack.c.bf16 %v430_v19, %v429_v18  ;;  %v433_v24 = vld [vmem:[%s1588_s11 + $0x70] sm:$0xff]  ;;  %v434_v25 = vld [vmem:[%s1588_s11 + $0x78] sm:$0xff]  ;;  %s996_s15 = sshll.u32 %s283_s12, 3 }
  0x67   : > { %v1015_v17 = vpack.c.bf16 %v428_v16, %v427_v15  ;;  %v432_v22 = vld [vmem:[%s1588_s11 + $0x68] sm:$0xff]  ;;  %v1024_v26 = vpack.c.bf16 %v434_v25, %v433_v24  ;;  %v435_v27 = vld [vmem:[%s1588_s11 + $0x80] sm:$0xff]  ;;  %v437_v30 = vld [vmem:[%s1588_s11 + $0x90] sm:$0xff]  ;;  %s1733_s28 = scalar_lea.vmem %s1835_s3, %s996_s15 }
  0x68   : > { %1007 = vmatpush1.bf16.msra.mxu0 %v1006_v6  ;;  %1067 = vmatpush1.bf16.msra.mxu1 %v1006_v6  ;;  %v1021_v23 = vpack.c.bf16 %v432_v22, %v431_v21  ;;  %v436_v28 = vld [vmem:[%s1588_s11 + $0x88] sm:$0xff]  ;;  %v438_v31 = vld [vmem:[%s1588_s11 + $0x98] sm:$0xff]  ;;  %v439_v33 = vld [vmem:[%s1588_s11 + $0xa0] sm:$0xff] }
  0x69   : > { %1008 = vmatprep.subr.bf16.mxu0 %v1351_v0  ;;  %1052 = vmatprep.subr.bf16.mxu1 %v1351_v0  ;;  %v1027_v29 = vpack.c.bf16 %v436_v28, %v435_v27  ;;  %v1030_v32 = vpack.c.bf16 %v438_v31, %v437_v30  ;;  %v440_v34 = vld [vmem:[%s1588_s11 + $0xa8] sm:$0xff]  ;;  %v441_v36 = vld [vmem:[%s1588_s11 + $0xb0] sm:$0xff]  ;;  %v442_v37 = vld [vmem:[%s1588_s11 + $0xb8] sm:$0xff] }
  0x6a   : > { %v1033_v35 = vpack.c.bf16 %v440_v34, %v439_v33  ;;  %v1036_v38 = vpack.c.bf16 %v442_v37, %v441_v36  ;;  %v443_v39 = vld [vmem:[%s1588_s11 + $0xc0] sm:$0xff]  ;;  %v444_v40 = vld [vmem:[%s1588_s11 + $0xc8] sm:$0xff]  ;;  %v445_v42 = vld [vmem:[%s1588_s11 + $0xd0] sm:$0xff] }
  0x6b   : > { %v1039_v41 = vpack.c.bf16 %v444_v40, %v443_v39  ;;  %v446_v43 = vld [vmem:[%s1588_s11 + $0xd8] sm:$0xff]  ;;  %v447_v45 = vld [vmem:[%s1588_s11 + $0xe0] sm:$0xff]  ;;  %v448_v46 = vld [vmem:[%s1588_s11 + $0xe8] sm:$0xff] }
  0x6c   : > { %1010 = vmatpush1.bf16.msra.mxu0 %v1009_v9  ;;  %1068 = vmatpush1.bf16.msra.mxu1 %v1009_v9  ;;  %v1042_v44 = vpack.c.bf16 %v446_v43, %v445_v42  ;;  %v1045_v47 = vpack.c.bf16 %v448_v46, %v447_v45  ;;  %v449_v48 = vld [vmem:[%s1588_s11 + $0xf0] sm:$0xff]  ;;  %v450_v49 = vld [vmem:[%s1588_s11 + $0xf8] sm:$0xff]  ;;  %v323_v51 = vld [vmem:[%s1581_s5] sm:$0xff] }
  0x6d   : > { %1011 = vmatprep.subr.bf16.mxu0 %v1351_v0  ;;  %1053 = vmatprep.subr.bf16.mxu1 %v1351_v0  ;;  %v1048_v50 = vpack.c.bf16 %v450_v49, %v449_v48  ;;  %v355_v52 = vld [vmem:[%s1581_s5 + $0x100] sm:$0xff]  ;;  %v326_v53 = vld [vmem:[%s1581_s5 + $0x18] sm:$0xff]  ;;  %v325_v55 = vld [vmem:[%s1581_s5 + $0x10] sm:$0xff] }
  0x6e   : > { %v358_v54 = vld [vmem:[%s1581_s5 + $0x118] sm:$0xff]  ;;  %v357_v56 = vld [vmem:[%s1581_s5 + $0x110] sm:$0xff]  ;;  %v328_v57 = vld [vmem:[%s1581_s5 + $0x28] sm:$0xff] }
  0x6f   : > { %v360_v58 = vld [vmem:[%s1581_s5 + $0x128] sm:$0xff]  ;;  %v327_v59 = vld [vmem:[%s1581_s5 + $0x20] sm:$0xff]  ;;  %v330_v61 = vld [vmem:[%s1581_s5 + $0x38] sm:$0xff] }
  0x70   : > { %1013 = vmatpush1.bf16.msra.mxu0 %v1012_v13  ;;  %1069 = vmatpush1.bf16.msra.mxu1 %v1012_v13  ;;  %v359_v60 = vld [vmem:[%s1581_s5 + $0x120] sm:$0xff]  ;;  %v362_v62 = vld [vmem:[%s1581_s5 + $0x138] sm:$0xff]  ;;  %v329_v63 = vld [vmem:[%s1581_s5 + $0x30] sm:$0xff] }
  0x71   : > { %1014 = vmatprep.subr.bf16.mxu0 %v1351_v0  ;;  %1054 = vmatprep.subr.bf16.mxu1 %v1351_v0  ;;  %v332_v1 = vld [vmem:[%s1581_s5 + $0x48] sm:$0xff]  ;;  %v331_v3 = vld [vmem:[%s1581_s5 + $0x40] sm:$0xff]  ;;  %v334_v5 = vld [vmem:[%s1581_s5 + $0x58] sm:$0xff] }
  0x72   : > { %v364_v2 = vld [vmem:[%s1581_s5 + $0x148] sm:$0xff]  ;;  %v363_v4 = vld [vmem:[%s1581_s5 + $0x140] sm:$0xff]  ;;  %v366_v6 = vld [vmem:[%s1581_s5 + $0x158] sm:$0xff] }
  0x73   : > { %v333_v7 = vld [vmem:[%s1581_s5 + $0x50] sm:$0xff]  ;;  %v336_v9 = vld [vmem:[%s1581_s5 + $0x68] sm:$0xff]  ;;  %v335_v11 = vld [vmem:[%s1581_s5 + $0x60] sm:$0xff] }
  0x74   : > { %1016 = vmatpush1.bf16.msra.mxu0 %v1015_v17  ;;  %1070 = vmatpush1.bf16.msra.mxu1 %v1015_v17  ;;  %v365_v8 = vld [vmem:[%s1581_s5 + $0x150] sm:$0xff]  ;;  %v368_v10 = vld [vmem:[%s1581_s5 + $0x168] sm:$0xff]  ;;  %v367_v12 = vld [vmem:[%s1581_s5 + $0x160] sm:$0xff] }
  0x75   : > { %1017 = vmatprep.subr.bf16.mxu0 %v1351_v0  ;;  %1055 = vmatprep.subr.bf16.mxu1 %v1351_v0  ;;  %v338_v13 = vld [vmem:[%s1581_s5 + $0x78] sm:$0xff]  ;;  %v337_v15 = vld [vmem:[%s1581_s5 + $0x70] sm:$0xff]  ;;  %v340_v17 = vld [vmem:[%s1581_s5 + $0x88] sm:$0xff] }
  0x76   : > { %v370_v14 = vld [vmem:[%s1581_s5 + $0x178] sm:$0xff]  ;;  %v369_v16 = vld [vmem:[%s1581_s5 + $0x170] sm:$0xff]  ;;  %v372_v18 = vld [vmem:[%s1581_s5 + $0x188] sm:$0xff] }
  0x77   : > { %v339_v19 = vld [vmem:[%s1581_s5 + $0x80] sm:$0xff]  ;;  %v342_v21 = vld [vmem:[%s1581_s5 + $0x98] sm:$0xff]  ;;  %v373_v24 = vld [vmem:[%s1581_s5 + $0x190] sm:$0xff] }
  0x78   : > { %1019 = vmatpush1.bf16.msra.mxu0 %v1018_v20  ;;  %1071 = vmatpush1.bf16.msra.mxu1 %v1018_v20  ;;  %v371_v20 = vld [vmem:[%s1581_s5 + $0x180] sm:$0xff]  ;;  %v374_v22 = vld [vmem:[%s1581_s5 + $0x198] sm:$0xff]  ;;  %v344_v25 = vld [vmem:[%s1581_s5 + $0xa8] sm:$0xff] }
  0x79   : > { %1020 = vmatprep.subr.bf16.mxu0 %v1351_v0  ;;  %1056 = vmatprep.subr.bf16.mxu1 %v1351_v0  ;;  %v343_v27 = vld [vmem:[%s1581_s5 + $0xa0] sm:$0xff]  ;;  %v378_v30 = vld [vmem:[%s1581_s5 + $0x1b8] sm:$0xff]  ;;  %v345_v31 = vld [vmem:[%s1581_s5 + $0xb0] sm:$0xff] }
  0x7a   : > { %v375_v28 = vld [vmem:[%s1581_s5 + $0x1a0] sm:$0xff]  ;;  %v348_v33 = vld [vmem:[%s1581_s5 + $0xc8] sm:$0xff]  ;;  %v350_v37 = vld [vmem:[%s1581_s5 + $0xd8] sm:$0xff] }
  0x7b   : > { %v380_v34 = vld [vmem:[%s1581_s5 + $0x1c8] sm:$0xff]  ;;  %v379_v36 = vld [vmem:[%s1581_s5 + $0x1c0] sm:$0xff]  ;;  %v349_v39 = vld [vmem:[%s1581_s5 + $0xd0] sm:$0xff] }
  0x7c   : > { %1022 = vmatpush1.bf16.msra.mxu0 %v1021_v23  ;;  %1072 = vmatpush1.bf16.msra.mxu1 %v1021_v23  ;;  %v341_v23 = vld [vmem:[%s1581_s5 + $0x90] sm:$0xff]  ;;  %v384_v42 = vld [vmem:[%s1581_s5 + $0x1e8] sm:$0xff]  ;;  %v351_v43 = vld [vmem:[%s1581_s5 + $0xe0] sm:$0xff] }
  0x7d   : > { %1023 = vmatprep.subr.bf16.mxu0 %v1351_v0  ;;  %1057 = vmatprep.subr.bf16.mxu1 %v1351_v0  ;;  %v381_v40 = vld [vmem:[%s1581_s5 + $0x1d0] sm:$0xff]  ;;  %v354_v45 = vld [vmem:[%s1581_s5 + $0xf8] sm:$0xff]  ;;  %v1728_v49 = vld [vmem:[%s276_s8] ss:$0 sm:$0xff] }
  0x7e   : > { %v386_v46 = vld [vmem:[%s1581_s5 + $0x1f8] sm:$0xff]  ;;  %v385_v48 = vld [vmem:[%s1581_s5 + $0x1f0] sm:$0xff] }
  0x80   : > { %1025 = vmatpush1.bf16.msra.mxu0 %v1024_v26  ;;  %1073 = vmatpush1.bf16.msra.mxu1 %v1024_v26  ;;  %v376_v26 = vld [vmem:[%s1581_s5 + $0x1a8] sm:$0xff] }
  0x81   : > { %1026 = vmatprep.subr.bf16.mxu0 %v1351_v0  ;;  %1058 = vmatprep.subr.bf16.mxu1 %v1351_v0 }
  0x84   : > { %1028 = vmatpush1.bf16.msra.mxu0 %v1027_v29  ;;  %1074 = vmatpush1.bf16.msra.mxu1 %v1027_v29  ;;  %v346_v29 = vld [vmem:[%s1581_s5 + $0xb8] sm:$0xff] }
  0x85   : > { %1029 = vmatprep.subr.bf16.mxu0 %v1351_v0  ;;  %1059 = vmatprep.subr.bf16.mxu1 %v1351_v0 }
  0x88   : > { %1031 = vmatpush1.bf16.msra.mxu0 %v1030_v32  ;;  %1075 = vmatpush1.bf16.msra.mxu1 %v1030_v32  ;;  %v377_v32 = vld [vmem:[%s1581_s5 + $0x1b0] sm:$0xff] }
  0x89   : > { %1032 = vmatprep.subr.bf16.mxu0 %v1351_v0  ;;  %1060 = vmatprep.subr.bf16.mxu1 %v1351_v0 }
  0x8c   : > { %1034 = vmatpush1.bf16.msra.mxu0 %v1033_v35  ;;  %1076 = vmatpush1.bf16.msra.mxu1 %v1033_v35  ;;  %v347_v35 = vld [vmem:[%s1581_s5 + $0xc0] sm:$0xff] }
  0x8d   : > { %1035 = vmatprep.subr.bf16.mxu0 %v1351_v0  ;;  %1061 = vmatprep.subr.bf16.mxu1 %v1351_v0 }
  0x90   : > { %1037 = vmatpush1.bf16.msra.mxu0 %v1036_v38  ;;  %1077 = vmatpush1.bf16.msra.mxu1 %v1036_v38  ;;  %v382_v38 = vld [vmem:[%s1581_s5 + $0x1d8] sm:$0xff] }
  0x91   : > { %1038 = vmatprep.subr.bf16.mxu0 %v1351_v0  ;;  %1062 = vmatprep.subr.bf16.mxu1 %v1351_v0 }
  0x94   : > { %1040 = vmatpush1.bf16.msra.mxu0 %v1039_v41  ;;  %1078 = vmatpush1.bf16.msra.mxu1 %v1039_v41  ;;  %v352_v41 = vld [vmem:[%s1581_s5 + $0xe8] sm:$0xff] }
  0x95   : > { %1041 = vmatprep.subr.bf16.mxu0 %v1351_v0  ;;  %1063 = vmatprep.subr.bf16.mxu1 %v1351_v0 }
  0x98   : > { %1043 = vmatpush1.bf16.msra.mxu0 %v1042_v44  ;;  %1079 = vmatpush1.bf16.msra.mxu1 %v1042_v44  ;;  %v383_v44 = vld [vmem:[%s1581_s5 + $0x1e0] sm:$0xff] }
  0x99   : > { %1044 = vmatprep.subr.bf16.mxu0 %v1351_v0  ;;  %1064 = vmatprep.subr.bf16.mxu1 %v1351_v0 }
  0x9c   : > { %1046 = vmatpush1.bf16.msra.mxu0 %v1045_v47  ;;  %1080 = vmatpush1.bf16.msra.mxu1 %v1045_v47  ;;  %v353_v47 = vld [vmem:[%s1581_s5 + $0xf0] sm:$0xff] }
  0x9d   : > { %1047 = vmatprep.subr.bf16.mxu0 %v1351_v0  ;;  %1065 = vmatprep.subr.bf16.mxu1 %v1351_v0  ;;  %v361_v0 = vld [vmem:[%s1581_s5 + $0x130] sm:$0xff] }
  0xa0   : > { %1049 = vmatpush1.bf16.msra.mxu0 %v1048_v50  ;;  %1081 = vmatpush1.bf16.msra.mxu1 %v1048_v50 }
  0xa3   : > { %516 = vmatmul.mubr.f32.vlgmr.msra.gmra.mrb[0].mxu0 %v323_v51  ;;  %596 = vmatmul.mubr.f32.vlgmr.msra.gmra.mrb[0].mxu1 %v355_v52 }
  0xa4   : > { %520 = vmatprep.mubr.f32.mxu0 %v326_v53  ;;  %600 = vmatprep.mubr.f32.mxu1 %v358_v54 }
  0xa7   : > { %521 = vmatmul.mubr.f32.gmra.mrb[2].mxu0 %v325_v55  ;;  %601 = vmatmul.mubr.f32.gmra.mrb[2].mxu1 %v357_v56 }
  0xa8   : > { %525 = vmatprep.mubr.f32.mxu0 %v328_v57  ;;  %605 = vmatprep.mubr.f32.mxu1 %v360_v58 }
  0xab   : > { %526 = vmatmul.mubr.f32.gmra.mrb[4].mxu0 %v327_v59  ;;  %606 = vmatmul.mubr.f32.gmra.mrb[4].mxu1 %v359_v60 }
  0xac   : > { %530 = vmatprep.mubr.f32.mxu0 %v330_v61  ;;  %610 = vmatprep.mubr.f32.mxu1 %v362_v62 }
  0xaf   : > { %531 = vmatmul.mubr.f32.gmra.mrb[6].mxu0 %v329_v63  ;;  %611 = vmatmul.mubr.f32.gmra.mrb[6].mxu1 %v361_v0 }
  0xb0   : > { %535 = vmatprep.mubr.f32.mxu0 %v332_v1  ;;  %615 = vmatprep.mubr.f32.mxu1 %v364_v2 }
  0xb3   : > { %536 = vmatmul.mubr.f32.gmra.mrb[8].mxu0 %v331_v3  ;;  %616 = vmatmul.mubr.f32.gmra.mrb[8].mxu1 %v363_v4 }
  0xb4   : > { %540 = vmatprep.mubr.f32.mxu0 %v334_v5  ;;  %620 = vmatprep.mubr.f32.mxu1 %v366_v6 }
  0xb7   : > { %541 = vmatmul.mubr.f32.gmra.mrb[10].mxu0 %v333_v7  ;;  %621 = vmatmul.mubr.f32.gmra.mrb[10].mxu1 %v365_v8 }
  0xb8   : > { %545 = vmatprep.mubr.f32.mxu0 %v336_v9  ;;  %625 = vmatprep.mubr.f32.mxu1 %v368_v10 }
  0xbb   : > { %546 = vmatmul.mubr.f32.gmra.mrb[12].mxu0 %v335_v11  ;;  %626 = vmatmul.mubr.f32.gmra.mrb[12].mxu1 %v367_v12 }
  0xbc   : > { %550 = vmatprep.mubr.f32.mxu0 %v338_v13  ;;  %630 = vmatprep.mubr.f32.mxu1 %v370_v14 }
  0xbf   : > { %551 = vmatmul.mubr.f32.gmra.mrb[14].mxu0 %v337_v15  ;;  %631 = vmatmul.mubr.f32.gmra.mrb[14].mxu1 %v369_v16 }
  0xc0   : > { %555 = vmatprep.mubr.f32.mxu0 %v340_v17  ;;  %635 = vmatprep.mubr.f32.mxu1 %v372_v18 }
  0xc3   : > { %556 = vmatmul.mubr.f32.gmra.mrb[16].mxu0 %v339_v19  ;;  %636 = vmatmul.mubr.f32.gmra.mrb[16].mxu1 %v371_v20 }
  0xc4   : > { %560 = vmatprep.mubr.f32.mxu0 %v342_v21  ;;  %640 = vmatprep.mubr.f32.mxu1 %v374_v22 }
  0xc7   : > { %561 = vmatmul.mubr.f32.gmra.mrb[18].mxu0 %v341_v23  ;;  %641 = vmatmul.mubr.f32.gmra.mrb[18].mxu1 %v373_v24 }
  0xc8   : > { %565 = vmatprep.mubr.f32.mxu0 %v344_v25  ;;  %645 = vmatprep.mubr.f32.mxu1 %v376_v26 }
  0xcb   : > { %566 = vmatmul.mubr.f32.gmra.mrb[20].mxu0 %v343_v27  ;;  %646 = vmatmul.mubr.f32.gmra.mrb[20].mxu1 %v375_v28 }
  0xcc   : > { %570 = vmatprep.mubr.f32.mxu0 %v346_v29  ;;  %650 = vmatprep.mubr.f32.mxu1 %v378_v30 }
  0xcf   : > { %571 = vmatmul.mubr.f32.gmra.mrb[22].mxu0 %v345_v31  ;;  %651 = vmatmul.mubr.f32.gmra.mrb[22].mxu1 %v377_v32 }
  0xd0   : > { %575 = vmatprep.mubr.f32.mxu0 %v348_v33  ;;  %655 = vmatprep.mubr.f32.mxu1 %v380_v34 }
  0xd3   : > { %576 = vmatmul.mubr.f32.gmra.mrb[24].mxu0 %v347_v35  ;;  %656 = vmatmul.mubr.f32.gmra.mrb[24].mxu1 %v379_v36 }
  0xd4   : > { %580 = vmatprep.mubr.f32.mxu0 %v350_v37  ;;  %660 = vmatprep.mubr.f32.mxu1 %v382_v38 }
  0xd7   : > { %581 = vmatmul.mubr.f32.gmra.mrb[26].mxu0 %v349_v39  ;;  %661 = vmatmul.mubr.f32.gmra.mrb[26].mxu1 %v381_v40 }
  0xd8   : > { %585 = vmatprep.mubr.f32.mxu0 %v352_v41  ;;  %665 = vmatprep.mubr.f32.mxu1 %v384_v42 }
  0xdb   : > { %586 = vmatmul.mubr.f32.gmra.mrb[28].mxu0 %v351_v43  ;;  %666 = vmatmul.mubr.f32.gmra.mrb[28].mxu1 %v383_v44 }
  0xdc   : > { %590 = vmatprep.mubr.f32.mxu0 %v354_v45  ;;  %670 = vmatprep.mubr.f32.mxu1 %v386_v46 }
  0xdf   : > { %591 = vmatmul.mubr.f32.gmra.mrb[30].mxu0 %v353_v47  ;;  %671 = vmatmul.mubr.f32.gmra.mrb[30].mxu1 %v385_v48 }
 0x176   : > { %v517_v50 = vpop.f32.mrb[0].mxu0  ;;  %v597_v51 = vpop.f32.mrb[0].mxu1 }
 0x177   : > { %v782_v52 = vadd.f32 %v1728_v49, %v517_v50  ;;  %v798_v53 = vadd.f32 %v1728_v49, %v597_v51  ;;  %v519_v54 = vpop.f32.mrb[1].mxu0  ;;  %v599_v55 = vpop.f32.mrb[1].mxu1 }
 0x179   : > { %814 = vst [vmem:[%s1733_s28] sm:$0xff] %v782_v52  ;;  %830 = vst [vmem:[%s1733_s28 + $0x80] sm:$0xff] %v798_v53 }
 0x17a   : > { %v522_v56 = vpop.f32.mrb[2].mxu0  ;;  %v602_v57 = vpop.f32.mrb[2].mxu1 }
 0x17b   : > { %v783_v58 = vadd.f32 %v1728_v49, %v522_v56  ;;  %v799_v59 = vadd.f32 %v1728_v49, %v602_v57  ;;  %v524_v60 = vpop.f32.mrb[3].mxu0  ;;  %v604_v61 = vpop.f32.mrb[3].mxu1 }
 0x17d   : > { %815 = vst [vmem:[%s1733_s28 + $0x8] sm:$0xff] %v783_v58  ;;  %831 = vst [vmem:[%s1733_s28 + $0x88] sm:$0xff] %v799_v59 }
 0x17e   : > { %v527_v62 = vpop.f32.mrb[4].mxu0  ;;  %v607_v63 = vpop.f32.mrb[4].mxu1 }
 0x17f   : > { %v784_v0 = vadd.f32 %v1728_v49, %v527_v62  ;;  %v800_v1 = vadd.f32 %v1728_v49, %v607_v63  ;;  %v529_v2 = vpop.f32.mrb[5].mxu0  ;;  %v609_v3 = vpop.f32.mrb[5].mxu1 }
 0x181   : > { %816 = vst [vmem:[%s1733_s28 + $0x10] sm:$0xff] %v784_v0  ;;  %832 = vst [vmem:[%s1733_s28 + $0x90] sm:$0xff] %v800_v1 }
 0x182   : > { %v532_v4 = vpop.f32.mrb[6].mxu0  ;;  %v612_v5 = vpop.f32.mrb[6].mxu1 }
 0x183   : > { %v785_v6 = vadd.f32 %v1728_v49, %v532_v4  ;;  %v801_v7 = vadd.f32 %v1728_v49, %v612_v5  ;;  %v534_v8 = vpop.f32.mrb[7].mxu0  ;;  %v614_v9 = vpop.f32.mrb[7].mxu1 }
 0x185   : > { %817 = vst [vmem:[%s1733_s28 + $0x18] sm:$0xff] %v785_v6  ;;  %833 = vst [vmem:[%s1733_s28 + $0x98] sm:$0xff] %v801_v7 }
 0x186   : > { %v537_v10 = vpop.f32.mrb[8].mxu0  ;;  %v617_v11 = vpop.f32.mrb[8].mxu1 }
 0x187   : > { %v786_v12 = vadd.f32 %v1728_v49, %v537_v10  ;;  %v802_v13 = vadd.f32 %v1728_v49, %v617_v11  ;;  %v539_v14 = vpop.f32.mrb[9].mxu0  ;;  %v619_v15 = vpop.f32.mrb[9].mxu1 }
 0x189   : > { %818 = vst [vmem:[%s1733_s28 + $0x20] sm:$0xff] %v786_v12  ;;  %834 = vst [vmem:[%s1733_s28 + $0xa0] sm:$0xff] %v802_v13 }
 0x18a   : > { %v542_v16 = vpop.f32.mrb[10].mxu0  ;;  %v622_v17 = vpop.f32.mrb[10].mxu1 }
 0x18b   : > { %v787_v18 = vadd.f32 %v1728_v49, %v542_v16  ;;  %v803_v19 = vadd.f32 %v1728_v49, %v622_v17  ;;  %v544_v20 = vpop.f32.mrb[11].mxu0  ;;  %v624_v21 = vpop.f32.mrb[11].mxu1 }
 0x18d   : > { %819 = vst [vmem:[%s1733_s28 + $0x28] sm:$0xff] %v787_v18  ;;  %835 = vst [vmem:[%s1733_s28 + $0xa8] sm:$0xff] %v803_v19 }
 0x18e   : > { %v547_v22 = vpop.f32.mrb[12].mxu0  ;;  %v627_v23 = vpop.f32.mrb[12].mxu1 }
 0x18f   : > { %v788_v24 = vadd.f32 %v1728_v49, %v547_v22  ;;  %v804_v25 = vadd.f32 %v1728_v49, %v627_v23  ;;  %v549_v26 = vpop.f32.mrb[13].mxu0  ;;  %v629_v27 = vpop.f32.mrb[13].mxu1 }
 0x191   : > { %820 = vst [vmem:[%s1733_s28 + $0x30] sm:$0xff] %v788_v24  ;;  %836 = vst [vmem:[%s1733_s28 + $0xb0] sm:$0xff] %v804_v25 }
 0x192   : > { %v552_v28 = vpop.f32.mrb[14].mxu0  ;;  %v632_v29 = vpop.f32.mrb[14].mxu1 }
 0x193   : > { %v789_v30 = vadd.f32 %v1728_v49, %v552_v28  ;;  %v805_v31 = vadd.f32 %v1728_v49, %v632_v29  ;;  %v554_v32 = vpop.f32.mrb[15].mxu0  ;;  %v634_v33 = vpop.f32.mrb[15].mxu1 }
 0x195   : > { %821 = vst [vmem:[%s1733_s28 + $0x38] sm:$0xff] %v789_v30  ;;  %837 = vst [vmem:[%s1733_s28 + $0xb8] sm:$0xff] %v805_v31 }
 0x196   : > { %v557_v34 = vpop.f32.mrb[16].mxu0  ;;  %v637_v35 = vpop.f32.mrb[16].mxu1 }
 0x197   : > { %v790_v36 = vadd.f32 %v1728_v49, %v557_v34  ;;  %v806_v37 = vadd.f32 %v1728_v49, %v637_v35  ;;  %v559_v38 = vpop.f32.mrb[17].mxu0  ;;  %v639_v39 = vpop.f32.mrb[17].mxu1 }
 0x199   : > { %822 = vst [vmem:[%s1733_s28 + $0x40] sm:$0xff] %v790_v36  ;;  %838 = vst [vmem:[%s1733_s28 + $0xc0] sm:$0xff] %v806_v37 }
 0x19a   : > { %v562_v40 = vpop.f32.mrb[18].mxu0  ;;  %v642_v41 = vpop.f32.mrb[18].mxu1 }
 0x19b   : > { %v791_v42 = vadd.f32 %v1728_v49, %v562_v40  ;;  %v807_v43 = vadd.f32 %v1728_v49, %v642_v41  ;;  %v564_v44 = vpop.f32.mrb[19].mxu0  ;;  %v644_v45 = vpop.f32.mrb[19].mxu1 }
 0x19d   : > { %823 = vst [vmem:[%s1733_s28 + $0x48] sm:$0xff] %v791_v42  ;;  %839 = vst [vmem:[%s1733_s28 + $0xc8] sm:$0xff] %v807_v43 }
 0x19e   : > { %v567_v46 = vpop.f32.mrb[20].mxu0  ;;  %v647_v47 = vpop.f32.mrb[20].mxu1 }
 0x19f   : > { %v792_v48 = vadd.f32 %v1728_v49, %v567_v46  ;;  %v808_v50 = vadd.f32 %v1728_v49, %v647_v47  ;;  %v569_v51 = vpop.f32.mrb[21].mxu0  ;;  %v649_v52 = vpop.f32.mrb[21].mxu1 }
 0x1a1   : > { %824 = vst [vmem:[%s1733_s28 + $0x50] sm:$0xff] %v792_v48  ;;  %840 = vst [vmem:[%s1733_s28 + $0xd0] sm:$0xff] %v808_v50 }
 0x1a2   : > { %v572_v53 = vpop.f32.mrb[22].mxu0  ;;  %v652_v54 = vpop.f32.mrb[22].mxu1 }
 0x1a3   : > { %v793_v55 = vadd.f32 %v1728_v49, %v572_v53  ;;  %v809_v56 = vadd.f32 %v1728_v49, %v652_v54  ;;  %v574_v57 = vpop.f32.mrb[23].mxu0  ;;  %v654_v58 = vpop.f32.mrb[23].mxu1 }
 0x1a5   : > { %825 = vst [vmem:[%s1733_s28 + $0x58] sm:$0xff] %v793_v55  ;;  %841 = vst [vmem:[%s1733_s28 + $0xd8] sm:$0xff] %v809_v56 }
 0x1a6   : > { %v577_v59 = vpop.f32.mrb[24].mxu0  ;;  %v657_v60 = vpop.f32.mrb[24].mxu1 }
 0x1a7   : > { %v794_v61 = vadd.f32 %v1728_v49, %v577_v59  ;;  %v810_v62 = vadd.f32 %v1728_v49, %v657_v60  ;;  %v579_v63 = vpop.f32.mrb[25].mxu0  ;;  %v659_v0 = vpop.f32.mrb[25].mxu1 }
 0x1a9   : > { %826 = vst [vmem:[%s1733_s28 + $0x60] sm:$0xff] %v794_v61  ;;  %842 = vst [vmem:[%s1733_s28 + $0xe0] sm:$0xff] %v810_v62 }
 0x1aa   : > { %v582_v1 = vpop.f32.mrb[26].mxu0  ;;  %v662_v2 = vpop.f32.mrb[26].mxu1 }
 0x1ab   : > { %v795_v3 = vadd.f32 %v1728_v49, %v582_v1  ;;  %v811_v4 = vadd.f32 %v1728_v49, %v662_v2  ;;  %v584_v5 = vpop.f32.mrb[27].mxu0  ;;  %v664_v6 = vpop.f32.mrb[27].mxu1 }
 0x1ad   : > { %827 = vst [vmem:[%s1733_s28 + $0x68] sm:$0xff] %v795_v3  ;;  %843 = vst [vmem:[%s1733_s28 + $0xe8] sm:$0xff] %v811_v4 }
 0x1ae   : > { %v587_v7 = vpop.f32.mrb[28].mxu0  ;;  %v667_v8 = vpop.f32.mrb[28].mxu1 }
 0x1af   : > { %v796_v9 = vadd.f32 %v1728_v49, %v587_v7  ;;  %v812_v10 = vadd.f32 %v1728_v49, %v667_v8  ;;  %v589_v11 = vpop.f32.mrb[29].mxu0  ;;  %v669_v12 = vpop.f32.mrb[29].mxu1 }
 0x1b1   : > { %828 = vst [vmem:[%s1733_s28 + $0x70] sm:$0xff] %v796_v9  ;;  %844 = vst [vmem:[%s1733_s28 + $0xf0] sm:$0xff] %v812_v10 }
 0x1b2   : > { %v592_v13 = vpop.f32.mrb[30].mxu0  ;;  %v672_v14 = vpop.f32.mrb[30].mxu1 }
 0x1b3   : > { %v797_v15 = vadd.f32 %v1728_v49, %v592_v13  ;;  %v813_v16 = vadd.f32 %v1728_v49, %v672_v14  ;;  %v594_v17 = vpop.f32.mrb[31].mxu0  ;;  %v674_v18 = vpop.f32.mrb[31].mxu1 }
 0x1b5   : > { %829 = vst [vmem:[%s1733_s28 + $0x78] sm:$0xff] %v797_v15  ;;  %845 = vst [vmem:[%s1733_s28 + $0xf8] sm:$0xff] %v813_v16 }
 0x1b6 PF: > { %s19_s22 = sadd.s32 1, %s1342_s22   ;;  %s1854_s12 = smov %s1306_s13 }
 0x1b7   : > { %p16_p10 = scmp.ge.s32.totalorder %s19_s22, 14   ;;  %s1855_s13 = smov %s1310_s14 }
 0x1b8   : > { %s1856_s14 = smov %s1525_s9  ;;  %s1857_s15 = smov %s1318_s16 }
 0x1b9   : > { %s1858_s16 = smov %s1322_s17  ;;  %s1859_s17 = smov %s1533_s23 }
 0x1ba   : > { %s1860_s18 = smov %s1334_s20  ;;  %s1861_s19 = smov %s1338_s21 }
 0x1bb   : > { %s1862_s20 = smov %s1865_s30  ;;  %s1863_s21 = smov %s1869_s24 }
 0x1bc   :  { %18 = sbr.rel (!%p16_p10) target bundleno = 11 (0xb), region = 96 }
 0x1c3   :  { %876 = vsyncpa [#allocation4], 1 }
 0x1c4   :  { %878 = vsyncpa [#allocation4 + $0x1], 1 }
 0x1c5   :  { %879 = vsyncpa [#allocation6], 1 }
 0x1c6   :  { %881 = vsyncpa [#allocation6 + $0x1], 1 }

// kernel: causal_self_attention.5
= control target key start
LH: loop header
LB: loop body
LE: loop exit
PB: predicated region body
PF: predicated region fallthrough
CT: control target
= control target key end

     0   :  { %8 = vsyncpa [#allocation4], 0  ;;  %s1905_s0 = inlined_call_operand.vmem [shape: f32[2,512,128], index: 0, kind: input, shape index: {}]   ;;  %s1906_s1 = inlined_call_operand.vmem [shape: f32[256,256], index: 1, kind: input, shape index: {}]   ;;  %s1907_s2 = inlined_call_operand.vmem [shape: f32[1,256], index: 2, kind: input, shape index: {}]   ;;  %s1908_s3 = inlined_call_operand.hbm [shape: f32[512,256], index: 3, kind: output, shape index: {}]  }
   0x1   :  { %10 = vsyncpa [#allocation4 + $0x1], 0  ;;  %s1457_s12 = smov 0   ;;  %s1459_s13 = smov 0  }
   0x2   :  { %s1461_s14 = smov 0   ;;  %s1463_s15 = smov 0  }
   0x3   :  { %s1465_s16 = smov 0   ;;  %s1467_s17 = smov 0  }
   0x4   :  { %s1469_s18 = smov 0   ;;  %s1471_s19 = smov 0  }
   0x5 LB: > { %s1189_s20 = sadd.s32 4294967295, %s1430_s19   ;;  %s1190_s21 = sadd.s32 4294967294, %s1430_s19   ;;  %s1430_s19 = sphi %s1471_s19, %s16_s19   ;;  %s1426_s18 = sphi %s1469_s18, %s1922_s18   ;;  %s1422_s17 = sphi %s1467_s17, %s1921_s17   ;;  %s1418_s16 = sphi %s1465_s16, %s1920_s16   ;;  %s1414_s15 = sphi %s1463_s15, %s1919_s15   ;;  %s1410_s14 = sphi %s1461_s14, %s1918_s14   ;;  %s1406_s13 = sphi %s1459_s13, %s1917_s13   ;;  %s1402_s12 = sphi %s1457_s12, %s1916_s12  }
   0x6   : > { %s28_s22 = sadd.s32 1, %s1422_s17  ;;  %s35_s23 = sadd.s32 1, %s1426_s18 }
   0x7   : > { %p29_p0 = scmp.ge.s32.totalorder %s28_s22, 2  ;;  %p136_p1 = scmp.ne.s32.totalorder %s1410_s14, %s1406_s13 }
   0x8   : > { %p137_p2 = scmp.eq.s32.totalorder %s1189_s20, 3  ;;  %p142_p4 = scmp.ne.s32.totalorder %s1406_s13, %s1402_s12 }
   0x9   : > { %s1924_s22 = smov (%p29_p0, %s28_s22), 0  ;;  %s1926_s23 = smov (!%p29_p0, %s35_s23), %s1426_s18 }
   0xa   : > { %p1506_p3 = por %p137_p2, %p136_p1  ;;  %p37_p5 = scmp.ge.s32.totalorder %s1926_s23, 2 }
   0xb   : > { %p143_p6 = scmp.eq.s32.totalorder %s1190_s21, 3  ;;  %p1194_p7 = scmp.ge.s32.totalorder %s1430_s19, 1 }
   0xc   : > { %p197_p8 = scmp.lt.s32.totalorder %s1430_s19, 5  ;;  %s1928_s23 = smov (%p37_p5, %s1926_s23), 0 }
   0xd   : > { %1912 = sst [smem:[#allocation6_spill]] %s1928_s23  ;;  %p1516_p9 = por %p143_p6, %p142_p4 }
   0xe   : > { %p198_p10 = pnand %p1194_p7, %p197_p8  ;;  %s121_s26 = ssub.s32 %s1426_s18, %s1928_s23 }
   0xf   : > { %s126_s27 = sadd.s32 1, %s1410_s14  ;;  %p124_p11 = scmp.eq.s32.totalorder %s121_s26, 0 }
  0x10   : > { %201 = sbr.rel (%p198_p10) target bundleno = 423 (0x1a7), region = 32  ;;  %s1909_s29 = sand.u32 (!%p198_p10), 1, %s1406_s13  }
  0x11   : > { %s1524_s28 = scalar_select %p124_p11, %s1410_s14, %s126_s27  }
  0x12   : > { %s1196_s30 = sshll.u32 (!%p198_p10), %s1418_s16, 5  ;;  %s1195_s4 = sshll.u32 (!%p198_p10), %s1909_s29, 9 }
  0x13   : > { %p240_p12 = scmp.lt.s32.totalorder (!%p198_p10), %s1414_s15, 1  ;;  %p242_p13 = scmp.lt.s32.totalorder (!%p198_p10), %s1196_s30, 63 }
  0x14   : > { %s1199_s7 = sshll.u32 (!%p198_p10), %s1414_s15, 4  ;;  %s1543_s23 = scalar_lea.vmem (!%p198_p10), [#allocation3], %s1195_s4 }
  0x15   : > { %p251_p0 = scmp.lt.s32.totalorder (!%p198_p10), %s1199_s7, 31  ;;  %p1202_p1 = scmp.ne.s32.totalorder (!%p198_p10), %s1414_s15, 0 }
  0x17   : > { %s241_s5 = scalar_select %p240_p12, %s1414_s15, 1 }
  0x18   : > { %s1930_s30 = smov (!%p242_p13, %s1196_s30), 63  ;;  %s1932_s7 = smov (!%p251_p0, %s1199_s7), 31 }
  0x19   : > { %s1197_s6 = sshll.u32 %s241_s5, 6  ;;  %s1210_s21 = sshll.u32 %s1932_s7, 4  ;;  %v1432_v0 = vmov (!%p1202_p1), 0.0  }
  0x1a   : > { %s245_s8 = sadd.s32 %s1197_s6, %s1930_s30  ;;  %s1541_s29 = scalar_lea.vmem %s1906_s1, %s1210_s21  ;;  %272 = vst [vmem:[#allocation2] sm:$0xff] (!%p1202_p1), %v1432_v0  ;;  %273 = vst [vmem:[#allocation2 + $0x8] sm:$0xff] (!%p1202_p1), %v1432_v0 }
  0x1b   : > { %s1198_s9 = sshll.u32 %s245_s8, 3  ;;  %271 = sbr.rel (%p1202_p1) target bundleno = 58 (0x3a), region = 36  ;;  %274 = vst [vmem:[#allocation2 + $0x10] sm:$0xff] (!%p1202_p1), %v1432_v0  ;;  %275 = vst [vmem:[#allocation2 + $0x18] sm:$0xff] (!%p1202_p1), %v1432_v0 }
  0x1c   : > { %s1536_s20 = scalar_lea.vmem %s1905_s0, %s1198_s9  ;;  %276 = vst [vmem:[#allocation2 + $0x20] sm:$0xff] (!%p1202_p1), %v1432_v0  ;;  %277 = vst [vmem:[#allocation2 + $0x28] sm:$0xff] (!%p1202_p1), %v1432_v0 }
  0x1d   : > { %278 = vst [vmem:[#allocation2 + $0x30] sm:$0xff] (!%p1202_p1), %v1432_v0  ;;  %279 = vst [vmem:[#allocation2 + $0x38] sm:$0xff] (!%p1202_p1), %v1432_v0 }
  0x1e   : > { %280 = vst [vmem:[#allocation2 + $0x40] sm:$0xff] (!%p1202_p1), %v1432_v0  ;;  %281 = vst [vmem:[#allocation2 + $0x48] sm:$0xff] (!%p1202_p1), %v1432_v0 }
  0x1f   : > { %282 = vst [vmem:[#allocation2 + $0x50] sm:$0xff] (!%p1202_p1), %v1432_v0  ;;  %283 = vst [vmem:[#allocation2 + $0x58] sm:$0xff] (!%p1202_p1), %v1432_v0 }
  0x20   : > { %284 = vst [vmem:[#allocation2 + $0x60] sm:$0xff] (!%p1202_p1), %v1432_v0  ;;  %285 = vst [vmem:[#allocation2 + $0x68] sm:$0xff] (!%p1202_p1), %v1432_v0 }
  0x21   : > { %286 = vst [vmem:[#allocation2 + $0x70] sm:$0xff] (!%p1202_p1), %v1432_v0  ;;  %287 = vst [vmem:[#allocation2 + $0x78] sm:$0xff] (!%p1202_p1), %v1432_v0 }
  0x22   : > { %288 = vst [vmem:[#allocation2 + $0x80] sm:$0xff] %v1432_v0  ;;  %289 = vst [vmem:[#allocation2 + $0x88] sm:$0xff] %v1432_v0 }
  0x23   : > { %290 = vst [vmem:[#allocation2 + $0x90] sm:$0xff] %v1432_v0  ;;  %291 = vst [vmem:[#allocation2 + $0x98] sm:$0xff] %v1432_v0 }
  0x24   : > { %292 = vst [vmem:[#allocation2 + $0xa0] sm:$0xff] %v1432_v0  ;;  %293 = vst [vmem:[#allocation2 + $0xa8] sm:$0xff] %v1432_v0 }
  0x25   : > { %294 = vst [vmem:[#allocation2 + $0xb0] sm:$0xff] %v1432_v0  ;;  %295 = vst [vmem:[#allocation2 + $0xb8] sm:$0xff] %v1432_v0 }
  0x26   : > { %296 = vst [vmem:[#allocation2 + $0xc0] sm:$0xff] %v1432_v0  ;;  %297 = vst [vmem:[#allocation2 + $0xc8] sm:$0xff] %v1432_v0 }
  0x27   : > { %298 = vst [vmem:[#allocation2 + $0xd0] sm:$0xff] %v1432_v0  ;;  %299 = vst [vmem:[#allocation2 + $0xd8] sm:$0xff] %v1432_v0 }
  0x28   : > { %300 = vst [vmem:[#allocation2 + $0xe0] sm:$0xff] %v1432_v0  ;;  %301 = vst [vmem:[#allocation2 + $0xe8] sm:$0xff] %v1432_v0 }
  0x29   : > { %302 = vst [vmem:[#allocation2 + $0xf0] sm:$0xff] %v1432_v0  ;;  %303 = vst [vmem:[#allocation2 + $0xf8] sm:$0xff] %v1432_v0 }
  0x2a   : > { %304 = vst [vmem:[#allocation2 + $0x100] sm:$0xff] %v1432_v0  ;;  %305 = vst [vmem:[#allocation2 + $0x108] sm:$0xff] %v1432_v0 }
  0x2b   : > { %306 = vst [vmem:[#allocation2 + $0x110] sm:$0xff] %v1432_v0  ;;  %307 = vst [vmem:[#allocation2 + $0x118] sm:$0xff] %v1432_v0 }
  0x2c   : > { %308 = vst [vmem:[#allocation2 + $0x120] sm:$0xff] %v1432_v0  ;;  %309 = vst [vmem:[#allocation2 + $0x128] sm:$0xff] %v1432_v0 }
  0x2d   : > { %310 = vst [vmem:[#allocation2 + $0x130] sm:$0xff] %v1432_v0  ;;  %311 = vst [vmem:[#allocation2 + $0x138] sm:$0xff] %v1432_v0 }
  0x2e   : > { %312 = vst [vmem:[#allocation2 + $0x140] sm:$0xff] %v1432_v0  ;;  %313 = vst [vmem:[#allocation2 + $0x148] sm:$0xff] %v1432_v0 }
  0x2f   : > { %314 = vst [vmem:[#allocation2 + $0x150] sm:$0xff] %v1432_v0  ;;  %315 = vst [vmem:[#allocation2 + $0x158] sm:$0xff] %v1432_v0 }
  0x30   : > { %316 = vst [vmem:[#allocation2 + $0x160] sm:$0xff] %v1432_v0  ;;  %317 = vst [vmem:[#allocation2 + $0x168] sm:$0xff] %v1432_v0 }
  0x31   : > { %318 = vst [vmem:[#allocation2 + $0x170] sm:$0xff] %v1432_v0  ;;  %319 = vst [vmem:[#allocation2 + $0x178] sm:$0xff] %v1432_v0 }
  0x32   : > { %320 = vst [vmem:[#allocation2 + $0x180] sm:$0xff] %v1432_v0  ;;  %321 = vst [vmem:[#allocation2 + $0x188] sm:$0xff] %v1432_v0 }
  0x33   : > { %322 = vst [vmem:[#allocation2 + $0x190] sm:$0xff] %v1432_v0  ;;  %323 = vst [vmem:[#allocation2 + $0x198] sm:$0xff] %v1432_v0 }
  0x34   : > { %324 = vst [vmem:[#allocation2 + $0x1a0] sm:$0xff] %v1432_v0  ;;  %325 = vst [vmem:[#allocation2 + $0x1a8] sm:$0xff] %v1432_v0 }
  0x35   : > { %326 = vst [vmem:[#allocation2 + $0x1b0] sm:$0xff] %v1432_v0  ;;  %327 = vst [vmem:[#allocation2 + $0x1b8] sm:$0xff] %v1432_v0 }
  0x36   : > { %328 = vst [vmem:[#allocation2 + $0x1c0] sm:$0xff] %v1432_v0  ;;  %329 = vst [vmem:[#allocation2 + $0x1c8] sm:$0xff] %v1432_v0 }
  0x37   : > { %330 = vst [vmem:[#allocation2 + $0x1d0] sm:$0xff] %v1432_v0  ;;  %331 = vst [vmem:[#allocation2 + $0x1d8] sm:$0xff] %v1432_v0 }
  0x38   : > { %332 = vst [vmem:[#allocation2 + $0x1e0] sm:$0xff] %v1432_v0  ;;  %333 = vst [vmem:[#allocation2 + $0x1e8] sm:$0xff] %v1432_v0 }
  0x39   : > { %334 = vst [vmem:[#allocation2 + $0x1f0] sm:$0xff] %v1432_v0  ;;  %335 = vst [vmem:[#allocation2 + $0x1f8] sm:$0xff] %v1432_v0 }
  0x3a PF: > { %v433_v1 = vld [vmem:[%s1541_s29 + $0x8] sm:$0xff]  ;;  %v435_v2 = vld [vmem:[%s1541_s29 + $0x18] sm:$0xff]  ;;  %v432_v3 = vld [vmem:[%s1541_s29] sm:$0xff]  ;;  %v1433_v8 = vmov 0.0   ;;  %p1203_p2 = scmp.ne.s32.totalorder %s1414_s15, 1 }
  0x3b   : > { %v1213_v4 = vpack.c.bf16 %v435_v2, %v433_v1  ;;  %v434_v5 = vld [vmem:[%s1541_s29 + $0x10] sm:$0xff]  ;;  %v437_v6 = vld [vmem:[%s1541_s29 + $0x28] sm:$0xff]  ;;  %v439_v7 = vld [vmem:[%s1541_s29 + $0x38] sm:$0xff]  ;;  %528 = vmatprep.mubr.f32.mxu0 %v1433_v8  ;;  %624 = vmatprep.mubr.f32.mxu1 %v1433_v8 }
  0x3c   : > { %v1215_v9 = vpack.c.bf16 %v434_v5, %v432_v3  ;;  %v1217_v10 = vpack.c.bf16 %v439_v7, %v437_v6  ;;  %v436_v11 = vld [vmem:[%s1541_s29 + $0x20] sm:$0xff]  ;;  %v438_v12 = vld [vmem:[%s1541_s29 + $0x30] sm:$0xff]  ;;  %v441_v13 = vld [vmem:[%s1541_s29 + $0x48] sm:$0xff] }
  0x3d   : > { %1214 = vmatprep.subr.bf16.mxu0 %v1213_v4  ;;  %1245 = vmatprep.subr.bf16.mxu1 %v1213_v4  ;;  %v443_v14 = vld [vmem:[%s1541_s29 + $0x58] sm:$0xff]  ;;  %v1219_v15 = vpack.c.bf16 %v438_v12, %v436_v11  ;;  %v440_v17 = vld [vmem:[%s1541_s29 + $0x40] sm:$0xff]  ;;  %v442_v18 = vld [vmem:[%s1541_s29 + $0x50] sm:$0xff] }
  0x3e   : > { %1216 = vmatpush1.bf16.msra.mxu0 %v1215_v9  ;;  %1253 = vmatpush1.bf16.msra.mxu1 %v1215_v9  ;;  %v1221_v16 = vpack.c.bf16 %v443_v14, %v441_v13  ;;  %v445_v19 = vld [vmem:[%s1541_s29 + $0x68] sm:$0xff]  ;;  %v447_v20 = vld [vmem:[%s1541_s29 + $0x78] sm:$0xff]  ;;  %v1223_v21 = vpack.c.bf16 %v442_v18, %v440_v17  ;;  %v444_v23 = vld [vmem:[%s1541_s29 + $0x60] sm:$0xff] }
  0x3f   : > { %1218 = vmatprep.subr.bf16.mxu0 %v1217_v10  ;;  %1246 = vmatprep.subr.bf16.mxu1 %v1217_v10  ;;  %v1225_v22 = vpack.c.bf16 %v447_v20, %v445_v19  ;;  %v446_v24 = vld [vmem:[%s1541_s29 + $0x70] sm:$0xff]  ;;  %v449_v25 = vld [vmem:[%s1541_s29 + $0x88] sm:$0xff]  ;;  %v451_v26 = vld [vmem:[%s1541_s29 + $0x98] sm:$0xff] }
  0x40   : > { %v1227_v27 = vpack.c.bf16 %v446_v24, %v444_v23  ;;  %v1229_v28 = vpack.c.bf16 %v451_v26, %v449_v25  ;;  %v448_v29 = vld [vmem:[%s1541_s29 + $0x80] sm:$0xff]  ;;  %v450_v30 = vld [vmem:[%s1541_s29 + $0x90] sm:$0xff]  ;;  %v453_v31 = vld [vmem:[%s1541_s29 + $0xa8] sm:$0xff] }
  0x41   : > { %v455_v32 = vld [vmem:[%s1541_s29 + $0xb8] sm:$0xff]  ;;  %v1231_v33 = vpack.c.bf16 %v450_v30, %v448_v29  ;;  %v452_v35 = vld [vmem:[%s1541_s29 + $0xa0] sm:$0xff]  ;;  %v454_v36 = vld [vmem:[%s1541_s29 + $0xb0] sm:$0xff] }
  0x42   : > { %1220 = vmatpush1.bf16.msra.mxu0 %v1219_v15  ;;  %1254 = vmatpush1.bf16.msra.mxu1 %v1219_v15  ;;  %v1233_v34 = vpack.c.bf16 %v455_v32, %v453_v31  ;;  %v457_v37 = vld [vmem:[%s1541_s29 + $0xc8] sm:$0xff]  ;;  %v459_v38 = vld [vmem:[%s1541_s29 + $0xd8] sm:$0xff]  ;;  %v1235_v39 = vpack.c.bf16 %v454_v36, %v452_v35  ;;  %v456_v41 = vld [vmem:[%s1541_s29 + $0xc0] sm:$0xff] }
  0x43   : > { %1222 = vmatprep.subr.bf16.mxu0 %v1221_v16  ;;  %1247 = vmatprep.subr.bf16.mxu1 %v1221_v16  ;;  %v1237_v40 = vpack.c.bf16 %v459_v38, %v457_v37  ;;  %v458_v42 = vld [vmem:[%s1541_s29 + $0xd0] sm:$0xff]  ;;  %v461_v43 = vld [vmem:[%s1541_s29 + $0xe8] sm:$0xff]  ;;  %v463_v44 = vld [vmem:[%s1541_s29 + $0xf8] sm:$0xff] }
  0x44   : > { %v1239_v45 = vpack.c.bf16 %v458_v42, %v456_v41  ;;  %v1241_v46 = vpack.c.bf16 %v463_v44, %v461_v43  ;;  %v460_v47 = vld [vmem:[%s1541_s29 + $0xe0] sm:$0xff]  ;;  %v462_v48 = vld [vmem:[%s1541_s29 + $0xf0] sm:$0xff]  ;;  %v337_v52 = vld [vmem:[%s1536_s20 + $0x8] sm:$0xff] }
  0x45   : > { %v1243_v49 = vpack.c.bf16 %v462_v48, %v460_v47  ;;  %v336_v50 = vld [vmem:[%s1536_s20] sm:$0xff]  ;;  %v353_v53 = vld [vmem:[%s1536_s20 + $0x88] sm:$0xff]  ;;  %v338_v54 = vld [vmem:[%s1536_s20 + $0x10] sm:$0xff] }
  0x46   : > { %1224 = vmatpush1.bf16.msra.mxu0 %v1223_v21  ;;  %1255 = vmatpush1.bf16.msra.mxu1 %v1223_v21  ;;  %v352_v51 = vld [vmem:[%s1536_s20 + $0x80] sm:$0xff]  ;;  %v354_v55 = vld [vmem:[%s1536_s20 + $0x90] sm:$0xff]  ;;  %v339_v56 = vld [vmem:[%s1536_s20 + $0x18] sm:$0xff] }
  0x47   : > { %1226 = vmatprep.subr.bf16.mxu0 %v1225_v22  ;;  %1248 = vmatprep.subr.bf16.mxu1 %v1225_v22  ;;  %v355_v57 = vld [vmem:[%s1536_s20 + $0x98] sm:$0xff]  ;;  %v340_v58 = vld [vmem:[%s1536_s20 + $0x20] sm:$0xff]  ;;  %v341_v60 = vld [vmem:[%s1536_s20 + $0x28] sm:$0xff] }
  0x48   : > { %v356_v59 = vld [vmem:[%s1536_s20 + $0xa0] sm:$0xff]  ;;  %v357_v61 = vld [vmem:[%s1536_s20 + $0xa8] sm:$0xff]  ;;  %v342_v62 = vld [vmem:[%s1536_s20 + $0x30] sm:$0xff] }
  0x49   : > { %v358_v63 = vld [vmem:[%s1536_s20 + $0xb0] sm:$0xff]  ;;  %v343_v0 = vld [vmem:[%s1536_s20 + $0x38] sm:$0xff]  ;;  %v344_v2 = vld [vmem:[%s1536_s20 + $0x40] sm:$0xff] }
  0x4a   : > { %1228 = vmatpush1.bf16.msra.mxu0 %v1227_v27  ;;  %1256 = vmatpush1.bf16.msra.mxu1 %v1227_v27  ;;  %v359_v1 = vld [vmem:[%s1536_s20 + $0xb8] sm:$0xff]  ;;  %v360_v3 = vld [vmem:[%s1536_s20 + $0xc0] sm:$0xff]  ;;  %v345_v4 = vld [vmem:[%s1536_s20 + $0x48] sm:$0xff] }
  0x4b   : > { %1230 = vmatprep.subr.bf16.mxu0 %v1229_v28  ;;  %1249 = vmatprep.subr.bf16.mxu1 %v1229_v28  ;;  %v361_v5 = vld [vmem:[%s1536_s20 + $0xc8] sm:$0xff]  ;;  %v346_v6 = vld [vmem:[%s1536_s20 + $0x50] sm:$0xff]  ;;  %v347_v9 = vld [vmem:[%s1536_s20 + $0x58] sm:$0xff] }
  0x4c   : > { %v362_v7 = vld [vmem:[%s1536_s20 + $0xd0] sm:$0xff]  ;;  %v363_v10 = vld [vmem:[%s1536_s20 + $0xd8] sm:$0xff]  ;;  %v348_v11 = vld [vmem:[%s1536_s20 + $0x60] sm:$0xff] }
  0x4d   : > { %v364_v12 = vld [vmem:[%s1536_s20 + $0xe0] sm:$0xff]  ;;  %v349_v13 = vld [vmem:[%s1536_s20 + $0x68] sm:$0xff]  ;;  %v350_v15 = vld [vmem:[%s1536_s20 + $0x70] sm:$0xff] }
  0x4e   : > { %1232 = vmatpush1.bf16.msra.mxu0 %v1231_v33  ;;  %1257 = vmatpush1.bf16.msra.mxu1 %v1231_v33  ;;  %v365_v14 = vld [vmem:[%s1536_s20 + $0xe8] sm:$0xff]  ;;  %v366_v16 = vld [vmem:[%s1536_s20 + $0xf0] sm:$0xff]  ;;  %v351_v17 = vld [vmem:[%s1536_s20 + $0x78] sm:$0xff] }
  0x4f   : > { %1234 = vmatprep.subr.bf16.mxu0 %v1233_v34  ;;  %1250 = vmatprep.subr.bf16.mxu1 %v1233_v34  ;;  %v367_v18 = vld [vmem:[%s1536_s20 + $0xf8] sm:$0xff]  ;;  %v368_v19 = vld [vmem:[#allocation2] sm:$0xff]  ;;  %v369_v21 = vld [vmem:[#allocation2 + $0x8] sm:$0xff] }
  0x50   : > { %v400_v20 = vld [vmem:[#allocation2 + $0x100] sm:$0xff]  ;;  %v401_v22 = vld [vmem:[#allocation2 + $0x108] sm:$0xff]  ;;  %v370_v31 = vld [vmem:[#allocation2 + $0x10] sm:$0xff] }
  0x51   : > { %v402_v32 = vld [vmem:[#allocation2 + $0x110] sm:$0xff]  ;;  %v403_v33 = vld [vmem:[#allocation2 + $0x118] sm:$0xff]  ;;  %v372_v42 = vld [vmem:[#allocation2 + $0x20] sm:$0xff] }
  0x52   : > { %1236 = vmatpush1.bf16.msra.mxu0 %v1235_v39  ;;  %1258 = vmatpush1.bf16.msra.mxu1 %v1235_v39  ;;  %v404_v43 = vld [vmem:[#allocation2 + $0x120] sm:$0xff]  ;;  %v373_v44 = vld [vmem:[#allocation2 + $0x28] sm:$0xff] }
  0x53   : > { %1238 = vmatprep.subr.bf16.mxu0 %v1237_v40  ;;  %1251 = vmatprep.subr.bf16.mxu1 %v1237_v40 }
  0x56   : > { %1240 = vmatpush1.bf16.msra.mxu0 %v1239_v45  ;;  %1259 = vmatpush1.bf16.msra.mxu1 %v1239_v45  ;;  %v405_v45 = vld [vmem:[#allocation2 + $0x128] sm:$0xff] }
  0x57   : > { %1242 = vmatprep.subr.bf16.mxu0 %v1241_v46  ;;  %1252 = vmatprep.subr.bf16.mxu1 %v1241_v46 }
  0x5a   : > { %1244 = vmatpush1.bf16.msra.mxu0 %v1243_v49  ;;  %1260 = vmatpush1.bf16.msra.mxu1 %v1243_v49 }
  0x5d   : > { %529 = vmatmul.mubr.f32.vlgmr.msra.gmra.mrb[0].mxu0 %v336_v50  ;;  %625 = vmatmul.mubr.f32.vlgmr.msra.gmra.mrb[0].mxu1 %v352_v51 }
  0x5e   : > { %534 = vmatprep.mubr.f32.mxu0 %v1433_v8  ;;  %630 = vmatprep.mubr.f32.mxu1 %v1433_v8 }
  0x61   : > { %535 = vmatmul.mubr.f32.gmra.mrb[2].mxu0 %v337_v52  ;;  %631 = vmatmul.mubr.f32.gmra.mrb[2].mxu1 %v353_v53 }
  0x62   : > { %540 = vmatprep.mubr.f32.mxu0 %v1433_v8  ;;  %636 = vmatprep.mubr.f32.mxu1 %v1433_v8 }
  0x65   : > { %541 = vmatmul.mubr.f32.gmra.mrb[4].mxu0 %v338_v54  ;;  %637 = vmatmul.mubr.f32.gmra.mrb[4].mxu1 %v354_v55  ;;  %v374_v54 = vld [vmem:[#allocation2 + $0x30] sm:$0xff] }
  0x66   : > { %546 = vmatprep.mubr.f32.mxu0 %v1433_v8  ;;  %642 = vmatprep.mubr.f32.mxu1 %v1433_v8  ;;  %v406_v55 = vld [vmem:[#allocation2 + $0x130] sm:$0xff] }
  0x69   : > { %547 = vmatmul.mubr.f32.gmra.mrb[6].mxu0 %v339_v56  ;;  %643 = vmatmul.mubr.f32.gmra.mrb[6].mxu1 %v355_v57  ;;  %v375_v56 = vld [vmem:[#allocation2 + $0x38] sm:$0xff] }
  0x6a   : > { %552 = vmatprep.mubr.f32.mxu0 %v1433_v8  ;;  %648 = vmatprep.mubr.f32.mxu1 %v1433_v8  ;;  %v407_v57 = vld [vmem:[#allocation2 + $0x138] sm:$0xff] }
  0x6d   : > { %553 = vmatmul.mubr.f32.gmra.mrb[8].mxu0 %v340_v58  ;;  %649 = vmatmul.mubr.f32.gmra.mrb[8].mxu1 %v356_v59 }
  0x6e   : > { %558 = vmatprep.mubr.f32.mxu0 %v1433_v8  ;;  %654 = vmatprep.mubr.f32.mxu1 %v1433_v8 }
  0x71   : > { %559 = vmatmul.mubr.f32.gmra.mrb[10].mxu0 %v341_v60  ;;  %655 = vmatmul.mubr.f32.gmra.mrb[10].mxu1 %v357_v61 }
  0x72   : > { %564 = vmatprep.mubr.f32.mxu0 %v1433_v8  ;;  %660 = vmatprep.mubr.f32.mxu1 %v1433_v8 }
  0x75   : > { %565 = vmatmul.mubr.f32.gmra.mrb[12].mxu0 %v342_v62  ;;  %661 = vmatmul.mubr.f32.gmra.mrb[12].mxu1 %v358_v63 }
  0x76   : > { %570 = vmatprep.mubr.f32.mxu0 %v1433_v8  ;;  %666 = vmatprep.mubr.f32.mxu1 %v1433_v8 }
  0x79   : > { %571 = vmatmul.mubr.f32.gmra.mrb[14].mxu0 %v343_v0  ;;  %667 = vmatmul.mubr.f32.gmra.mrb[14].mxu1 %v359_v1 }
  0x7a   : > { %576 = vmatprep.mubr.f32.mxu0 %v1433_v8  ;;  %672 = vmatprep.mubr.f32.mxu1 %v1433_v8 }
  0x7d   : > { %577 = vmatmul.mubr.f32.gmra.mrb[16].mxu0 %v344_v2  ;;  %673 = vmatmul.mubr.f32.gmra.mrb[16].mxu1 %v360_v3  ;;  %v376_v2 = vld [vmem:[#allocation2 + $0x40] sm:$0xff] }
  0x7e   : > { %582 = vmatprep.mubr.f32.mxu0 %v1433_v8  ;;  %678 = vmatprep.mubr.f32.mxu1 %v1433_v8  ;;  %v408_v3 = vld [vmem:[#allocation2 + $0x140] sm:$0xff] }
  0x81   : > { %583 = vmatmul.mubr.f32.gmra.mrb[18].mxu0 %v345_v4  ;;  %679 = vmatmul.mubr.f32.gmra.mrb[18].mxu1 %v361_v5  ;;  %v377_v4 = vld [vmem:[#allocation2 + $0x48] sm:$0xff] }
  0x82   : > { %588 = vmatprep.mubr.f32.mxu0 %v1433_v8  ;;  %684 = vmatprep.mubr.f32.mxu1 %v1433_v8  ;;  %v409_v5 = vld [vmem:[#allocation2 + $0x148] sm:$0xff] }
  0x85   : > { %589 = vmatmul.mubr.f32.gmra.mrb[20].mxu0 %v346_v6  ;;  %685 = vmatmul.mubr.f32.gmra.mrb[20].mxu1 %v362_v7 }
  0x86   : > { %594 = vmatprep.mubr.f32.mxu0 %v1433_v8  ;;  %690 = vmatprep.mubr.f32.mxu1 %v1433_v8 }
  0x89   : > { %595 = vmatmul.mubr.f32.gmra.mrb[22].mxu0 %v347_v9  ;;  %691 = vmatmul.mubr.f32.gmra.mrb[22].mxu1 %v363_v10 }
  0x8a   : > { %600 = vmatprep.mubr.f32.mxu0 %v1433_v8  ;;  %696 = vmatprep.mubr.f32.mxu1 %v1433_v8 }
  0x8d   : > { %601 = vmatmul.mubr.f32.gmra.mrb[24].mxu0 %v348_v11  ;;  %697 = vmatmul.mubr.f32.gmra.mrb[24].mxu1 %v364_v12 }
  0x8e   : > { %606 = vmatprep.mubr.f32.mxu0 %v1433_v8  ;;  %702 = vmatprep.mubr.f32.mxu1 %v1433_v8 }
  0x91   : > { %607 = vmatmul.mubr.f32.gmra.mrb[26].mxu0 %v349_v13  ;;  %703 = vmatmul.mubr.f32.gmra.mrb[26].mxu1 %v365_v14 }
  0x92   : > { %612 = vmatprep.mubr.f32.mxu0 %v1433_v8  ;;  %708 = vmatprep.mubr.f32.mxu1 %v1433_v8 }
  0x95   : > { %613 = vmatmul.mubr.f32.gmra.mrb[28].mxu0 %v350_v15  ;;  %709 = vmatmul.mubr.f32.gmra.mrb[28].mxu1 %v366_v16  ;;  %v378_v15 = vld [vmem:[#allocation2 + $0x50] sm:$0xff] }
  0x96   : > { %618 = vmatprep.mubr.f32.mxu0 %v1433_v8  ;;  %714 = vmatprep.mubr.f32.mxu1 %v1433_v8  ;;  %v371_v8 = vld [vmem:[#allocation2 + $0x18] sm:$0xff]  ;;  %v410_v16 = vld [vmem:[#allocation2 + $0x150] sm:$0xff] }
  0x99   : > { %619 = vmatmul.mubr.f32.gmra.mrb[30].mxu0 %v351_v17  ;;  %715 = vmatmul.mubr.f32.gmra.mrb[30].mxu1 %v367_v18  ;;  %v379_v17 = vld [vmem:[#allocation2 + $0x58] sm:$0xff] }
  0x9a   : > { %v411_v18 = vld [vmem:[#allocation2 + $0x158] sm:$0xff] }
 0x130   : > { %v530_v23 = vpop.f32.mrb[0].mxu0  ;;  %v626_v24 = vpop.f32.mrb[0].mxu1 }
 0x131   : > { %v721_v25 = vadd.f32 %v530_v23, %v368_v19  ;;  %v753_v26 = vadd.f32 %v626_v24, %v400_v20  ;;  %v532_v27 = vpop.f32.mrb[1].mxu0  ;;  %v628_v28 = vpop.f32.mrb[1].mxu1 }
 0x132   : > { %v722_v29 = vadd.f32 %v532_v27, %v369_v21  ;;  %v754_v30 = vadd.f32 %v628_v28, %v401_v22  ;;  %v380_v27 = vld [vmem:[#allocation2 + $0x60] sm:$0xff] }
 0x133   : > { %785 = vst [vmem:[#allocation2] sm:$0xff] %v721_v25  ;;  %817 = vst [vmem:[#allocation2 + $0x100] sm:$0xff] %v753_v26  ;;  %v412_v28 = vld [vmem:[#allocation2 + $0x160] sm:$0xff] }
 0x134   : > { %786 = vst [vmem:[#allocation2 + $0x8] sm:$0xff] %v722_v29  ;;  %818 = vst [vmem:[#allocation2 + $0x108] sm:$0xff] %v754_v30  ;;  %v536_v34 = vpop.f32.mrb[2].mxu0  ;;  %v632_v35 = vpop.f32.mrb[2].mxu1  ;;  %v381_v29 = vld [vmem:[#allocation2 + $0x68] sm:$0xff] }
 0x135   : > { %v723_v36 = vadd.f32 %v536_v34, %v370_v31  ;;  %v755_v37 = vadd.f32 %v632_v35, %v402_v32  ;;  %v538_v38 = vpop.f32.mrb[3].mxu0  ;;  %v634_v39 = vpop.f32.mrb[3].mxu1  ;;  %v413_v30 = vld [vmem:[#allocation2 + $0x168] sm:$0xff] }
 0x136   : > { %v724_v40 = vadd.f32 %v538_v38, %v371_v8  ;;  %v756_v41 = vadd.f32 %v634_v39, %v403_v33  ;;  %v382_v38 = vld [vmem:[#allocation2 + $0x70] sm:$0xff] }
 0x137   : > { %787 = vst [vmem:[#allocation2 + $0x10] sm:$0xff] %v723_v36  ;;  %819 = vst [vmem:[#allocation2 + $0x110] sm:$0xff] %v755_v37  ;;  %v414_v39 = vld [vmem:[#allocation2 + $0x170] sm:$0xff] }
 0x138   : > { %788 = vst [vmem:[#allocation2 + $0x18] sm:$0xff] %v724_v40  ;;  %820 = vst [vmem:[#allocation2 + $0x118] sm:$0xff] %v756_v41  ;;  %v542_v46 = vpop.f32.mrb[4].mxu0  ;;  %v638_v47 = vpop.f32.mrb[4].mxu1  ;;  %v383_v40 = vld [vmem:[#allocation2 + $0x78] sm:$0xff] }
 0x139   : > { %v725_v48 = vadd.f32 %v542_v46, %v372_v42  ;;  %v757_v49 = vadd.f32 %v638_v47, %v404_v43  ;;  %v544_v50 = vpop.f32.mrb[5].mxu0  ;;  %v640_v51 = vpop.f32.mrb[5].mxu1  ;;  %v415_v41 = vld [vmem:[#allocation2 + $0x178] sm:$0xff] }
 0x13a   : > { %v726_v52 = vadd.f32 %v544_v50, %v373_v44  ;;  %v758_v53 = vadd.f32 %v640_v51, %v405_v45  ;;  %v384_v50 = vld [vmem:[#allocation2 + $0x80] sm:$0xff] }
 0x13b   : > { %789 = vst [vmem:[#allocation2 + $0x20] sm:$0xff] %v725_v48  ;;  %821 = vst [vmem:[#allocation2 + $0x120] sm:$0xff] %v757_v49  ;;  %v416_v51 = vld [vmem:[#allocation2 + $0x180] sm:$0xff] }
 0x13c   : > { %790 = vst [vmem:[#allocation2 + $0x28] sm:$0xff] %v726_v52  ;;  %822 = vst [vmem:[#allocation2 + $0x128] sm:$0xff] %v758_v53  ;;  %v548_v58 = vpop.f32.mrb[6].mxu0  ;;  %v644_v59 = vpop.f32.mrb[6].mxu1  ;;  %v385_v52 = vld [vmem:[#allocation2 + $0x88] sm:$0xff] }
 0x13d   : > { %v727_v60 = vadd.f32 %v548_v58, %v374_v54  ;;  %v759_v61 = vadd.f32 %v644_v59, %v406_v55  ;;  %v550_v62 = vpop.f32.mrb[7].mxu0  ;;  %v646_v63 = vpop.f32.mrb[7].mxu1  ;;  %v417_v53 = vld [vmem:[#allocation2 + $0x188] sm:$0xff] }
 0x13e   : > { %v728_v0 = vadd.f32 %v550_v62, %v375_v56  ;;  %v760_v1 = vadd.f32 %v646_v63, %v407_v57  ;;  %v386_v62 = vld [vmem:[#allocation2 + $0x90] sm:$0xff] }
 0x13f   : > { %791 = vst [vmem:[#allocation2 + $0x30] sm:$0xff] %v727_v60  ;;  %823 = vst [vmem:[#allocation2 + $0x130] sm:$0xff] %v759_v61  ;;  %v418_v63 = vld [vmem:[#allocation2 + $0x190] sm:$0xff] }
 0x140   : > { %792 = vst [vmem:[#allocation2 + $0x38] sm:$0xff] %v728_v0  ;;  %824 = vst [vmem:[#allocation2 + $0x138] sm:$0xff] %v760_v1  ;;  %v554_v6 = vpop.f32.mrb[8].mxu0  ;;  %v650_v7 = vpop.f32.mrb[8].mxu1  ;;  %v387_v0 = vld [vmem:[#allocation2 + $0x98] sm:$0xff] }
 0x141   : > { %v729_v9 = vadd.f32 %v554_v6, %v376_v2  ;;  %v761_v10 = vadd.f32 %v650_v7, %v408_v3  ;;  %v556_v11 = vpop.f32.mrb[9].mxu0  ;;  %v652_v12 = vpop.f32.mrb[9].mxu1  ;;  %v419_v1 = vld [vmem:[#allocation2 + $0x198] sm:$0xff] }
 0x142   : > { %v730_v13 = vadd.f32 %v556_v11, %v377_v4  ;;  %v762_v14 = vadd.f32 %v652_v12, %v409_v5  ;;  %v388_v11 = vld [vmem:[#allocation2 + $0xa0] sm:$0xff] }
 0x143   : > { %793 = vst [vmem:[#allocation2 + $0x40] sm:$0xff] %v729_v9  ;;  %825 = vst [vmem:[#allocation2 + $0x140] sm:$0xff] %v761_v10  ;;  %v420_v12 = vld [vmem:[#allocation2 + $0x1a0] sm:$0xff] }
 0x144   : > { %794 = vst [vmem:[#allocation2 + $0x48] sm:$0xff] %v730_v13  ;;  %826 = vst [vmem:[#allocation2 + $0x148] sm:$0xff] %v762_v14  ;;  %v560_v19 = vpop.f32.mrb[10].mxu0  ;;  %v656_v20 = vpop.f32.mrb[10].mxu1  ;;  %v389_v13 = vld [vmem:[#allocation2 + $0xa8] sm:$0xff] }
 0x145   : > { %v731_v21 = vadd.f32 %v560_v19, %v378_v15  ;;  %v763_v22 = vadd.f32 %v656_v20, %v410_v16  ;;  %v562_v23 = vpop.f32.mrb[11].mxu0  ;;  %v658_v24 = vpop.f32.mrb[11].mxu1  ;;  %v421_v14 = vld [vmem:[#allocation2 + $0x1a8] sm:$0xff] }
 0x146   : > { %v732_v25 = vadd.f32 %v562_v23, %v379_v17  ;;  %v764_v26 = vadd.f32 %v658_v24, %v411_v18  ;;  %v390_v23 = vld [vmem:[#allocation2 + $0xb0] sm:$0xff] }
 0x147   : > { %795 = vst [vmem:[#allocation2 + $0x50] sm:$0xff] %v731_v21  ;;  %827 = vst [vmem:[#allocation2 + $0x150] sm:$0xff] %v763_v22  ;;  %v422_v24 = vld [vmem:[#allocation2 + $0x1b0] sm:$0xff] }
 0x148   : > { %796 = vst [vmem:[#allocation2 + $0x58] sm:$0xff] %v732_v25  ;;  %828 = vst [vmem:[#allocation2 + $0x158] sm:$0xff] %v764_v26  ;;  %v566_v31 = vpop.f32.mrb[12].mxu0  ;;  %v662_v32 = vpop.f32.mrb[12].mxu1  ;;  %v391_v25 = vld [vmem:[#allocation2 + $0xb8] sm:$0xff] }
 0x149   : > { %v733_v8 = vadd.f32 %v566_v31, %v380_v27  ;;  %v765_v33 = vadd.f32 %v662_v32, %v412_v28  ;;  %v568_v34 = vpop.f32.mrb[13].mxu0  ;;  %v664_v35 = vpop.f32.mrb[13].mxu1  ;;  %v423_v26 = vld [vmem:[#allocation2 + $0x1b8] sm:$0xff] }
 0x14a   : > { %v734_v36 = vadd.f32 %v568_v34, %v381_v29  ;;  %v766_v37 = vadd.f32 %v664_v35, %v413_v30  ;;  %v392_v34 = vld [vmem:[#allocation2 + $0xc0] sm:$0xff] }
 0x14b   : > { %797 = vst [vmem:[#allocation2 + $0x60] sm:$0xff] %v733_v8  ;;  %829 = vst [vmem:[#allocation2 + $0x160] sm:$0xff] %v765_v33  ;;  %v424_v35 = vld [vmem:[#allocation2 + $0x1c0] sm:$0xff] }
 0x14c   : > { %798 = vst [vmem:[#allocation2 + $0x68] sm:$0xff] %v734_v36  ;;  %830 = vst [vmem:[#allocation2 + $0x168] sm:$0xff] %v766_v37  ;;  %v572_v42 = vpop.f32.mrb[14].mxu0  ;;  %v668_v43 = vpop.f32.mrb[14].mxu1  ;;  %v393_v36 = vld [vmem:[#allocation2 + $0xc8] sm:$0xff] }
 0x14d   : > { %v735_v44 = vadd.f32 %v572_v42, %v382_v38  ;;  %v767_v45 = vadd.f32 %v668_v43, %v414_v39  ;;  %v574_v46 = vpop.f32.mrb[15].mxu0  ;;  %v670_v47 = vpop.f32.mrb[15].mxu1  ;;  %v425_v37 = vld [vmem:[#allocation2 + $0x1c8] sm:$0xff] }
 0x14e   : > { %v736_v48 = vadd.f32 %v574_v46, %v383_v40  ;;  %v768_v49 = vadd.f32 %v670_v47, %v415_v41  ;;  %v394_v46 = vld [vmem:[#allocation2 + $0xd0] sm:$0xff] }
 0x14f   : > { %799 = vst [vmem:[#allocation2 + $0x70] sm:$0xff] %v735_v44  ;;  %831 = vst [vmem:[#allocation2 + $0x170] sm:$0xff] %v767_v45  ;;  %v426_v47 = vld [vmem:[#allocation2 + $0x1d0] sm:$0xff] }
 0x150   : > { %800 = vst [vmem:[#allocation2 + $0x78] sm:$0xff] %v736_v48  ;;  %832 = vst [vmem:[#allocation2 + $0x178] sm:$0xff] %v768_v49  ;;  %v578_v54 = vpop.f32.mrb[16].mxu0  ;;  %v674_v55 = vpop.f32.mrb[16].mxu1  ;;  %v395_v48 = vld [vmem:[#allocation2 + $0xd8] sm:$0xff] }
 0x151   : > { %v737_v56 = vadd.f32 %v578_v54, %v384_v50  ;;  %v769_v57 = vadd.f32 %v674_v55, %v416_v51  ;;  %v580_v58 = vpop.f32.mrb[17].mxu0  ;;  %v676_v59 = vpop.f32.mrb[17].mxu1  ;;  %v427_v49 = vld [vmem:[#allocation2 + $0x1d8] sm:$0xff] }
 0x152   : > { %v738_v60 = vadd.f32 %v580_v58, %v385_v52  ;;  %v770_v61 = vadd.f32 %v676_v59, %v417_v53  ;;  %v396_v58 = vld [vmem:[#allocation2 + $0xe0] sm:$0xff] }
 0x153   : > { %801 = vst [vmem:[#allocation2 + $0x80] sm:$0xff] %v737_v56  ;;  %833 = vst [vmem:[#allocation2 + $0x180] sm:$0xff] %v769_v57  ;;  %v428_v59 = vld [vmem:[#allocation2 + $0x1e0] sm:$0xff] }
 0x154   : > { %802 = vst [vmem:[#allocation2 + $0x88] sm:$0xff] %v738_v60  ;;  %834 = vst [vmem:[#allocation2 + $0x188] sm:$0xff] %v770_v61  ;;  %v584_v2 = vpop.f32.mrb[18].mxu0  ;;  %v680_v3 = vpop.f32.mrb[18].mxu1  ;;  %v397_v60 = vld [vmem:[#allocation2 + $0xe8] sm:$0xff] }
 0x155   : > { %v739_v4 = vadd.f32 %v584_v2, %v386_v62  ;;  %v771_v5 = vadd.f32 %v680_v3, %v418_v63  ;;  %v586_v6 = vpop.f32.mrb[19].mxu0  ;;  %v682_v7 = vpop.f32.mrb[19].mxu1  ;;  %v429_v61 = vld [vmem:[#allocation2 + $0x1e8] sm:$0xff] }
 0x156   : > { %v740_v9 = vadd.f32 %v586_v6, %v387_v0  ;;  %v772_v10 = vadd.f32 %v682_v7, %v419_v1  ;;  %v398_v6 = vld [vmem:[#allocation2 + $0xf0] sm:$0xff] }
 0x157   : > { %803 = vst [vmem:[#allocation2 + $0x90] sm:$0xff] %v739_v4  ;;  %835 = vst [vmem:[#allocation2 + $0x190] sm:$0xff] %v771_v5  ;;  %v430_v7 = vld [vmem:[#allocation2 + $0x1f0] sm:$0xff] }
 0x158   : > { %804 = vst [vmem:[#allocation2 + $0x98] sm:$0xff] %v740_v9  ;;  %836 = vst [vmem:[#allocation2 + $0x198] sm:$0xff] %v772_v10  ;;  %v590_v15 = vpop.f32.mrb[20].mxu0  ;;  %v686_v16 = vpop.f32.mrb[20].mxu1  ;;  %v399_v9 = vld [vmem:[#allocation2 + $0xf8] sm:$0xff] }
 0x159   : > { %v741_v17 = vadd.f32 %v590_v15, %v388_v11  ;;  %v773_v18 = vadd.f32 %v686_v16, %v420_v12  ;;  %v592_v19 = vpop.f32.mrb[21].mxu0  ;;  %v688_v20 = vpop.f32.mrb[21].mxu1  ;;  %v431_v10 = vld [vmem:[#allocation2 + $0x1f8] sm:$0xff] }
 0x15a   : > { %v742_v21 = vadd.f32 %v592_v19, %v389_v13  ;;  %v774_v22 = vadd.f32 %v688_v20, %v421_v14  ;;  %v919_v19 = vlaneseq (!%p1203_p2)  ;;  %v917_v20 = vld [vmem:[%s1907_s2] sm:$0x3] (!%p1203_p2) }
 0x15b   : > { %805 = vst [vmem:[#allocation2 + $0xa0] sm:$0xff] %v741_v17  ;;  %837 = vst [vmem:[#allocation2 + $0x1a0] sm:$0xff] %v773_v18 }
 0x15c   : > { %806 = vst [vmem:[#allocation2 + $0xa8] sm:$0xff] %v742_v21  ;;  %838 = vst [vmem:[#allocation2 + $0x1a8] sm:$0xff] %v774_v22  ;;  %v596_v27 = vpop.f32.mrb[22].mxu0  ;;  %v692_v28 = vpop.f32.mrb[22].mxu1  ;;  %v920_v21 = vshrl.u32 (!%p1203_p2), %v919_v19, 7  ;;  %v853_v22 = vld [vmem:[#allocation2] sm:$0xff] (!%p1203_p2) }
 0x15d   : > { %v743_v29 = vadd.f32 %v596_v27, %v390_v23  ;;  %v775_v30 = vadd.f32 %v692_v28, %v422_v24  ;;  %v598_v31 = vpop.f32.mrb[23].mxu0  ;;  %v694_v32 = vpop.f32.mrb[23].mxu1  ;;  %v854_v23 = vld [vmem:[#allocation2 + $0x8] sm:$0xff] (!%p1203_p2)  ;;  %v855_v24 = vld [vmem:[#allocation2 + $0x10] sm:$0xff] (!%p1203_p2)  ;;  %v857_v28 = vld [vmem:[#allocation2 + $0x20] sm:$0xff] (!%p1203_p2) }
 0x15e   : > { %v744_v8 = vadd.f32 %v598_v31, %v391_v25  ;;  %v776_v33 = vadd.f32 %v694_v32, %v423_v26  ;;  %v856_v25 = vld [vmem:[#allocation2 + $0x18] sm:$0xff] (!%p1203_p2)  ;;  %v921_v26 = vsub.s32 (!%p1203_p2), 0, %v920_v21  ;;  %v925_v27 = vsub.s32 (!%p1203_p2), 1, %v920_v21  ;;  %v861_v32 = vld [vmem:[#allocation2 + $0x40] sm:$0xff] (!%p1203_p2)  ;;  %v890_v19 = vld [vmem:[#allocation2 + $0x128] sm:$0xff] (!%p1203_p2) }
 0x15f   : > { %807 = vst [vmem:[#allocation2 + $0xb0] sm:$0xff] %v743_v29  ;;  %839 = vst [vmem:[#allocation2 + $0x1b0] sm:$0xff] %v775_v30  ;;  %v858_v29 = vld [vmem:[#allocation2 + $0x28] sm:$0xff] (!%p1203_p2)  ;;  %v859_v30 = vld [vmem:[#allocation2 + $0x30] sm:$0xff] (!%p1203_p2) }
 0x160   : > { %808 = vst [vmem:[#allocation2 + $0xb8] sm:$0xff] %v744_v8  ;;  %840 = vst [vmem:[#allocation2 + $0x1b8] sm:$0xff] %v776_v33  ;;  %v602_v38 = vpop.f32.mrb[24].mxu0  ;;  %v698_v39 = vpop.f32.mrb[24].mxu1  ;;  %v860_v31 = vld [vmem:[#allocation2 + $0x38] sm:$0xff] (!%p1203_p2)  ;;  %v862_v8 = vld [vmem:[#allocation2 + $0x48] sm:$0xff] (!%p1203_p2) }
 0x161   : > { %v745_v40 = vadd.f32 %v602_v38, %v392_v34  ;;  %v777_v41 = vadd.f32 %v698_v39, %v424_v35  ;;  %v604_v42 = vpop.f32.mrb[25].mxu0  ;;  %v700_v43 = vpop.f32.mrb[25].mxu1  ;;  %v863_v33 = vld [vmem:[#allocation2 + $0x50] sm:$0xff] (!%p1203_p2)  ;;  %v864_v34 = vld [vmem:[#allocation2 + $0x58] sm:$0xff] (!%p1203_p2)  ;;  %v1710_v35 = vrot.slane (!%p1203_p2), %v917_v20, %v921_v26  ;;  %v866_v38 = vld [vmem:[#allocation2 + $0x68] sm:$0xff] (!%p1203_p2) }
 0x162   : > { %v746_v44 = vadd.f32 %v604_v42, %v393_v36  ;;  %v778_v45 = vadd.f32 %v700_v43, %v425_v37  ;;  %v1712_v36 = vrot.slane (!%p1203_p2), %v917_v20, %v925_v27  ;;  %v865_v37 = vld [vmem:[#allocation2 + $0x60] sm:$0xff] (!%p1203_p2)  ;;  %v867_v39 = vld [vmem:[#allocation2 + $0x70] sm:$0xff] (!%p1203_p2)  ;;  %v870_v42 = vld [vmem:[#allocation2 + $0x88] sm:$0xff] (!%p1203_p2) }
 0x163   : > { %809 = vst [vmem:[#allocation2 + $0xc0] sm:$0xff] %v745_v40  ;;  %841 = vst [vmem:[#allocation2 + $0x1c0] sm:$0xff] %v777_v41  ;;  %v868_v40 = vld [vmem:[#allocation2 + $0x78] sm:$0xff] (!%p1203_p2)  ;;  %v869_v41 = vld [vmem:[#allocation2 + $0x80] sm:$0xff] (!%p1203_p2) }
 0x164   : > { %810 = vst [vmem:[#allocation2 + $0xc8] sm:$0xff] %v746_v44  ;;  %842 = vst [vmem:[#allocation2 + $0x1c8] sm:$0xff] %v778_v45  ;;  %v608_v50 = vpop.f32.mrb[26].mxu0  ;;  %v704_v51 = vpop.f32.mrb[26].mxu1  ;;  %v871_v43 = vld [vmem:[#allocation2 + $0x90] sm:$0xff] (!%p1203_p2)  ;;  %v872_v44 = vld [vmem:[#allocation2 + $0x98] sm:$0xff] (!%p1203_p2)  ;;  %v929_v45 = vadd.f32 (!%p1203_p2), %v1710_v35, %v853_v22 }
 0x165   : > { %v747_v52 = vadd.f32 %v608_v50, %v394_v46  ;;  %v779_v53 = vadd.f32 %v704_v51, %v426_v47  ;;  %v610_v54 = vpop.f32.mrb[27].mxu0  ;;  %v706_v55 = vpop.f32.mrb[27].mxu1  ;;  %v930_v46 = vadd.f32 (!%p1203_p2), %v1712_v36, %v854_v23  ;;  %v931_v47 = vadd.f32 (!%p1203_p2), %v1710_v35, %v855_v24  ;;  %v874_v50 = vld [vmem:[#allocation2 + $0xa8] sm:$0xff] (!%p1203_p2)  ;;  %v891_v24 = vld [vmem:[#allocation2 + $0x130] sm:$0xff] (!%p1203_p2)  ;;  %v893_v26 = vld [vmem:[#allocation2 + $0x140] sm:$0xff] (!%p1203_p2) }
 0x166   : > { %v748_v56 = vadd.f32 %v610_v54, %v395_v48  ;;  %v780_v57 = vadd.f32 %v706_v55, %v427_v49  ;;  %v932_v48 = vadd.f32 (!%p1203_p2), %v1712_v36, %v856_v25  ;;  %v873_v49 = vld [vmem:[#allocation2 + $0xa0] sm:$0xff] (!%p1203_p2)  ;;  %v875_v51 = vld [vmem:[#allocation2 + $0xb0] sm:$0xff] (!%p1203_p2)  ;;  %v934_v54 = vadd.f32 (!%p1203_p2), %v1712_v36, %v858_v29  ;;  %993 = vst [vmem:[%s1543_s23] sm:$0xff] (!%p1203_p2), %v929_v45  ;;  %v892_v25 = vld [vmem:[#allocation2 + $0x138] sm:$0xff] (!%p1203_p2) }
 0x167   : > { %811 = vst [vmem:[#allocation2 + $0xd0] sm:$0xff] %v747_v52  ;;  %843 = vst [vmem:[#allocation2 + $0x1d0] sm:$0xff] %v779_v53  ;;  %v876_v52 = vld [vmem:[#allocation2 + $0xb8] sm:$0xff] (!%p1203_p2)  ;;  %v933_v53 = vadd.f32 (!%p1203_p2), %v1710_v35, %v857_v28  ;;  %v935_v55 = vadd.f32 (!%p1203_p2), %v1710_v35, %v859_v30  ;;  %v949_v20 = vadd.f32 (!%p1203_p2), %v1710_v35, %v873_v49 }
 0x168   : > { %812 = vst [vmem:[#allocation2 + $0xd8] sm:$0xff] %v748_v56  ;;  %844 = vst [vmem:[#allocation2 + $0x1d8] sm:$0xff] %v780_v57  ;;  %v614_v62 = vpop.f32.mrb[28].mxu0  ;;  %v710_v63 = vpop.f32.mrb[28].mxu1  ;;  %v936_v56 = vadd.f32 (!%p1203_p2), %v1712_v36, %v860_v31  ;;  %v950_v21 = vadd.f32 (!%p1203_p2), %v1712_v36, %v874_v50  ;;  %v951_v22 = vadd.f32 (!%p1203_p2), %v1710_v35, %v875_v51  ;;  %v894_v31 = vld [vmem:[#allocation2 + $0x148] sm:$0xff] (!%p1203_p2) }
 0x169   : > { %v749_v0 = vadd.f32 %v614_v62, %v396_v58  ;;  %v781_v1 = vadd.f32 %v710_v63, %v428_v59  ;;  %v616_v2 = vpop.f32.mrb[29].mxu0  ;;  %v712_v3 = vpop.f32.mrb[29].mxu1  ;;  %994 = vst [vmem:[%s1543_s23 + $0x8] sm:$0xff] (!%p1203_p2), %v930_v46  ;;  %995 = vst [vmem:[%s1543_s23 + $0x10] sm:$0xff] (!%p1203_p2), %v931_v47  ;;  %v938_v62 = vadd.f32 (!%p1203_p2), %v1712_v36, %v862_v8  ;;  %v896_v8 = vld [vmem:[#allocation2 + $0x158] sm:$0xff] (!%p1203_p2)  ;;  %v901_v47 = vld [vmem:[#allocation2 + $0x180] sm:$0xff] (!%p1203_p2) }
 0x16a   : > { %v750_v4 = vadd.f32 %v616_v2, %v397_v60  ;;  %v782_v5 = vadd.f32 %v712_v3, %v429_v61  ;;  %852 = sbr.rel (%p1203_p2) target bundleno = 397 (0x18d), region = 40  ;;  %v877_v57 = vld [vmem:[#allocation2 + $0xc0] sm:$0xff] (!%p1203_p2)  ;;  %996 = vst [vmem:[%s1543_s23 + $0x18] sm:$0xff] (!%p1203_p2), %v932_v48  ;;  %v937_v61 = vadd.f32 (!%p1203_p2), %v1710_v35, %v861_v32  ;;  %v939_v63 = vadd.f32 (!%p1203_p2), %v1710_v35, %v863_v33  ;;  %v895_v32 = vld [vmem:[#allocation2 + $0x150] sm:$0xff] (!%p1203_p2)  ;;  %v900_v46 = vld [vmem:[#allocation2 + $0x178] sm:$0xff] (!%p1203_p2) }
 0x16b   : > { %813 = vst [vmem:[#allocation2 + $0xe0] sm:$0xff] %v749_v0  ;;  %845 = vst [vmem:[#allocation2 + $0x1e0] sm:$0xff] %v781_v1  ;;  %v878_v58 = vld [vmem:[#allocation2 + $0xc8] sm:$0xff] (!%p1203_p2)  ;;  %v940_v0 = vadd.f32 (!%p1203_p2), %v1712_v36, %v864_v34  ;;  %v952_v23 = vadd.f32 (!%p1203_p2), %v1712_v36, %v876_v52  ;;  %v953_v27 = vadd.f32 (!%p1203_p2), %v1710_v35, %v877_v57 }
 0x16c   : > { %814 = vst [vmem:[#allocation2 + $0xe8] sm:$0xff] %v750_v4  ;;  %846 = vst [vmem:[#allocation2 + $0x1e8] sm:$0xff] %v782_v5  ;;  %v620_v11 = vpop.f32.mrb[30].mxu0  ;;  %v716_v12 = vpop.f32.mrb[30].mxu1  ;;  %v941_v5 = vadd.f32 (!%p1203_p2), %v1710_v35, %v865_v37  ;;  %v954_v28 = vadd.f32 (!%p1203_p2), %v1712_v36, %v878_v58  ;;  %v902_v48 = vld [vmem:[#allocation2 + $0x188] sm:$0xff] (!%p1203_p2)  ;;  %v966_v50 = vadd.f32 (!%p1203_p2), %v1712_v36, %v890_v19 }
 0x16d   : > { %v751_v13 = vadd.f32 %v620_v11, %v398_v6  ;;  %v783_v14 = vadd.f32 %v716_v12, %v430_v7  ;;  %v622_v15 = vpop.f32.mrb[31].mxu0  ;;  %v718_v16 = vpop.f32.mrb[31].mxu1  ;;  %997 = vst [vmem:[%s1543_s23 + $0x20] sm:$0xff] (!%p1203_p2), %v933_v53  ;;  %998 = vst [vmem:[%s1543_s23 + $0x28] sm:$0xff] (!%p1203_p2), %v934_v54  ;;  %v942_v6 = vadd.f32 (!%p1203_p2), %v1712_v36, %v866_v38  ;;  %v886_v11 = vld [vmem:[#allocation2 + $0x108] sm:$0xff] (!%p1203_p2)  ;;  %v887_v12 = vld [vmem:[#allocation2 + $0x110] sm:$0xff] (!%p1203_p2) }
 0x16e   : > { %v752_v17 = vadd.f32 %v622_v15, %v399_v9  ;;  %v784_v18 = vadd.f32 %v718_v16, %v431_v10  ;;  %v879_v59 = vld [vmem:[#allocation2 + $0xd0] sm:$0xff] (!%p1203_p2)  ;;  %999 = vst [vmem:[%s1543_s23 + $0x30] sm:$0xff] (!%p1203_p2), %v935_v55  ;;  %1000 = vst [vmem:[%s1543_s23 + $0x38] sm:$0xff] (!%p1203_p2), %v936_v56  ;;  %v943_v7 = vadd.f32 (!%p1203_p2), %v1710_v35, %v867_v39  ;;  %v885_v10 = vld [vmem:[#allocation2 + $0x100] sm:$0xff] (!%p1203_p2) }
 0x16f   : > { %815 = vst [vmem:[#allocation2 + $0xf0] sm:$0xff] %v751_v13  ;;  %847 = vst [vmem:[#allocation2 + $0x1f0] sm:$0xff] %v783_v14  ;;  %v880_v60 = vld [vmem:[#allocation2 + $0xd8] sm:$0xff] (!%p1203_p2)  ;;  %v944_v9 = vadd.f32 (!%p1203_p2), %v1712_v36, %v868_v40  ;;  %v945_v13 = vadd.f32 (!%p1203_p2), %v1710_v35, %v869_v41  ;;  %v946_v14 = vadd.f32 (!%p1203_p2), %v1712_v36, %v870_v42  ;;  %v897_v39 = vld [vmem:[#allocation2 + $0x160] sm:$0xff] (!%p1203_p2) }
 0x170   : > { %816 = vst [vmem:[#allocation2 + $0xf8] sm:$0xff] %v752_v17  ;;  %848 = vst [vmem:[#allocation2 + $0x1f8] sm:$0xff] %v784_v18  ;;  %v947_v15 = vadd.f32 (!%p1203_p2), %v1710_v35, %v871_v43  ;;  %v948_v16 = vadd.f32 (!%p1203_p2), %v1712_v36, %v872_v44  ;;  %v888_v17 = vld [vmem:[#allocation2 + $0x118] sm:$0xff] (!%p1203_p2)  ;;  %v889_v18 = vld [vmem:[#allocation2 + $0x120] sm:$0xff] (!%p1203_p2)  ;;  %v955_v29 = vadd.f32 (!%p1203_p2), %v1710_v35, %v879_v59 }
 0x171   : > { %1001 = vst [vmem:[%s1543_s23 + $0x40] sm:$0xff] %v937_v61  ;;  %1002 = vst [vmem:[%s1543_s23 + $0x48] sm:$0xff] %v938_v62  ;;  %v956_v30 = vadd.f32 %v1712_v36, %v880_v60  ;;  %v898_v40 = vld [vmem:[#allocation2 + $0x168] sm:$0xff]  ;;  %v899_v41 = vld [vmem:[#allocation2 + $0x170] sm:$0xff]  ;;  %v961_v42 = vadd.f32 %v1710_v35, %v885_v10  ;;  %v962_v43 = vadd.f32 %v1712_v36, %v886_v11 }
 0x172   : > { %v881_v1 = vld [vmem:[#allocation2 + $0xe0] sm:$0xff]  ;;  %1003 = vst [vmem:[%s1543_s23 + $0x50] sm:$0xff] %v939_v63  ;;  %1004 = vst [vmem:[%s1543_s23 + $0x58] sm:$0xff] %v940_v0  ;;  %v963_v44 = vadd.f32 %v1710_v35, %v887_v12  ;;  %v964_v45 = vadd.f32 %v1712_v36, %v888_v17  ;;  %v965_v49 = vadd.f32 %v1710_v35, %v889_v18  ;;  %v903_v53 = vld [vmem:[#allocation2 + $0x190] sm:$0xff] }
 0x173   : > { %v882_v2 = vld [vmem:[#allocation2 + $0xe8] sm:$0xff]  ;;  %1005 = vst [vmem:[%s1543_s23 + $0x60] sm:$0xff] %v941_v5  ;;  %1006 = vst [vmem:[%s1543_s23 + $0x68] sm:$0xff] %v942_v6  ;;  %v957_v33 = vadd.f32 %v1710_v35, %v881_v1  ;;  %v967_v51 = vadd.f32 %v1710_v35, %v891_v24  ;;  %v968_v52 = vadd.f32 %v1712_v36, %v892_v25  ;;  %v904_v54 = vld [vmem:[#allocation2 + $0x198] sm:$0xff] }
 0x174   : > { %1007 = vst [vmem:[%s1543_s23 + $0x70] sm:$0xff] %v943_v7  ;;  %1008 = vst [vmem:[%s1543_s23 + $0x78] sm:$0xff] %v944_v9  ;;  %v958_v34 = vadd.f32 %v1712_v36, %v882_v2  ;;  %v905_v55 = vld [vmem:[#allocation2 + $0x1a0] sm:$0xff]  ;;  %v969_v56 = vadd.f32 %v1710_v35, %v893_v26  ;;  %v970_v57 = vadd.f32 %v1712_v36, %v894_v31  ;;  %v906_v60 = vld [vmem:[#allocation2 + $0x1a8] sm:$0xff] }
 0x175   : > { %1009 = vst [vmem:[%s1543_s23 + $0x80] sm:$0xff] %v945_v13  ;;  %1010 = vst [vmem:[%s1543_s23 + $0x88] sm:$0xff] %v946_v14  ;;  %v971_v58 = vadd.f32 %v1710_v35, %v895_v32  ;;  %v972_v59 = vadd.f32 %v1712_v36, %v896_v8  ;;  %v907_v61 = vld [vmem:[#allocation2 + $0x1b0] sm:$0xff]  ;;  %v908_v62 = vld [vmem:[#allocation2 + $0x1b8] sm:$0xff]  ;;  %v973_v63 = vadd.f32 %v1710_v35, %v897_v39 }
 0x176   : > { %v883_v3 = vld [vmem:[#allocation2 + $0xf0] sm:$0xff]  ;;  %1011 = vst [vmem:[%s1543_s23 + $0x90] sm:$0xff] %v947_v15  ;;  %1012 = vst [vmem:[%s1543_s23 + $0x98] sm:$0xff] %v948_v16  ;;  %v974_v0 = vadd.f32 %v1712_v36, %v898_v40  ;;  %v975_v1 = vadd.f32 %v1710_v35, %v899_v41  ;;  %v976_v2 = vadd.f32 %v1712_v36, %v900_v46  ;;  %v912_v11 = vld [vmem:[#allocation2 + $0x1d8] sm:$0xff] }
 0x177   : > { %v884_v4 = vld [vmem:[#allocation2 + $0xf8] sm:$0xff]  ;;  %1013 = vst [vmem:[%s1543_s23 + $0xa0] sm:$0xff] %v949_v20  ;;  %1014 = vst [vmem:[%s1543_s23 + $0xa8] sm:$0xff] %v950_v21  ;;  %v959_v37 = vadd.f32 %v1710_v35, %v883_v3  ;;  %v909_v3 = vld [vmem:[#allocation2 + $0x1c0] sm:$0xff]  ;;  %v977_v6 = vadd.f32 %v1710_v35, %v901_v47  ;;  %v978_v7 = vadd.f32 %v1712_v36, %v902_v48 }
 0x178   : > { %1015 = vst [vmem:[%s1543_s23 + $0xb0] sm:$0xff] %v951_v22  ;;  %1016 = vst [vmem:[%s1543_s23 + $0xb8] sm:$0xff] %v952_v23  ;;  %v960_v38 = vadd.f32 %v1712_v36, %v884_v4  ;;  %v910_v4 = vld [vmem:[#allocation2 + $0x1c8] sm:$0xff]  ;;  %v911_v5 = vld [vmem:[#allocation2 + $0x1d0] sm:$0xff]  ;;  %v979_v9 = vadd.f32 %v1710_v35, %v903_v53  ;;  %v980_v10 = vadd.f32 %v1712_v36, %v904_v54 }
 0x179   : > { %1017 = vst [vmem:[%s1543_s23 + $0xc0] sm:$0xff] %v953_v27  ;;  %1018 = vst [vmem:[%s1543_s23 + $0xc8] sm:$0xff] %v954_v28  ;;  %v913_v12 = vld [vmem:[#allocation2 + $0x1e0] sm:$0xff]  ;;  %v914_v13 = vld [vmem:[#allocation2 + $0x1e8] sm:$0xff]  ;;  %v981_v14 = vadd.f32 %v1710_v35, %v905_v55  ;;  %v982_v15 = vadd.f32 %v1712_v36, %v906_v60  ;;  %v983_v16 = vadd.f32 %v1710_v35, %v907_v61 }
 0x17a   : > { %1019 = vst [vmem:[%s1543_s23 + $0xd0] sm:$0xff] %v955_v29  ;;  %1020 = vst [vmem:[%s1543_s23 + $0xd8] sm:$0xff] %v956_v30  ;;  %v984_v17 = vadd.f32 %v1712_v36, %v908_v62  ;;  %v915_v18 = vld [vmem:[#allocation2 + $0x1f0] sm:$0xff]  ;;  %v916_v19 = vld [vmem:[#allocation2 + $0x1f8] sm:$0xff]  ;;  %v985_v20 = vadd.f32 %v1710_v35, %v909_v3  ;;  %v986_v21 = vadd.f32 %v1712_v36, %v910_v4 }
 0x17b   : > { %1021 = vst [vmem:[%s1543_s23 + $0xe0] sm:$0xff] %v957_v33  ;;  %1022 = vst [vmem:[%s1543_s23 + $0xe8] sm:$0xff] %v958_v34  ;;  %v987_v22 = vadd.f32 %v1710_v35, %v911_v5  ;;  %v988_v23 = vadd.f32 %v1712_v36, %v912_v11  ;;  %v989_v24 = vadd.f32 %v1710_v35, %v913_v12 }
 0x17c   : > { %1023 = vst [vmem:[%s1543_s23 + $0xf0] sm:$0xff] %v959_v37  ;;  %1024 = vst [vmem:[%s1543_s23 + $0xf8] sm:$0xff] %v960_v38  ;;  %v990_v25 = vadd.f32 %v1712_v36, %v914_v13  ;;  %v991_v26 = vadd.f32 %v1710_v35, %v915_v18  ;;  %v992_v27 = vadd.f32 %v1712_v36, %v916_v19 }
 0x17d   : > { %1025 = vst [vmem:[%s1543_s23 + $0x100] sm:$0xff] %v961_v42  ;;  %1026 = vst [vmem:[%s1543_s23 + $0x108] sm:$0xff] %v962_v43 }
 0x17e   : > { %1027 = vst [vmem:[%s1543_s23 + $0x110] sm:$0xff] %v963_v44  ;;  %1028 = vst [vmem:[%s1543_s23 + $0x118] sm:$0xff] %v964_v45 }
 0x17f   : > { %1029 = vst [vmem:[%s1543_s23 + $0x120] sm:$0xff] %v965_v49  ;;  %1030 = vst [vmem:[%s1543_s23 + $0x128] sm:$0xff] %v966_v50 }
 0x180   : > { %1031 = vst [vmem:[%s1543_s23 + $0x130] sm:$0xff] %v967_v51  ;;  %1032 = vst [vmem:[%s1543_s23 + $0x138] sm:$0xff] %v968_v52 }
 0x181   : > { %1033 = vst [vmem:[%s1543_s23 + $0x140] sm:$0xff] %v969_v56  ;;  %1034 = vst [vmem:[%s1543_s23 + $0x148] sm:$0xff] %v970_v57 }
 0x182   : > { %1035 = vst [vmem:[%s1543_s23 + $0x150] sm:$0xff] %v971_v58  ;;  %1036 = vst [vmem:[%s1543_s23 + $0x158] sm:$0xff] %v972_v59 }
 0x183   : > { %1037 = vst [vmem:[%s1543_s23 + $0x160] sm:$0xff] %v973_v63  ;;  %1038 = vst [vmem:[%s1543_s23 + $0x168] sm:$0xff] %v974_v0 }
 0x184   : > { %1039 = vst [vmem:[%s1543_s23 + $0x170] sm:$0xff] %v975_v1  ;;  %1040 = vst [vmem:[%s1543_s23 + $0x178] sm:$0xff] %v976_v2 }
 0x185   : > { %1041 = vst [vmem:[%s1543_s23 + $0x180] sm:$0xff] %v977_v6  ;;  %1042 = vst [vmem:[%s1543_s23 + $0x188] sm:$0xff] %v978_v7 }
 0x186   : > { %1043 = vst [vmem:[%s1543_s23 + $0x190] sm:$0xff] %v979_v9  ;;  %1044 = vst [vmem:[%s1543_s23 + $0x198] sm:$0xff] %v980_v10 }
 0x187   : > { %1045 = vst [vmem:[%s1543_s23 + $0x1a0] sm:$0xff] %v981_v14  ;;  %1046 = vst [vmem:[%s1543_s23 + $0x1a8] sm:$0xff] %v982_v15 }
 0x188   : > { %1047 = vst [vmem:[%s1543_s23 + $0x1b0] sm:$0xff] %v983_v16  ;;  %1048 = vst [vmem:[%s1543_s23 + $0x1b8] sm:$0xff] %v984_v17 }
 0x189   : > { %1049 = vst [vmem:[%s1543_s23 + $0x1c0] sm:$0xff] %v985_v20  ;;  %1050 = vst [vmem:[%s1543_s23 + $0x1c8] sm:$0xff] %v986_v21 }
 0x18a   : > { %1051 = vst [vmem:[%s1543_s23 + $0x1d0] sm:$0xff] %v987_v22  ;;  %1052 = vst [vmem:[%s1543_s23 + $0x1d8] sm:$0xff] %v988_v23 }
 0x18b   : > { %1053 = vst [vmem:[%s1543_s23 + $0x1e0] sm:$0xff] %v989_v24  ;;  %1054 = vst [vmem:[%s1543_s23 + $0x1e8] sm:$0xff] %v990_v25 }
 0x18c   : > { %1055 = vst [vmem:[%s1543_s23 + $0x1f0] sm:$0xff] %v991_v26  ;;  %1056 = vst [vmem:[%s1543_s23 + $0x1f8] sm:$0xff] %v992_v27 }
 0x18d PF: > { %s1212_s15 = sshll.u32 %s1418_s16, 13  ;;  %s1074_s7 = sshll.u32 %s1543_s23, 4  ;;  %s1849_s7 = int_to_ptr.vmem [resolvable:$true] %s1074_s7 }
 0x18e   : > { %s1846_s6 = scalar_lea.hbm %s1908_s3, %s1212_s15  ;;  %s1914_s8 = sand.u32 1, %s1406_s13  }
 0x18f   : > { %s1853_s9 = scalar_lea.sflag [#allocation4], %s1914_s8  ;;  %s1336_s10 = scalar_lea.vmem %s1849_s7, 8192 }
 0x190   : > { %p1337_p4 = scmp.ne.s32.totalorder %s1849_s7, %s1336_s10  ;;  %s1434_s16 = smov [#allocation3]  }
 0x191   : > { %s1340_s11 = sshll.u32 %s1434_s16, 4  ;;  %s1341_s11 = int_to_ptr.vmem [resolvable:$false] %s1340_s11 }
 0x192   : > { %p1338_p5 = pnand %p1337_p4, %p1506_p3  ;;  %s1342_s20 = scalar_lea.vmem %s1341_s11, 16384 }
 0x193   : > { %p1343_p7 = scmp.lt.s32.totalorder %s1849_s7, %s1341_s11  ;;  %p1344_p8 = scmp.lt.s32.totalorder %s1342_s20, %s1336_s10 }
 0x194   : > { %p1339_p6 = pneg %p1338_p5 }
 0x195   : > { %p1345_p10 = por %p1344_p8, %p1343_p7 }
 0x197   : > { %p1346_p11 = pnand %p1345_p10, %p1339_p6 }
 0x199   : > { %1349 = shalt.err (!%p1346_p11)
}
 0x19a   : > { %s1350_s23 = scalar_lea.hbm %s1846_s6, 8192  ;;  %s1354_s27 = scalar_lea.hbm %s1908_s3, 16384 }
 0x19b   : > { %p1351_p12 = scmp.ne.s32.totalorder %s1846_s6, %s1350_s23  ;;  %p1355_p1 = scmp.lt.u32.totalorder %s1846_s6, %s1908_s3 }
 0x19c   : > { %p1356_p2 = scmp.lt.u32.totalorder %s1354_s27, %s1350_s23  ;;  %p1358_p5 = scmp.lt.u32.totalorder %s1350_s23, %s1846_s6 }
 0x19d   : > { %p1352_p13 = pnand %p1351_p12, %p1506_p3 }
 0x19e   : > { %p1357_p4 = por %p1356_p2, %p1355_p1 }
 0x19f   : > { %p1353_p0 = pneg %p1352_p13 }
 0x1a0   : > { %p1359_p6 = por %p1358_p5, %p1357_p4 }
 0x1a2   : > { %p1360_p7 = pnand %p1359_p6, %p1353_p0 }
 0x1a4   : > { %1363 = shalt.err (!%p1360_p7)
}
 0x1a5   : > { %s1435_s15 = smov 256   ;;  %s1436_s4 = smov 16  }
 0x1a6   : > { %1261 = dma.vmem_to_hbm [thread:$0]  (%p1506_p3), %s1849_s7, 8192, %s1846_s6, %s1853_s9, %s1435_s15, %s1435_s15, %s1436_s4  }
 0x1a7 PF: > { %p1267_p8 = scmp.ge.s32.totalorder %s1430_s19, 2  ;;  %s1089_s5 = sand.u32 1, %s1402_s12  }
 0x1a8   : > { %s1090_s8 = scalar_lea.sflag [#allocation4], %s1089_s5 }
 0x1a9   : > { %p1264_p10 = pnand %p1267_p8, %p1516_p9 }
 0x1ab   : > { %1397 = dma.done.wait (!%p1264_p10), %s1090_s8, 8192  }
 0x1ac   : > { %1399 = vsyncadd (!%p1264_p10), %s1090_s8, 4294959104  ;;  %s16_s19 = sadd.s32 1, %s1430_s19   ;;  %s1915_s24 = sld [smem:[#allocation6_spill]] }
 0x1ad   : > { %p13_p11 = scmp.ge.s32.totalorder %s16_s19, 6   ;;  %s1916_s12 = smov %s1406_s13 }
 0x1ae   : > { %s1917_s13 = smov %s1410_s14  ;;  %s1918_s14 = smov %s1524_s28 }
 0x1af   : > { %s1919_s15 = smov %s1422_s17  ;;  %s1920_s16 = smov %s1426_s18 }
 0x1b0   : > { %s1921_s17 = smov %s1924_s22  ;;  %15 = sbr.rel (!%p13_p11) target bundleno = 5 (0x5), region = 81 }
 0x1b2   : > { %s1922_s18 = smov %s1915_s24 }
 0x1b7   :  { %1095 = vsyncpa [#allocation4], 1 }
 0x1b8   :  { %1097 = vsyncpa [#allocation4 + $0x1], 1 }

// kernel: causal_self_attention.4
= control target key start
LH: loop header
LB: loop body
LE: loop exit
PB: predicated region body
PF: predicated region fallthrough
CT: control target
= control target key end

     0   :  { %s3367_s12 = smov 0   ;;  %s3369_s13 = smov 0   ;;  %s4304_s0 = inlined_call_operand.vmem [shape: f32[6,512,128], index: 0, kind: input, shape index: {}, may-alias: {0,1,2}]   ;;  %s4305_s1 = inlined_call_operand.vmem [shape: f32[6,512,128], index: 1, kind: input, shape index: {}, may-alias: {0,1,2}]   ;;  %s4306_s2 = inlined_call_operand.vmem [shape: f32[6,512,128], index: 2, kind: input, shape index: {}, may-alias: {0,1,2}]   ;;  %s4307_s3 = inlined_call_operand.vmem [shape: f32[2,512,128], index: 3, kind: output, shape index: {}]  }
   0x1   :  { %4308 = sst [smem:[#allocation9_spill]] %s4304_s0  ;;  %s3371_s14 = smov 0  }
   0x2   :  { %s3373_s15 = smov 0   ;;  %s3375_s16 = smov 0  }
   0x3   :  { %s3377_s17 = smov 0   ;;  %s3379_s18 = smov 0  }
   0x4   :  { %s3381_s19 = smov 0   ;;  %s3383_s20 = smov 0  }
   0x5 LB: > { %s28_s21 = sadd.s32 1, %s3324_s16  ;;  %s31_s22 = sadd.s32 1, %s3328_s17  ;;  %s3340_s20 = sphi %s3383_s20, %s13_s20   ;;  %s3336_s19 = sphi %s3381_s19, %s4325_s19   ;;  %s3332_s18 = sphi %s3379_s18, %s4324_s18   ;;  %s3328_s17 = sphi %s3377_s17, %s4323_s17   ;;  %s3324_s16 = sphi %s3375_s16, %s4322_s16   ;;  %s3320_s15 = sphi %s3373_s15, %s4321_s15   ;;  %s3316_s14 = sphi %s3371_s14, %s4320_s14   ;;  %s3312_s13 = sphi %s3369_s13, %s4319_s13   ;;  %s3308_s12 = sphi %s3367_s12, %s4318_s12  }
   0x6   : > { %p29_p0 = scmp.ge.s32.totalorder %s28_s21, 2  ;;  %p2524_p1 = scmp.ge.s32.totalorder %s3340_s20, 1 }
   0x7   : > { %p258_p2 = scmp.lt.s32.totalorder %s3340_s20, 17  ;;  %s35_s23 = sadd.s32 1, %s3332_s18 }
   0x8   : > { %s4327_s21 = smov (%p29_p0, %s28_s21), 0  ;;  %s4329_s22 = smov (!%p29_p0, %s31_s22), %s3328_s17 }
   0x9   : > { %4309 = sst [smem:[#allocation5_spill]] %s4327_s21  ;;  %p33_p3 = scmp.ge.s32.totalorder %s4329_s22, 2 }
   0xa   : > { %p259_p4 = pnand %p2524_p1, %p258_p2  ;;  %s39_s24 = sadd.s32 1, %s3336_s19 }
   0xb   : > { %s4331_s22 = smov (%p33_p3, %s4329_s22), 0  ;;  %s4333_s23 = smov (!%p33_p3, %s35_s23), %s3332_s18 }
   0xc   : > { %4310 = sst [smem:[#allocation6_spill]] %s4331_s22  ;;  %p37_p5 = scmp.ge.s32.totalorder %s4333_s23, 2 }
   0xd   : > { %262 = sbr.rel (%p259_p4) target bundleno = 1893 (0x765), region = 32  ;;  %s2525_s25 = sshll.u32 (!%p259_p4), %s3320_s15, 1 }
   0xe   : > { %s4335_s23 = smov (%p37_p5, %s4333_s23), 0  ;;  %s4337_s24 = smov (!%p37_p5, %s39_s24), %s3336_s19 }
   0xf   : > { %4311 = sst [smem:[#allocation7_spill]] %s4335_s23  ;;  %p41_p6 = scmp.ge.s32.totalorder %s4337_s24, 2 }
  0x10   : > { %p325_p7 = scmp.lt.s32.totalorder (!%p259_p4), %s3316_s14, 5  ;;  %s323_s26 = sadd.s32 (!%p259_p4), %s3312_s13, %s2525_s25 }
  0x11   : > { %s4339_s24 = smov (%p41_p6, %s4337_s24), 0  ;;  %s336_s27 = sadd.s32 (!%p259_p4), 2, %s3316_s14 }
  0x12   : > { %4312 = sst [smem:[#allocation8_spill]] %s4339_s24  ;;  %s2526_s28 = sshll.u32 (!%p259_p4), %s323_s26, 4 }
  0x13   : > { %p338_p8 = scmp.lt.s32.totalorder (!%p259_p4), %s3308_s12, %s3312_s13  ;;  %p327_p9 = scmp.lt.s32.totalorder (!%p259_p4), %s2526_s28, 63 }
  0x14   : > { %s326_s29 = scalar_select %p325_p7, %s3316_s14, 5 }
  0x15   : > { %p342_p10 = scmp.lt.s32.totalorder %s336_s27, 5  ;;  %s356_s4 = sadd.s32 4, %s3316_s14 }
  0x16   : > { %s2527_s30 = sshll.u32 %s326_s29, 6  ;;  %s4341_s28 = smov (!%p327_p9, %s2526_s28), 63 }
  0x17   : > { %s339_s5 = scalar_select %p338_p8, %s3308_s12, %s3312_s13 }
  0x18   : > { %s330_s6 = sadd.s32 %s2527_s30, %s4341_s28  ;;  %p362_p11 = scmp.lt.s32.totalorder %s356_s4, 5 }
  0x19   : > { %s2528_s7 = sshll.u32 %s330_s6, 3  ;;  %s340_s8 = sadd.s32 %s2525_s25, %s339_s5 }
  0x1a   : > { %s4313_s0 = sld [smem:[#allocation9_spill]]  ;;  %s2530_s15 = sshll.u32 %s340_s8, 4 }
  0x1b   : > { %s4343_s27 = smov (!%p342_p10, %s336_s27), 5  ;;  %p344_p12 = scmp.lt.s32.totalorder %s2530_s15, 63 }
  0x1c   : > { %s2531_s26 = sshll.u32 %s4343_s27, 6  ;;  %s4347_s4 = smov (!%p362_p11, %s356_s4), 5 }
  0x1d   : > { %s4345_s15 = smov (!%p344_p12, %s2530_s15), 63  ;;  %p379_p13 = scmp.lt.s32.totalorder %s3316_s14, 1 }
  0x1e   : > { %s347_s29 = sadd.s32 %s2531_s26, %s4345_s15  ;;  %s2535_s23 = sshll.u32 %s4347_s4, 6 }
  0x1f   : > { %s2532_s24 = sshll.u32 %s347_s29, 3  ;;  %s367_s5 = sadd.s32 %s2535_s23, %s4345_s15 }
  0x20   : > { %s3442_s11 = scalar_lea.vmem %s4313_s0, %s2528_s7  ;;  %s3448_s25 = scalar_lea.vmem %s4305_s1, %s2532_s24 }
  0x21   : > { %s2536_s6 = sshll.u32 %s367_s5, 3  ;;  %s4349_s14 = smov (!%p379_p13, %s3316_s14), 1 }
  0x22   : > { %s3453_s8 = scalar_lea.vmem %s4306_s2, %s2536_s6  ;;  %s2539_s27 = sshll.u32 %s4349_s14, 6 }
  0x23   : > { %s384_s10 = sadd.s32 %s2539_s27, %s4341_s28  ;;  %p2541_p0 = scmp.ne.s32.totalorder %s3308_s12, 0 }
  0x24   : > { %s2540_s0 = sshll.u32 %s384_s10, 3  ;;  %vm394_vm0 = vcmask (!%p2541_p0), 7168   ;;  %v3342_v0 = vmov (!%p2541_p0), -1e+30   ;;  %v3343_v1 = vmov (!%p2541_p0), 0.0  }
  0x25   : > { %s3459_s4 = scalar_lea.vmem %s4307_s3, %s2540_s0  ;;  %393 = sbr.rel (%p2541_p0) target bundleno = 61 (0x3d), region = 36  ;;  %395 = vst.msk [vmem:[#allocation2] sm:$0xff] (!%p2541_p0), %vm394_vm0, %v3342_v0  ;;  %396 = vst.msk [vmem:[#allocation2 + $0x8] sm:$0xff] (!%p2541_p0), %vm394_vm0, %v3342_v0 }
  0x26   : > { %397 = vst.msk [vmem:[#allocation2 + $0x10] sm:$0xff] (!%p2541_p0), %vm394_vm0, %v3342_v0  ;;  %398 = vst.msk [vmem:[#allocation2 + $0x18] sm:$0xff] (!%p2541_p0), %vm394_vm0, %v3342_v0 }
  0x27   : > { %399 = vst.msk [vmem:[#allocation2 + $0x20] sm:$0xff] (!%p2541_p0), %vm394_vm0, %v3342_v0  ;;  %400 = vst.msk [vmem:[#allocation2 + $0x28] sm:$0xff] (!%p2541_p0), %vm394_vm0, %v3342_v0 }
  0x28   : > { %401 = vst.msk [vmem:[#allocation2 + $0x30] sm:$0xff] (!%p2541_p0), %vm394_vm0, %v3342_v0  ;;  %402 = vst.msk [vmem:[#allocation2 + $0x38] sm:$0xff] (!%p2541_p0), %vm394_vm0, %v3342_v0 }
  0x29   : > { %403 = vst.msk [vmem:[#allocation2 + $0x40] sm:$0xff] (!%p2541_p0), %vm394_vm0, %v3342_v0  ;;  %404 = vst.msk [vmem:[#allocation2 + $0x48] sm:$0xff] (!%p2541_p0), %vm394_vm0, %v3342_v0 }
  0x2a   : > { %405 = vst.msk [vmem:[#allocation2 + $0x50] sm:$0xff] (!%p2541_p0), %vm394_vm0, %v3342_v0  ;;  %406 = vst.msk [vmem:[#allocation2 + $0x58] sm:$0xff] (!%p2541_p0), %vm394_vm0, %v3342_v0 }
  0x2b   : > { %407 = vst.msk [vmem:[#allocation2 + $0x60] sm:$0xff] (!%p2541_p0), %vm394_vm0, %v3342_v0  ;;  %408 = vst.msk [vmem:[#allocation2 + $0x68] sm:$0xff] (!%p2541_p0), %vm394_vm0, %v3342_v0 }
  0x2c   : > { %409 = vst.msk [vmem:[#allocation2 + $0x70] sm:$0xff] %vm394_vm0, %v3342_v0  ;;  %410 = vst.msk [vmem:[#allocation2 + $0x78] sm:$0xff] %vm394_vm0, %v3342_v0 }
  0x2d   : > { %411 = vst.msk [vmem:[#allocation3] sm:$0xff] %vm394_vm0, %v3343_v1  ;;  %412 = vst.msk [vmem:[#allocation3 + $0x8] sm:$0xff] %vm394_vm0, %v3343_v1 }
  0x2e   : > { %413 = vst.msk [vmem:[#allocation3 + $0x10] sm:$0xff] %vm394_vm0, %v3343_v1  ;;  %414 = vst.msk [vmem:[#allocation3 + $0x18] sm:$0xff] %vm394_vm0, %v3343_v1 }
  0x2f   : > { %415 = vst.msk [vmem:[#allocation3 + $0x20] sm:$0xff] %vm394_vm0, %v3343_v1  ;;  %416 = vst.msk [vmem:[#allocation3 + $0x28] sm:$0xff] %vm394_vm0, %v3343_v1 }
  0x30   : > { %417 = vst.msk [vmem:[#allocation3 + $0x30] sm:$0xff] %vm394_vm0, %v3343_v1  ;;  %418 = vst.msk [vmem:[#allocation3 + $0x38] sm:$0xff] %vm394_vm0, %v3343_v1 }
  0x31   : > { %419 = vst.msk [vmem:[#allocation3 + $0x40] sm:$0xff] %vm394_vm0, %v3343_v1  ;;  %420 = vst.msk [vmem:[#allocation3 + $0x48] sm:$0xff] %vm394_vm0, %v3343_v1 }
  0x32   : > { %421 = vst.msk [vmem:[#allocation3 + $0x50] sm:$0xff] %vm394_vm0, %v3343_v1  ;;  %422 = vst.msk [vmem:[#allocation3 + $0x58] sm:$0xff] %vm394_vm0, %v3343_v1 }
  0x33   : > { %423 = vst.msk [vmem:[#allocation3 + $0x60] sm:$0xff] %vm394_vm0, %v3343_v1  ;;  %424 = vst.msk [vmem:[#allocation3 + $0x68] sm:$0xff] %vm394_vm0, %v3343_v1 }
  0x34   : > { %425 = vst.msk [vmem:[#allocation3 + $0x70] sm:$0xff] %vm394_vm0, %v3343_v1  ;;  %426 = vst.msk [vmem:[#allocation3 + $0x78] sm:$0xff] %vm394_vm0, %v3343_v1 }
  0x35   : > { %427 = vst [vmem:[#allocation4] sm:$0xff] %v3343_v1  ;;  %428 = vst [vmem:[#allocation4 + $0x8] sm:$0xff] %v3343_v1 }
  0x36   : > { %429 = vst [vmem:[#allocation4 + $0x10] sm:$0xff] %v3343_v1  ;;  %430 = vst [vmem:[#allocation4 + $0x18] sm:$0xff] %v3343_v1 }
  0x37   : > { %431 = vst [vmem:[#allocation4 + $0x20] sm:$0xff] %v3343_v1  ;;  %432 = vst [vmem:[#allocation4 + $0x28] sm:$0xff] %v3343_v1 }
  0x38   : > { %433 = vst [vmem:[#allocation4 + $0x30] sm:$0xff] %v3343_v1  ;;  %434 = vst [vmem:[#allocation4 + $0x38] sm:$0xff] %v3343_v1 }
  0x39   : > { %435 = vst [vmem:[#allocation4 + $0x40] sm:$0xff] %v3343_v1  ;;  %436 = vst [vmem:[#allocation4 + $0x48] sm:$0xff] %v3343_v1 }
  0x3a   : > { %437 = vst [vmem:[#allocation4 + $0x50] sm:$0xff] %v3343_v1  ;;  %438 = vst [vmem:[#allocation4 + $0x58] sm:$0xff] %v3343_v1 }
  0x3b   : > { %439 = vst [vmem:[#allocation4 + $0x60] sm:$0xff] %v3343_v1  ;;  %440 = vst [vmem:[#allocation4 + $0x68] sm:$0xff] %v3343_v1 }
  0x3c   : > { %441 = vst [vmem:[#allocation4 + $0x70] sm:$0xff] %v3343_v1  ;;  %442 = vst [vmem:[#allocation4 + $0x78] sm:$0xff] %v3343_v1 }
  0x3d PF: > { %p2542_p1 = scmp.ge.s32.totalorder %s3308_s12, %s3312_s13 }
  0x3e   : > { %v463_v2 = vld [vmem:[%s3448_s25] sm:$0xff] (!%p2542_p1)  ;;  %v464_v3 = vld [vmem:[%s3448_s25 + $0x8] sm:$0xff] (!%p2542_p1)  ;;  %v465_v4 = vld [vmem:[%s3448_s25 + $0x10] sm:$0xff] (!%p2542_p1)  ;;  %vm976_vm1 = vcmask (!%p2542_p1), 7168  }
  0x3f   : > { %446 = sbr.rel (%p2542_p1) target bundleno = 890 (0x37a), region = 40  ;;  %v2899_v5 = vpack.c.bf16 (!%p2542_p1), %v464_v3, %v463_v2  ;;  %v466_v6 = vld [vmem:[%s3448_s25 + $0x18] sm:$0xff] (!%p2542_p1)  ;;  %v447_v8 = vld [vmem:[%s3442_s11] sm:$0xff] (!%p2542_p1)  ;;  %v468_v10 = vld [vmem:[%s3448_s25 + $0x28] sm:$0xff] (!%p2542_p1) }
  0x40   : > { %v2903_v7 = vpack.c.bf16 (!%p2542_p1), %v466_v6, %v465_v4  ;;  %v467_v9 = vld [vmem:[%s3448_s25 + $0x20] sm:$0xff] (!%p2542_p1)  ;;  %v495_v11 = vmul.f32 (!%p2542_p1), 0.088388346, %v447_v8  ;;  %v469_v13 = vld [vmem:[%s3448_s25 + $0x30] sm:$0xff] (!%p2542_p1)  ;;  %v470_v14 = vld [vmem:[%s3448_s25 + $0x38] sm:$0xff] (!%p2542_p1)  ;;  %v3344_v4 = vmov (!%p2542_p1), 0  }
  0x41   : > { %2900 = vmatprep.subr.bf16.mxu0 (!%p2542_p1), %v2899_v5  ;;  %v2907_v12 = vpack.c.bf16 (!%p2542_p1), %v468_v10, %v467_v9  ;;  %v2911_v15 = vpack.c.bf16 (!%p2542_p1), %v470_v14, %v469_v13  ;;  %v471_v16 = vld [vmem:[%s3448_s25 + $0x40] sm:$0xff] (!%p2542_p1)  ;;  %v472_v17 = vld [vmem:[%s3448_s25 + $0x48] sm:$0xff] (!%p2542_p1)  ;;  %v473_v19 = vld [vmem:[%s3448_s25 + $0x50] sm:$0xff] (!%p2542_p1)  ;;  %3104 = vset.pattern.permute.xlu0 (!%p2542_p1), %v3344_v4 }
  0x42   : > { %2902 = vmatpush3.bf16.xpose.msra.mxu0 (!%p2542_p1), %v2899_v5  ;;  %2707 = vmatprep.mubr.f32.mxu0 (!%p2542_p1), %v495_v11  ;;  %v2915_v18 = vpack.c.bf16 (!%p2542_p1), %v472_v17, %v471_v16  ;;  %v474_v20 = vld [vmem:[%s3448_s25 + $0x58] sm:$0xff] (!%p2542_p1)  ;;  %v475_v22 = vld [vmem:[%s3448_s25 + $0x60] sm:$0xff] (!%p2542_p1)  ;;  %v476_v23 = vld [vmem:[%s3448_s25 + $0x68] sm:$0xff] (!%p2542_p1) }
  0x43   : > { %2904 = vmatprep.subr.bf16.mxu0 (!%p2542_p1), %v2903_v7  ;;  %v2919_v21 = vpack.c.bf16 (!%p2542_p1), %v474_v20, %v473_v19  ;;  %v2923_v24 = vpack.c.bf16 (!%p2542_p1), %v476_v23, %v475_v22  ;;  %v477_v25 = vld [vmem:[%s3448_s25 + $0x70] sm:$0xff] (!%p2542_p1)  ;;  %v478_v26 = vld [vmem:[%s3448_s25 + $0x78] sm:$0xff] (!%p2542_p1)  ;;  %v448_v28 = vld [vmem:[%s3442_s11 + $0x8] sm:$0xff] (!%p2542_p1)  ;;  %3105 = vset.pattern.permute.xlu1 (!%p2542_p1), %v3344_v4 }
  0x44   : > { %v2927_v27 = vpack.c.bf16 (!%p2542_p1), %v478_v26, %v477_v25  ;;  %v449_v29 = vld [vmem:[%s3442_s11 + $0x10] sm:$0xff] (!%p2542_p1)  ;;  %v496_v30 = vmul.f32 (!%p2542_p1), 0.088388346, %v448_v28  ;;  %v450_v32 = vld [vmem:[%s3442_s11 + $0x18] sm:$0xff] (!%p2542_p1)  ;;  %v451_v33 = vld [vmem:[%s3442_s11 + $0x20] sm:$0xff] (!%p2542_p1) }
  0x45   : > { %v497_v31 = vmul.f32 (!%p2542_p1), 0.088388346, %v449_v29  ;;  %v498_v34 = vmul.f32 (!%p2542_p1), 0.088388346, %v450_v32  ;;  %v499_v35 = vmul.f32 (!%p2542_p1), 0.088388346, %v451_v33 }
  0x46   : > { %v452_v36 = vld [vmem:[%s3442_s11 + $0x28] sm:$0xff]  ;;  %v453_v37 = vld [vmem:[%s3442_s11 + $0x30] sm:$0xff]  ;;  %v454_v40 = vld [vmem:[%s3442_s11 + $0x38] sm:$0xff] }
  0x47   : > { %v500_v38 = vmul.f32 0.088388346, %v452_v36  ;;  %v501_v39 = vmul.f32 0.088388346, %v453_v37  ;;  %v455_v41 = vld [vmem:[%s3442_s11 + $0x40] sm:$0xff]  ;;  %v456_v44 = vld [vmem:[%s3442_s11 + $0x48] sm:$0xff] }
  0x48   : > { %v502_v42 = vmul.f32 0.088388346, %v454_v40  ;;  %v503_v43 = vmul.f32 0.088388346, %v455_v41  ;;  %v457_v45 = vld [vmem:[%s3442_s11 + $0x50] sm:$0xff]  ;;  %v458_v48 = vld [vmem:[%s3442_s11 + $0x58] sm:$0xff] }
  0x49   : > { %v504_v46 = vmul.f32 0.088388346, %v456_v44  ;;  %v505_v47 = vmul.f32 0.088388346, %v457_v45  ;;  %v459_v49 = vld [vmem:[%s3442_s11 + $0x60] sm:$0xff]  ;;  %v460_v52 = vld [vmem:[%s3442_s11 + $0x68] sm:$0xff] }
  0x4a   : > { %2906 = vmatpush3.bf16.xpose.msra.mxu0 %v2903_v7  ;;  %v506_v50 = vmul.f32 0.088388346, %v458_v48  ;;  %v507_v51 = vmul.f32 0.088388346, %v459_v49  ;;  %v461_v53 = vld [vmem:[%s3442_s11 + $0x70] sm:$0xff]  ;;  %v462_v56 = vld [vmem:[%s3442_s11 + $0x78] sm:$0xff] }
  0x4b   : > { %2908 = vmatprep.subr.bf16.mxu0 %v2907_v12  ;;  %v508_v54 = vmul.f32 0.088388346, %v460_v52  ;;  %v509_v55 = vmul.f32 0.088388346, %v461_v53  ;;  %v510_v57 = vmul.f32 0.088388346, %v462_v56 }
  0x4c   : > { %v479_v11 = vld [vmem:[%s3453_s8] sm:$0xff]  ;;  %v481_v13 = vld [vmem:[%s3453_s8 + $0x10] sm:$0xff]  ;;  %v3589_v26 = vld [vmem:[#allocation2 + $0x18] sm:$0xff] }
  0x4d   : > { %v483_v17 = vld [vmem:[%s3453_s8 + $0x20] sm:$0xff]  ;;  %v485_v20 = vld [vmem:[%s3453_s8 + $0x30] sm:$0xff]  ;;  %v492_v48 = vld [vmem:[%s3453_s8 + $0x68] sm:$0xff] }
  0x4e   : > { %v3584_v23 = vld [vmem:[#allocation2] sm:$0xff]  ;;  %v3625_v45 = vld [vmem:[#allocation2 + $0x30] sm:$0xff]  ;;  %v3633_v52 = vld [vmem:[#allocation2 + $0x38] sm:$0xff] }
  0x4f   : > { %v487_v29 = vld [vmem:[%s3453_s8 + $0x40] sm:$0xff]  ;;  %v493_v56 = vld [vmem:[%s3453_s8 + $0x70] sm:$0xff] }
  0x50   : > { %v3608_v36 = vld [vmem:[#allocation2 + $0x20] sm:$0xff] }
  0x52   : > { %2910 = vmatpush3.bf16.xpose.msra.mxu0 %v2907_v12  ;;  %v480_v12 = vld [vmem:[%s3453_s8 + $0x8] sm:$0xff] }
  0x53   : > { %2912 = vmatprep.subr.bf16.mxu0 %v2911_v15  ;;  %v2931_v14 = vpack.c.bf16 %v480_v12, %v479_v11 }
  0x55   : > { %2932 = vmatprep.subr.bf16.mxu1 %v2931_v14 }
  0x56   : > { %2934 = vmatpush3.bf16.msra.mxu1 %v2931_v14 }
  0x5a   : > { %2914 = vmatpush3.bf16.xpose.msra.mxu0 %v2911_v15  ;;  %v482_v15 = vld [vmem:[%s3453_s8 + $0x18] sm:$0xff] }
  0x5b   : > { %2916 = vmatprep.subr.bf16.mxu0 %v2915_v18  ;;  %v2935_v16 = vpack.c.bf16 %v482_v15, %v481_v13  ;;  %v665_v13 = vld [vmem:[#allocation2 + $0x48] sm:$0xff]  ;;  %v3651_v15 = vld [vmem:[#allocation2 + $0x50] sm:$0xff] }
  0x5d   : > { %2936 = vmatprep.subr.bf16.mxu1 %v2935_v16 }
  0x5e   : > { %2938 = vmatpush3.bf16.msra.mxu1 %v2935_v16 }
  0x62   : > { %2918 = vmatpush3.bf16.xpose.msra.mxu0 %v2915_v18  ;;  %v484_v18 = vld [vmem:[%s3453_s8 + $0x28] sm:$0xff] }
  0x63   : > { %2920 = vmatprep.subr.bf16.mxu0 %v2919_v21  ;;  %v2939_v19 = vpack.c.bf16 %v484_v18, %v483_v17 }
  0x65   : > { %2940 = vmatprep.subr.bf16.mxu1 %v2939_v19 }
  0x66   : > { %2942 = vmatpush3.bf16.msra.mxu1 %v2939_v19 }
  0x6a   : > { %2922 = vmatpush3.bf16.xpose.msra.mxu0 %v2919_v21  ;;  %v486_v21 = vld [vmem:[%s3453_s8 + $0x38] sm:$0xff] }
  0x6b   : > { %2924 = vmatprep.subr.bf16.mxu0 %v2923_v24  ;;  %v2943_v22 = vpack.c.bf16 %v486_v21, %v485_v20  ;;  %v667_v20 = vld [vmem:[#allocation2 + $0x58] sm:$0xff] }
  0x6d   : > { %2944 = vmatprep.subr.bf16.mxu1 %v2943_v22 }
  0x6e   : > { %2946 = vmatpush3.bf16.msra.mxu1 %v2943_v22  ;;  %v3661_v22 = vld [vmem:[#allocation2 + $0x60] sm:$0xff] }
  0x72   : > { %2926 = vmatpush3.bf16.xpose.msra.mxu0 %v2923_v24 }
  0x73   : > { %2928 = vmatprep.subr.bf16.mxu0 %v2927_v27 }
  0x7a   : > { %2930 = vmatpush3.bf16.xpose.msra.mxu0 %v2927_v27  ;;  %v3591_v27 = vld [vmem:[#allocation2 + $0x8] sm:$0xff] }
  0x81   : > { %2708 = vmatmul.mubr.f32.vlgmr.msra.gmra.mrb[0].mxu0 %v496_v30  ;;  %v488_v30 = vld [vmem:[%s3453_s8 + $0x48] sm:$0xff] }
  0x82   : > { %2710 = vmatprep.mubr.f32.mxu0 %v497_v31  ;;  %v2947_v33 = vpack.c.bf16 %v488_v30, %v487_v29  ;;  %v669_v30 = vld [vmem:[#allocation2 + $0x68] sm:$0xff] }
  0x84   : > { %2948 = vmatprep.subr.bf16.mxu1 %v2947_v33 }
  0x85   : > { %2711 = vmatmul.mubr.f32.gmra.mrb[2].mxu0 %v498_v34  ;;  %2950 = vmatpush3.bf16.msra.mxu1 %v2947_v33  ;;  %v3672_v33 = vld [vmem:[#allocation2 + $0x70] sm:$0xff] }
  0x86   : > { %2713 = vmatprep.mubr.f32.mxu0 %v499_v35  ;;  %v3604_v35 = vld [vmem:[#allocation2 + $0x10] sm:$0xff] }
  0x89   : > { %2714 = vmatmul.mubr.f32.gmra.mrb[4].mxu0 %v500_v38  ;;  %v489_v38 = vld [vmem:[%s3453_s8 + $0x50] sm:$0xff] }
  0x8a   : > { %2716 = vmatprep.mubr.f32.mxu0 %v501_v39  ;;  %v490_v39 = vld [vmem:[%s3453_s8 + $0x58] sm:$0xff] }
  0x8d   : > { %2717 = vmatmul.mubr.f32.gmra.mrb[6].mxu0 %v502_v42  ;;  %v2951_v42 = vpack.c.bf16 %v490_v39, %v489_v38 }
  0x8e   : > { %2719 = vmatprep.mubr.f32.mxu0 %v503_v43  ;;  %v3618_v43 = vld [vmem:[#allocation2 + $0x28] sm:$0xff] }
  0x8f   : > { %2952 = vmatprep.subr.bf16.mxu1 %v2951_v42 }
  0x90   : > { %2954 = vmatpush3.bf16.msra.mxu1 %v2951_v42 }
  0x91   : > { %2720 = vmatmul.mubr.f32.gmra.mrb[8].mxu0 %v504_v46 }
  0x92   : > { %2722 = vmatprep.mubr.f32.mxu0 %v505_v47  ;;  %v491_v47 = vld [vmem:[%s3453_s8 + $0x60] sm:$0xff] }
  0x95   : > { %2723 = vmatmul.mubr.f32.gmra.mrb[10].mxu0 %v506_v50 }
  0x96   : > { %2725 = vmatprep.mubr.f32.mxu0 %v507_v51  ;;  %v2955_v51 = vpack.c.bf16 %v492_v48, %v491_v47 }
  0x98   : > { %2956 = vmatprep.subr.bf16.mxu1 %v2955_v51 }
  0x99   : > { %2726 = vmatmul.mubr.f32.gmra.mrb[12].mxu0 %v508_v54  ;;  %v3639_v54 = vld [vmem:[#allocation2 + $0x40] sm:$0xff]  ;;  %2958 = vmatpush3.bf16.msra.mxu1 %v2955_v51 }
  0x9a   : > { %2728 = vmatprep.mubr.f32.mxu0 %v509_v55 }
  0x9d   : > { %2729 = vmatmul.mubr.f32.gmra.mrb[14].mxu0 %v510_v57  ;;  %v494_v57 = vld [vmem:[%s3453_s8 + $0x78] sm:$0xff] }
  0x9e   : > { %v2959_v12 = vpack.c.bf16 %v494_v57, %v493_v56 }
  0xa0   : > { %2960 = vmatprep.subr.bf16.mxu1 %v2959_v12 }
  0xa1   : > { %2962 = vmatpush3.bf16.msra.mxu1 %v2959_v12 }
 0x154   : > { %v3528_v58 = vpop.f32.mrb[0].mxu0 }
 0x155   : > { %v3530_v59 = vpop.f32.mrb[1].mxu0 }
 0x156   : > { %672 = vmax.xlane.f32.xlu0 %v3530_v59 }
 0x158   : > { %v3533_v60 = vpop.f32.mrb[2].mxu0 }
 0x159   : > { %678 = vmax.xlane.f32.xlu1 %v3533_v60  ;;  %v3536_v61 = vpop.f32.mrb[3].mxu0 }
 0x15a   : > { %674 = vmax.xlane.f32.xlu0 %v3528_v58 }
 0x15c   : > { %v3539_v62 = vpop.f32.mrb[4].mxu0 }
 0x15d   : > { %676 = vmax.xlane.f32.xlu1 %v3536_v61  ;;  %v3542_v63 = vpop.f32.mrb[5].mxu0 }
 0x15e   : > { %680 = vmax.xlane.f32.xlu0 %v3542_v63 }
 0x160   : > { %v3545_v0 = vpop.f32.mrb[6].mxu0 }
 0x161   : > { %682 = vmax.xlane.f32.xlu1 %v3539_v62  ;;  %v3548_v1 = vpop.f32.mrb[7].mxu0 }
 0x162   : > { %684 = vmax.xlane.f32.xlu0 %v3548_v1 }
 0x164   : > { %v3551_v2 = vpop.f32.mrb[8].mxu0 }
 0x165   : > { %686 = vmax.xlane.f32.xlu1 %v3545_v0  ;;  %v3554_v3 = vpop.f32.mrb[9].mxu0 }
 0x166   : > { %688 = vmax.xlane.f32.xlu0 %v3554_v3 }
 0x168   : > { %v3557_v5 = vpop.f32.mrb[10].mxu0 }
 0x169   : > { %690 = vmax.xlane.f32.xlu1 %v3551_v2  ;;  %v3560_v6 = vpop.f32.mrb[11].mxu0 }
 0x16a   : > { %692 = vmax.xlane.f32.xlu0 %v3560_v6 }
 0x16c   : > { %v3563_v7 = vpop.f32.mrb[12].mxu0 }
 0x16d   : > { %694 = vmax.xlane.f32.xlu1 %v3557_v5  ;;  %v3566_v8 = vpop.f32.mrb[13].mxu0 }
 0x16e   : > { %696 = vmax.xlane.f32.xlu0 %v3566_v8 }
 0x170   : > { %v3569_v9 = vpop.f32.mrb[14].mxu0 }
 0x171   : > { %698 = vmax.xlane.f32.xlu1 %v3563_v7  ;;  %v3572_v10 = vpop.f32.mrb[15].mxu0 }
 0x172   : > { %700 = vmax.xlane.f32.xlu0 %v3572_v10 }
 0x175   : > { %702 = vmax.xlane.f32.xlu1 %v3569_v9 }
 0x1e3   : > { %v673_v24 = vpop.xlane.xlu0 %672 }
 0x1e4   : > { %v3587_v25 = vmax.f32 %v3584_v23, %v673_v24 }
 0x1e6   : > { %1282 = vst.msk [vmem:[#allocation2] sm:$0xff] %vm976_vm1, %v3587_v25  ;;  %v679_v28 = vpop.xlane.xlu1 %678  ;;  %770 = vperm.xlu0 %3104, %v3587_v25   ;;  %v720_v16 = vsub.f32 %v3584_v23, %v3587_v25 }
 0x1e7   : > { %v3599_v31 = vmax.f32 %v3589_v26, %v679_v28  ;;  %v675_v32 = vpop.xlane.xlu0 %674 }
 0x1e8   : > { %v3602_v34 = vmax.f32 %v3591_v27, %v675_v32  ;;  %v736_v24 = vmul.f32 1.442695, %v720_v16 }
 0x1e9   : > { %1285 = vst.msk [vmem:[#allocation2 + $0x18] sm:$0xff] %vm976_vm1, %v3599_v31  ;;  %v723_v23 = vsub.f32 %v3589_v26, %v3599_v31 }
 0x1ea   : > { %1283 = vst.msk [vmem:[#allocation2 + $0x8] sm:$0xff] %vm976_vm1, %v3602_v34  ;;  %v677_v37 = vpop.xlane.xlu1 %676  ;;  %775 = vperm.xlu1 %3105, %v3602_v34   ;;  %3106 = vpow2.f32 %v736_v24 }
 0x1eb   : > { %v3616_v40 = vmax.f32 %v3604_v35, %v677_v37  ;;  %v681_v41 = vpop.xlane.xlu0 %680  ;;  %v742_v37 = vmul.f32 1.442695, %v723_v23 }
 0x1ec   : > { %v3621_v44 = vmax.f32 %v3608_v36, %v681_v41  ;;  %v3677_v41 = vld [vmem:[#allocation2 + $0x78] sm:$0xff] }
 0x1ed   : > { %1284 = vst.msk [vmem:[#allocation2 + $0x10] sm:$0xff] %vm976_vm1, %v3616_v40  ;;  %3108 = vpow2.f32 %v742_v37 }
 0x1ee   : > { %v683_v46 = vpop.xlane.xlu1 %682  ;;  %785 = vperm.xlu1 %3105, %v3599_v31   ;;  %1286 = vst.msk [vmem:[#allocation2 + $0x20] sm:$0xff] %vm976_vm1, %v3621_v44  ;;  %v724_v12 = vsub.f32 %v3608_v36, %v3621_v44 }
 0x1ef   : > { %v709_v49 = vmax.f32 %v3618_v43, %v683_v46  ;;  %v685_v50 = vpop.xlane.xlu0 %684 }
 0x1f0   : > { %v3636_v53 = vmax.f32 %v3625_v45, %v685_v50  ;;  %v744_v16 = vmul.f32 1.442695, %v724_v12 }
 0x1f1   : > { %1287 = vst.msk [vmem:[#allocation2 + $0x28] sm:$0xff] %vm976_vm1, %v709_v49  ;;  %v725_v26 = vsub.f32 %v3618_v43, %v709_v49 }
 0x1f2   : > { %v687_v55 = vpop.xlane.xlu1 %686  ;;  %780 = vperm.xlu1 %3105, %v3616_v40   ;;  %1288 = vst.msk [vmem:[#allocation2 + $0x30] sm:$0xff] %vm976_vm1, %v3636_v53 }
 0x1f3   : > { %v711_v4 = vmax.f32 %v3633_v52, %v687_v55  ;;  %v689_v11 = vpop.xlane.xlu0 %688  ;;  %v746_v46 = vmul.f32 1.442695, %v725_v26 }
 0x1f4   : > { %v3648_v14 = vmax.f32 %v3639_v54, %v689_v11 }
 0x1f5   : > { %1289 = vst.msk [vmem:[#allocation2 + $0x38] sm:$0xff] %vm976_vm1, %v711_v4  ;;  %v727_v47 = vsub.f32 %v3633_v52, %v711_v4  ;;  %3110 = vpow2.f32 %v746_v46 }
 0x1f6   : > { %v691_v17 = vpop.xlane.xlu1 %690  ;;  %795 = vperm.xlu1 %3105, %v709_v49   ;;  %1290 = vst.msk [vmem:[#allocation2 + $0x40] sm:$0xff] %vm976_vm1, %v3648_v14  ;;  %v721_v49 = vsub.f32 %v3591_v27, %v3602_v34  ;;  %v722_v27 = vsub.f32 %v3604_v35, %v3616_v40  ;;  %v3702_v34 = vpop.eup %3106 }
 0x1f7   : > { %v713_v18 = vmax.f32 %v665_v13, %v691_v17  ;;  %v693_v19 = vpop.xlane.xlu0 %692  ;;  %v750_v52 = vmul.f32 1.442695, %v727_v47  ;;  %v726_v17 = vsub.f32 %v3625_v45, %v3636_v53 }
 0x1f8   : > { %v3658_v21 = vmax.f32 %v3651_v15, %v693_v19  ;;  %v738_v56 = vmul.f32 1.442695, %v721_v49  ;;  %v740_v11 = vmul.f32 1.442695, %v722_v27  ;;  %v728_v19 = vsub.f32 %v3639_v54, %v3648_v14 }
 0x1f9   : > { %1291 = vst.msk [vmem:[#allocation2 + $0x48] sm:$0xff] %vm976_vm1, %v713_v18  ;;  %815 = vperm.xlu0 %3104, %v713_v18   ;;  %v729_v55 = vsub.f32 %v665_v13, %v713_v18  ;;  %3112 = vpow2.f32 %v750_v52  ;;  %v3708_v13 = vpop.eup %3108 }
 0x1fa   : > { %v695_v25 = vpop.xlane.xlu1 %694  ;;  %790 = vperm.xlu1 %3105, %v3621_v44   ;;  %1292 = vst.msk [vmem:[#allocation2 + $0x50] sm:$0xff] %vm976_vm1, %v3658_v21  ;;  %3114 = vpow2.f32 %v738_v56  ;;  %v748_v44 = vmul.f32 1.442695, %v726_v17  ;;  %v752_v45 = vmul.f32 1.442695, %v728_v19 }
 0x1fb   : > { %v715_v28 = vmax.f32 %v667_v20, %v695_v25  ;;  %v697_v29 = vpop.xlane.xlu0 %696  ;;  %v754_v57 = vmul.f32 1.442695, %v729_v55 }
 0x1fc   : > { %v3669_v32 = vmax.f32 %v3661_v22, %v697_v29 }
 0x1fd   : > { %1293 = vst.msk [vmem:[#allocation2 + $0x58] sm:$0xff] %vm976_vm1, %v715_v28  ;;  %825 = vperm.xlu0 %3104, %v715_v28   ;;  %3116 = vpow2.f32 %v754_v57 }
 0x1fe   : > { %v699_v31 = vpop.xlane.xlu1 %698  ;;  %805 = vperm.xlu1 %3105, %v711_v4   ;;  %1294 = vst.msk [vmem:[#allocation2 + $0x60] sm:$0xff] %vm976_vm1, %v3669_v32  ;;  %v731_v4 = vsub.f32 %v667_v20, %v715_v28  ;;  %3118 = vpow2.f32 %v740_v11 }
 0x1ff   : > { %v717_v38 = vmax.f32 %v669_v30, %v699_v31  ;;  %v701_v39 = vpop.xlane.xlu0 %700  ;;  %v3714_v18 = vpop.eup %3110 }
 0x200   : > { %v3680_v42 = vmax.f32 %v3672_v33, %v701_v39  ;;  %v758_v35 = vmul.f32 1.442695, %v731_v4 }
 0x201   : > { %1295 = vst.msk [vmem:[#allocation2 + $0x68] sm:$0xff] %vm976_vm1, %v717_v38  ;;  %835 = vperm.xlu0 %3104, %v717_v38   ;;  %v733_v40 = vsub.f32 %v669_v30, %v717_v38 }
 0x202   : > { %800 = vperm.xlu1 %3105, %v3636_v53   ;;  %v703_v43 = vpop.xlane.xlu1 %702  ;;  %v734_v48 = vsub.f32 %v3672_v33, %v3680_v42  ;;  %1296 = vst.msk [vmem:[#allocation2 + $0x70] sm:$0xff] %vm976_vm1, %v3680_v42  ;;  %3120 = vpow2.f32 %v758_v35  ;;  %v730_v53 = vsub.f32 %v3651_v15, %v3658_v21 }
 0x203   : > { %v3692_v50 = vmax.f32 %v3677_v41, %v703_v43  ;;  %v762_v36 = vmul.f32 1.442695, %v733_v40  ;;  %3122 = vpow2.f32 %v744_v16  ;;  %v3720_v20 = vpop.eup %3112 }
 0x204   : > { %v3722_v24 = vpop.eup %3114  ;;  %v756_v54 = vmul.f32 1.442695, %v730_v53 }
 0x205   : > { %v735_v51 = vsub.f32 %v3677_v41, %v3692_v50  ;;  %1297 = vst.msk [vmem:[#allocation2 + $0x78] sm:$0xff] %vm976_vm1, %v3692_v50  ;;  %845 = vperm.xlu0 %3104, %v3692_v50   ;;  %3124 = vpow2.f32 %v762_v36 }
 0x206   : > { %810 = vperm.xlu1 %3105, %v3648_v14   ;;  %3126 = vpow2.f32 %v748_v44  ;;  %v732_v14 = vsub.f32 %v3661_v22, %v3669_v32 }
 0x207   : > { %v3728_v23 = vpop.eup %3116  ;;  %3128 = vpow2.f32 %v752_v45 }
 0x208   : > { %v3730_v25 = vpop.eup %3118  ;;  %3130 = vpow2.f32 %v756_v54  ;;  %v760_v15 = vmul.f32 1.442695, %v732_v14 }
 0x209   : > { %1011 = vperm.xlu0 %3104, %v3702_v34  }
 0x20a   : > { %820 = vperm.xlu1 %3105, %v3658_v21   ;;  %3132 = vpow2.f32 %v760_v15 }
 0x20c   : > { %v3736_v28 = vpop.eup %3120 }
 0x20d   : > { %1026 = vperm.xlu0 %3104, %v3708_v13   ;;  %v3738_v29 = vpop.eup %3122 }
 0x20e   : > { %830 = vperm.xlu1 %3105, %v3669_v32  }
 0x20f   : > { %v3742_v21 = vpop.eup %3124 }
 0x210   : > { %v3744_v30 = vpop.eup %3126 }
 0x211   : > { %1036 = vperm.xlu0 %3104, %v3714_v18   ;;  %v3748_v22 = vpop.eup %3128 }
 0x212   : > { %840 = vperm.xlu1 %3105, %v3680_v42   ;;  %v3751_v32 = vpop.eup %3130 }
 0x214   : > { %v3754_v37 = vpop.eup %3132 }
 0x215   : > { %1046 = vperm.xlu0 %3104, %v3720_v20  }
 0x216   : > { %1016 = vperm.xlu1 %3105, %v3722_v24  }
 0x219   : > { %1056 = vperm.xlu0 %3104, %v3728_v23  }
 0x21a   : > { %1021 = vperm.xlu1 %3105, %v3730_v25  }
 0x21d   : > { %1066 = vperm.xlu0 %3104, %v3736_v28  }
 0x21e   : > { %1031 = vperm.xlu1 %3105, %v3738_v29  }
 0x221   : > { %1076 = vperm.xlu0 %3104, %v3742_v21  }
 0x222   : > { %1041 = vperm.xlu1 %3105, %v3744_v30  }
 0x226   : > { %1051 = vperm.xlu1 %3105, %v3748_v22  }
 0x22a   : > { %1061 = vperm.xlu1 %3105, %v3751_v32  }
 0x22e   : > { %1071 = vperm.xlu1 %3105, %v3754_v37  }
 0x265   : > { %v771_v26 = vpop.permute.xlu0 %770 }
 0x266   : > { %v848_v31 = vsub.f32 %v3530_v59, %v771_v26 }
 0x268   : > { %v864_v38 = vmul.f32 1.442695, %v848_v31 }
 0x269   : > { %v776_v39 = vpop.permute.xlu1 %775 }
 0x26a   : > { %3134 = vpow2.f32 %v864_v38  ;;  %v849_v46 = vsub.f32 %v3528_v58, %v776_v39 }
 0x26c   : > { %v866_v47 = vmul.f32 1.442695, %v849_v46 }
 0x26d   : > { %v786_v43 = vpop.permute.xlu1 %785 }
 0x26e   : > { %3136 = vpow2.f32 %v866_v47  ;;  %v851_v49 = vsub.f32 %v3533_v60, %v786_v43 }
 0x270   : > { %v870_v52 = vmul.f32 1.442695, %v851_v49 }
 0x271   : > { %v781_v55 = vpop.permute.xlu1 %780 }
 0x272   : > { %3138 = vpow2.f32 %v870_v52  ;;  %v850_v56 = vsub.f32 %v3536_v61, %v781_v55 }
 0x274   : > { %v3135_v27 = vpop.eup %3134  ;;  %v868_v57 = vmul.f32 1.442695, %v850_v56 }
 0x275   : > { %v796_v4 = vpop.permute.xlu1 %795  ;;  %928 = vadd.xlane.f32.xlu1 %v3135_v27  ;;  %2763 = vmatprep.mubr.f32.mxu1 %v3135_v27 }
 0x276   : > { %3140 = vpow2.f32 %v868_v57  ;;  %v853_v59 = vsub.f32 %v3539_v62, %v796_v4 }
 0x278   : > { %v3137_v11 = vpop.eup %3136  ;;  %v874_v58 = vmul.f32 1.442695, %v853_v59  ;;  %v816_v12 = vpop.permute.xlu0 %815 }
 0x279   : > { %v791_v35 = vpop.permute.xlu1 %790  ;;  %930 = vadd.xlane.f32.xlu0 %v3137_v11  ;;  %2764 = vmatmul.mubr.f32.vlgmr.msra.gmra.mrb[0].mxu1 %v3137_v11  ;;  %v857_v44 = vsub.f32 %v3551_v2, %v816_v12 }
 0x27a   : > { %3142 = vpow2.f32 %v874_v58  ;;  %v852_v60 = vsub.f32 %v3542_v63, %v791_v35 }
 0x27b   : > { %v882_v63 = vmul.f32 1.442695, %v857_v44 }
 0x27c   : > { %v3139_v40 = vpop.eup %3138  ;;  %v872_v16 = vmul.f32 1.442695, %v852_v60  ;;  %v826_v61 = vpop.permute.xlu0 %825 }
 0x27d   : > { %v806_v17 = vpop.permute.xlu1 %805  ;;  %934 = vadd.xlane.f32.xlu1 %v3139_v40  ;;  %v859_v14 = vsub.f32 %v3557_v5, %v826_v61 }
 0x27e   : > { %3144 = vpow2.f32 %v872_v16  ;;  %v855_v36 = vsub.f32 %v3545_v0, %v806_v17  ;;  %v766_v16 = vmul.f32 1.442695, %v735_v51 }
 0x27f   : > { %v886_v2 = vmul.f32 1.442695, %v859_v14 }
 0x280   : > { %v3141_v62 = vpop.eup %3140  ;;  %v878_v19 = vmul.f32 1.442695, %v855_v36  ;;  %v836_v53 = vpop.permute.xlu0 %835 }
 0x281   : > { %v801_v45 = vpop.permute.xlu1 %800  ;;  %932 = vadd.xlane.f32.xlu0 %v3141_v62  ;;  %2766 = vmatprep.mubr.f32.mxu1 %v3141_v62  ;;  %v861_v38 = vsub.f32 %v3563_v7, %v836_v53 }
 0x282   : > { %3146 = vpow2.f32 %v878_v19  ;;  %v854_v54 = vsub.f32 %v3548_v1, %v801_v45  ;;  %2767 = vmatmul.mubr.f32.gmra.mrb[2].mxu1 %v3139_v40  ;;  %v764_v40 = vmul.f32 1.442695, %v734_v48 }
 0x283   : > { %v890_v5 = vmul.f32 1.442695, %v861_v38 }
 0x284   : > { %v3143_v15 = vpop.eup %3142  ;;  %v876_v26 = vmul.f32 1.442695, %v854_v54  ;;  %v846_v46 = vpop.permute.xlu0 %845 }
 0x285   : > { %v811_v31 = vpop.permute.xlu1 %810  ;;  %938 = vadd.xlane.f32.xlu1 %v3143_v15  ;;  %v863_v49 = vsub.f32 %v3569_v9, %v846_v46 }
 0x286   : > { %3148 = vpow2.f32 %v876_v26  ;;  %v856_v0 = vsub.f32 %v3554_v3, %v811_v31  ;;  %v897_v31 = vld [vmem:[#allocation3 + $0x8] sm:$0xff] }
 0x287   : > { %3150 = vpow2.f32 %v882_v63  ;;  %v894_v56 = vmul.f32 1.442695, %v863_v49  ;;  %v896_v63 = vld [vmem:[#allocation3] sm:$0xff] }
 0x288   : > { %v3145_v39 = vpop.eup %3144  ;;  %v880_v47 = vmul.f32 1.442695, %v856_v0  ;;  %v3787_v33 = vpop.permute.xlu0 %1011  ;;  %v912_v14 = vmul.f32 %v3702_v34, %v896_v63  ;;  %v906_v63 = vld [vmem:[#allocation3 + $0x50] sm:$0xff] }
 0x289   : > { %v821_v43 = vpop.permute.xlu1 %820  ;;  %936 = vadd.xlane.f32.xlu0 %v3145_v39  ;;  %2769 = vmatprep.mubr.f32.mxu1 %v3145_v39  ;;  %v899_v39 = vld [vmem:[#allocation3 + $0x18] sm:$0xff] }
 0x28a   : > { %3152 = vpow2.f32 %v880_v47  ;;  %v858_v1 = vsub.f32 %v3560_v6, %v821_v43  ;;  %2770 = vmatmul.mubr.f32.gmra.mrb[4].mxu1 %v3143_v15  ;;  %v915_v47 = vmul.f32 %v3708_v13, %v899_v39 }
 0x28b   : > { %3154 = vpow2.f32 %v886_v2  ;;  %v913_v2 = vmul.f32 %v3722_v24, %v897_v31  ;;  %v922_v31 = vmul.f32 %v3751_v32, %v906_v63  ;;  %v910_v32 = vld [vmem:[#allocation3 + $0x70] sm:$0xff] }
 0x28c   : > { %v3147_v52 = vpop.eup %3146  ;;  %v884_v3 = vmul.f32 1.442695, %v858_v1  ;;  %v3791_v48 = vpop.permute.xlu0 %1026  ;;  %v898_v1 = vld [vmem:[#allocation3 + $0x10] sm:$0xff] }
 0x28d   : > { %v831_v55 = vpop.permute.xlu1 %830  ;;  %942 = vadd.xlane.f32.xlu1 %v3147_v52  ;;  %v914_v34 = vmul.f32 %v3730_v25, %v898_v1 }
 0x28e   : > { %3156 = vpow2.f32 %v884_v3  ;;  %v860_v7 = vsub.f32 %v3566_v8, %v831_v55 }
 0x28f   : > { %3158 = vpow2.f32 %v890_v5 }
 0x290   : > { %v3149_v27 = vpop.eup %3148  ;;  %v888_v57 = vmul.f32 1.442695, %v860_v7  ;;  %v3795_v41 = vpop.permute.xlu0 %1036  ;;  %v900_v7 = vld [vmem:[#allocation3 + $0x20] sm:$0xff] }
 0x291   : > { %v3151_v4 = vpop.eup %3150  ;;  %940 = vadd.xlane.f32.xlu0 %v3149_v27  ;;  %v841_v59 = vpop.permute.xlu1 %840  ;;  %2772 = vmatprep.mubr.f32.mxu1 %v3149_v27  ;;  %v916_v13 = vmul.f32 %v3738_v29, %v900_v7 }
 0x292   : > { %3160 = vpow2.f32 %v888_v57  ;;  %v862_v6 = vsub.f32 %v3572_v10, %v841_v59  ;;  %946 = vadd.xlane.f32.xlu1 %v3151_v4  ;;  %2773 = vmatmul.mubr.f32.gmra.mrb[6].mxu1 %v3147_v52  ;;  %v901_v52 = vld [vmem:[#allocation3 + $0x28] sm:$0xff]  ;;  %v903_v57 = vld [vmem:[#allocation3 + $0x38] sm:$0xff] }
 0x293   : > { %3162 = vpow2.f32 %v894_v56  ;;  %v917_v24 = vmul.f32 %v3714_v18, %v901_v52  ;;  %v919_v25 = vmul.f32 %v3720_v20, %v903_v57  ;;  %v996_v57 = vld [vmem:[#allocation4 + $0x18] sm:$0xff] }
 0x294   : > { %v3153_v9 = vpop.eup %3152  ;;  %v892_v11 = vmul.f32 1.442695, %v862_v6  ;;  %v3799_v51 = vpop.permute.xlu0 %1046  ;;  %v902_v6 = vld [vmem:[#allocation3 + $0x30] sm:$0xff] }
 0x295   : > { %v3155_v58 = vpop.eup %3154  ;;  %944 = vadd.xlane.f32.xlu0 %v3153_v9  ;;  %2775 = vmatprep.mubr.f32.mxu1 %v3153_v9  ;;  %v3785_v36 = vpop.permute.xlu1 %1016  ;;  %v918_v18 = vmul.f32 %v3744_v30, %v902_v6 }
 0x296   : > { %3164 = vpow2.f32 %v892_v11  ;;  %950 = vadd.xlane.f32.xlu1 %v3155_v58  ;;  %2776 = vmatmul.mubr.f32.gmra.mrb[8].mxu1 %v3151_v4  ;;  %v905_v11 = vld [vmem:[#allocation3 + $0x48] sm:$0xff] }
 0x297   : > { %3166 = vpow2.f32 %v764_v40 }
 0x298   : > { %v3157_v8 = vpop.eup %3156  ;;  %3168 = vpow2.f32 %v766_v16  ;;  %v3803_v19 = vpop.permute.xlu0 %1056 }
 0x299   : > { %v3159_v12 = vpop.eup %3158  ;;  %948 = vadd.xlane.f32.xlu0 %v3157_v8  ;;  %2778 = vmatprep.mubr.f32.mxu1 %v3157_v8  ;;  %v3789_v42 = vpop.permute.xlu1 %1021 }
 0x29a   : > { %954 = vadd.xlane.f32.xlu1 %v3159_v12  ;;  %2779 = vmatmul.mubr.f32.gmra.mrb[10].mxu1 %v3155_v58  ;;  %v921_v58 = vmul.f32 %v3728_v23, %v905_v11 }
 0x29c   : > { %v3161_v35 = vpop.eup %3160  ;;  %v3807_v53 = vpop.permute.xlu0 %1066 }
 0x29d   : > { %v3163_v60 = vpop.eup %3162  ;;  %952 = vadd.xlane.f32.xlu0 %v3161_v35  ;;  %2781 = vmatprep.mubr.f32.mxu1 %v3161_v35  ;;  %v3793_v44 = vpop.permute.xlu1 %1031 }
 0x29e   : > { %958 = vadd.xlane.f32.xlu1 %v3163_v60  ;;  %2782 = vmatmul.mubr.f32.gmra.mrb[12].mxu1 %v3159_v12  ;;  %v904_v12 = vld [vmem:[#allocation3 + $0x40] sm:$0xff] }
 0x29f   : > { %v920_v20 = vmul.f32 %v3748_v22, %v904_v12  ;;  %v908_v22 = vld [vmem:[#allocation3 + $0x60] sm:$0xff] }
 0x2a0   : > { %v3165_v10 = vpop.eup %3164  ;;  %v3812_v15 = vpop.permute.xlu0 %1076 }
 0x2a1   : > { %956 = vadd.xlane.f32.xlu0 %v3165_v10  ;;  %2784 = vmatprep.mubr.f32.mxu1 %v3165_v10  ;;  %v3779_v61 = vpop.eup %3166  ;;  %v3797_v50 = vpop.permute.xlu1 %1041 }
 0x2a2   : > { %2785 = vmatmul.mubr.f32.gmra.mrb[14].mxu1 %v3163_v60  ;;  %v3782_v17 = vpop.eup %3168  ;;  %v907_v60 = vld [vmem:[#allocation3 + $0x58] sm:$0xff] }
 0x2a3   : > { %v923_v40 = vmul.f32 %v3736_v28, %v907_v60 }
 0x2a5   : > { %v3801_v62 = vpop.permute.xlu1 %1051 }
 0x2a9   : > { %v3805_v45 = vpop.permute.xlu1 %1061 }
 0x2ad   : > { %v3809_v54 = vpop.permute.xlu1 %1071 }
 0x2af   : > { %1081 = vperm.xlu1 %3105, %v3779_v61  }
 0x2b7   : > { %1086 = vperm.xlu0 %3104, %v3782_v17  }
 0x302   : > { %v929_v26 = vpop.xlane.xlu1 %928 }
 0x303   : > { %v960_v0 = vadd.f32 %v929_v26, %v912_v14  ;;  %v909_v26 = vld [vmem:[#allocation3 + $0x68] sm:$0xff] }
 0x305   : > { %977 = vst.msk [vmem:[#allocation3] sm:$0xff] %vm976_vm1, %v960_v0  ;;  %v925_v0 = vmul.f32 %v3742_v21, %v909_v26  ;;  %v926_v21 = vmul.f32 %v3779_v61, %v910_v32  ;;  %v995_v61 = vld [vmem:[#allocation4 + $0x10] sm:$0xff] }
 0x306   : > { %v931_v38 = vpop.xlane.xlu0 %930 }
 0x307   : > { %v961_v46 = vadd.f32 %v931_v38, %v913_v2 }
 0x309   : > { %978 = vst.msk [vmem:[#allocation3 + $0x8] sm:$0xff] %vm976_vm1, %v961_v46  ;;  %v911_v46 = vld [vmem:[#allocation3 + $0x78] sm:$0xff] }
 0x30a   : > { %v935_v43 = vpop.xlane.xlu1 %934 }
 0x30b   : > { %v963_v5 = vadd.f32 %v935_v43, %v915_v47  ;;  %v924_v47 = vmul.f32 %v3754_v37, %v908_v22  ;;  %v927_v43 = vmul.f32 %v3782_v17, %v911_v46  ;;  %v994_v37 = vld [vmem:[#allocation4 + $0x8] sm:$0xff]  ;;  %v1005_v46 = vld [vmem:[#allocation4 + $0x60] sm:$0xff] }
 0x30d   : > { %980 = vst.msk [vmem:[#allocation3 + $0x18] sm:$0xff] %vm976_vm1, %v963_v5 }
 0x30e   : > { %v933_v49 = vpop.xlane.xlu0 %932 }
 0x30f   : > { %v962_v3 = vadd.f32 %v933_v49, %v914_v34 }
 0x311   : > { %979 = vst.msk [vmem:[#allocation3 + $0x10] sm:$0xff] %vm976_vm1, %v962_v3 }
 0x312   : > { %v939_v55 = vpop.xlane.xlu1 %938 }
 0x313   : > { %v965_v56 = vadd.f32 %v939_v55, %v917_v24  ;;  %v993_v24 = vld [vmem:[#allocation4] sm:$0xff]  ;;  %v1090_v55 = vmul.f32 %v3785_v36, %v994_v37  ;;  %v998_v36 = vld [vmem:[#allocation4 + $0x28] sm:$0xff] }
 0x314   : > { %v1089_v17 = vmul.f32 %v3787_v33, %v993_v24  ;;  %v997_v33 = vld [vmem:[#allocation4 + $0x20] sm:$0xff] }
 0x315   : > { %982 = vst.msk [vmem:[#allocation3 + $0x28] sm:$0xff] %vm976_vm1, %v965_v56 }
 0x316   : > { %v937_v27 = vpop.xlane.xlu0 %936 }
 0x317   : > { %v964_v4 = vadd.f32 %v937_v27, %v916_v13 }
 0x319   : > { %981 = vst.msk [vmem:[#allocation3 + $0x20] sm:$0xff] %vm976_vm1, %v964_v4  ;;  %v1092_v4 = vmul.f32 %v3791_v48, %v996_v57  ;;  %v1000_v48 = vld [vmem:[#allocation4 + $0x38] sm:$0xff] }
 0x31a   : > { %v943_v59 = vpop.xlane.xlu1 %942  ;;  %v1096_v60 = vmul.f32 %v3799_v51, %v1000_v48 }
 0x31b   : > { %v967_v9 = vadd.f32 %v943_v59, %v919_v25  ;;  %v1091_v25 = vmul.f32 %v3789_v42, %v995_v61  ;;  %v999_v42 = vld [vmem:[#allocation4 + $0x30] sm:$0xff] }
 0x31d   : > { %984 = vst.msk [vmem:[#allocation3 + $0x38] sm:$0xff] %vm976_vm1, %v967_v9 }
 0x31e   : > { %v941_v8 = vpop.xlane.xlu0 %940 }
 0x31f   : > { %v947_v29 = vpop.xlane.xlu1 %946  ;;  %v966_v35 = vadd.f32 %v941_v8, %v918_v18  ;;  %v1094_v18 = vmul.f32 %v3795_v41, %v998_v36 }
 0x320   : > { %v969_v10 = vadd.f32 %v947_v29, %v921_v58  ;;  %v1093_v58 = vmul.f32 %v3793_v44, %v997_v33 }
 0x321   : > { %983 = vst.msk [vmem:[#allocation3 + $0x30] sm:$0xff] %vm976_vm1, %v966_v35 }
 0x322   : > { %986 = vst.msk [vmem:[#allocation3 + $0x48] sm:$0xff] %vm976_vm1, %v969_v10  ;;  %v945_v16 = vpop.xlane.xlu0 %944  ;;  %v1002_v10 = vld [vmem:[#allocation4 + $0x48] sm:$0xff] }
 0x323   : > { %v951_v14 = vpop.xlane.xlu1 %950  ;;  %v968_v30 = vadd.f32 %v945_v16, %v920_v20  ;;  %v1095_v20 = vmul.f32 %v3797_v50, %v999_v42  ;;  %v1001_v16 = vld [vmem:[#allocation4 + $0x40] sm:$0xff]  ;;  %v1098_v44 = vmul.f32 %v3803_v19, %v1002_v10  ;;  %v1006_v50 = vld [vmem:[#allocation4 + $0x68] sm:$0xff] }
 0x324   : > { %v971_v23 = vadd.f32 %v951_v14, %v923_v40  ;;  %v1097_v26 = vmul.f32 %v3801_v62, %v1001_v16  ;;  %v1102_v62 = vmul.f32 %v3812_v15, %v1006_v50 }
 0x325   : > { %985 = vst.msk [vmem:[#allocation3 + $0x40] sm:$0xff] %vm976_vm1, %v968_v30  ;;  %v1004_v30 = vld [vmem:[#allocation4 + $0x58] sm:$0xff] }
 0x326   : > { %988 = vst.msk [vmem:[#allocation3 + $0x58] sm:$0xff] %vm976_vm1, %v971_v23  ;;  %v949_v2 = vpop.xlane.xlu0 %948  ;;  %v1100_v22 = vmul.f32 %v3807_v53, %v1004_v30  ;;  %v1007_v53 = vld [vmem:[#allocation4 + $0x70] sm:$0xff] }
 0x327   : > { %v955_v38 = vpop.xlane.xlu1 %954  ;;  %v970_v39 = vadd.f32 %v949_v2, %v922_v31  ;;  %v1003_v31 = vld [vmem:[#allocation4 + $0x50] sm:$0xff] }
 0x328   : > { %v973_v28 = vadd.f32 %v955_v38, %v925_v0  ;;  %v1099_v38 = vmul.f32 %v3805_v45, %v1003_v31 }
 0x329   : > { %987 = vst.msk [vmem:[#allocation3 + $0x50] sm:$0xff] %vm976_vm1, %v970_v39 }
 0x32a   : > { %990 = vst.msk [vmem:[#allocation3 + $0x68] sm:$0xff] %vm976_vm1, %v973_v28  ;;  %v953_v1 = vpop.xlane.xlu0 %952 }
 0x32b   : > { %v959_v5 = vpop.xlane.xlu1 %958  ;;  %v972_v34 = vadd.f32 %v953_v1, %v924_v47  ;;  %v1008_v1 = vld [vmem:[#allocation4 + $0x78] sm:$0xff] }
 0x32c   : > { %v975_v49 = vadd.f32 %v959_v5, %v927_v43  ;;  %v1101_v43 = vmul.f32 %v3809_v54, %v1005_v46 }
 0x32d   : > { %989 = vst.msk [vmem:[#allocation3 + $0x60] sm:$0xff] %vm976_vm1, %v972_v34 }
 0x32e   : > { %992 = vst.msk [vmem:[#allocation3 + $0x78] sm:$0xff] %vm976_vm1, %v975_v49  ;;  %v957_v52 = vpop.xlane.xlu0 %956 }
 0x32f   : > { %v974_v3 = vadd.f32 %v957_v52, %v926_v21  ;;  %v1082_v34 = vpop.permute.xlu1 %1081 }
 0x331   : > { %991 = vst.msk [vmem:[#allocation3 + $0x70] sm:$0xff] %vm976_vm1, %v974_v3  ;;  %v1103_v3 = vmul.f32 %v1082_v34, %v1007_v53 }
 0x336   : > { %v1087_v32 = vpop.permute.xlu0 %1086 }
 0x337   : > { %v1104_v52 = vmul.f32 %v1087_v32, %v1008_v1 }
 0x34c   : > { %v2765_v7 = vpop.f32.mrb[0].mxu1 }
 0x34d   : > { %v1251_v56 = vadd.f32 %v2765_v7, %v1090_v55  ;;  %v1171_v13 = vpop.f32.mrb[1].mxu1 }
 0x34e   : > { %v1250_v27 = vadd.f32 %v1171_v13, %v1089_v17 }
 0x34f   : > { %1267 = vst [vmem:[#allocation4 + $0x8] sm:$0xff] %v1251_v56 }
 0x350   : > { %1266 = vst [vmem:[#allocation4] sm:$0xff] %v1250_v27 }
 0x355   : > { %v2768_v59 = vpop.f32.mrb[2].mxu1 }
 0x356   : > { %v1253_v6 = vadd.f32 %v2768_v59, %v1092_v4  ;;  %v1181_v9 = vpop.f32.mrb[3].mxu1 }
 0x357   : > { %v1252_v11 = vadd.f32 %v1181_v9, %v1091_v25 }
 0x358   : > { %1269 = vst [vmem:[#allocation4 + $0x18] sm:$0xff] %v1253_v6 }
 0x359   : > { %1268 = vst [vmem:[#allocation4 + $0x10] sm:$0xff] %v1252_v11 }
 0x35d   : > { %v2771_v8 = vpop.f32.mrb[4].mxu1 }
 0x35e   : > { %v1255_v12 = vadd.f32 %v2771_v8, %v1094_v18  ;;  %v1191_v29 = vpop.f32.mrb[5].mxu1 }
 0x35f   : > { %v1254_v35 = vadd.f32 %v1191_v29, %v1093_v58 }
 0x360   : > { %1271 = vst [vmem:[#allocation4 + $0x28] sm:$0xff] %v1255_v12 }
 0x361   : > { %1270 = vst [vmem:[#allocation4 + $0x20] sm:$0xff] %v1254_v35 }
 0x365   : > { %v2774_v40 = vpop.f32.mrb[6].mxu1 }
 0x366   : > { %v1257_v63 = vadd.f32 %v2774_v40, %v1096_v60  ;;  %v1201_v14 = vpop.f32.mrb[7].mxu1 }
 0x367   : > { %v1256_v41 = vadd.f32 %v1201_v14, %v1095_v20 }
 0x368   : > { %1273 = vst [vmem:[#allocation4 + $0x38] sm:$0xff] %v1257_v63 }
 0x369   : > { %1272 = vst [vmem:[#allocation4 + $0x30] sm:$0xff] %v1256_v41  ;;  %v2777_v23 = vpop.f32.mrb[8].mxu1 }
 0x36a   : > { %v1259_v0 = vadd.f32 %v2777_v23, %v1098_v44  ;;  %v1211_v2 = vpop.f32.mrb[9].mxu1 }
 0x36b   : > { %v1258_v51 = vadd.f32 %v1211_v2, %v1097_v26 }
 0x36c   : > { %1275 = vst [vmem:[#allocation4 + $0x48] sm:$0xff] %v1259_v0 }
 0x36d   : > { %1274 = vst [vmem:[#allocation4 + $0x40] sm:$0xff] %v1258_v51  ;;  %v2780_v39 = vpop.f32.mrb[10].mxu1 }
 0x36e   : > { %v1261_v19 = vadd.f32 %v2780_v39, %v1100_v22  ;;  %v1221_v28 = vpop.f32.mrb[11].mxu1 }
 0x36f   : > { %v1260_v47 = vadd.f32 %v1221_v28, %v1099_v38 }
 0x370   : > { %1277 = vst [vmem:[#allocation4 + $0x58] sm:$0xff] %v1261_v19 }
 0x371   : > { %1276 = vst [vmem:[#allocation4 + $0x50] sm:$0xff] %v1260_v47  ;;  %v2783_v5 = vpop.f32.mrb[12].mxu1 }
 0x372   : > { %v1263_v49 = vadd.f32 %v2783_v5, %v1102_v62  ;;  %v1231_v21 = vpop.f32.mrb[13].mxu1 }
 0x373   : > { %v1262_v45 = vadd.f32 %v1231_v21, %v1101_v43 }
 0x374   : > { %1279 = vst [vmem:[#allocation4 + $0x68] sm:$0xff] %v1263_v49 }
 0x375   : > { %1278 = vst [vmem:[#allocation4 + $0x60] sm:$0xff] %v1262_v45  ;;  %v2786_v37 = vpop.f32.mrb[14].mxu1 }
 0x376   : > { %v1265_v24 = vadd.f32 %v2786_v37, %v1104_v52  ;;  %v1241_v55 = vpop.f32.mrb[15].mxu1 }
 0x377   : > { %v1264_v15 = vadd.f32 %v1241_v55, %v1103_v3 }
 0x378   : > { %1281 = vst [vmem:[#allocation4 + $0x78] sm:$0xff] %v1265_v24 }
 0x379   : > { %1280 = vst [vmem:[#allocation4 + $0x70] sm:$0xff] %v1264_v15 }
 0x37a PF: > { %p2543_p2 = scmp.ne.s32.totalorder %s3308_s12, %s3312_s13 }
 0x37b   : > { %v1318_v54 = vld [vmem:[%s3448_s25] sm:$0xff] (!%p2543_p2)  ;;  %v1319_v17 = vld [vmem:[%s3448_s25 + $0x8] sm:$0xff] (!%p2543_p2)  ;;  %v1320_v7 = vld [vmem:[%s3448_s25 + $0x10] sm:$0xff] (!%p2543_p2)  ;;  %v1511_v21 = vlaneseq (!%p2543_p2) }
 0x37c   : > { %1301 = sbr.rel (%p2543_p2) target bundleno = 1720 (0x6b8), region = 44  ;;  %v2963_v56 = vpack.c.bf16 (!%p2543_p2), %v1319_v17, %v1318_v54  ;;  %v1321_v13 = vld [vmem:[%s3448_s25 + $0x18] sm:$0xff] (!%p2543_p2)  ;;  %v1302_v57 = vld [vmem:[%s3442_s11] sm:$0xff] (!%p2543_p2)  ;;  %v1323_v4 = vld [vmem:[%s3448_s25 + $0x28] sm:$0xff] (!%p2543_p2) }
 0x37d   : > { %v2967_v27 = vpack.c.bf16 (!%p2543_p2), %v1321_v13, %v1320_v7  ;;  %v1322_v61 = vld [vmem:[%s3448_s25 + $0x20] sm:$0xff] (!%p2543_p2)  ;;  %v1350_v25 = vmul.f32 (!%p2543_p2), 0.088388346, %v1302_v57  ;;  %v1324_v6 = vld [vmem:[%s3448_s25 + $0x30] sm:$0xff] (!%p2543_p2)  ;;  %v1325_v9 = vld [vmem:[%s3448_s25 + $0x38] sm:$0xff] (!%p2543_p2)  ;;  %v3893_v45 = vshrl.u32 (!%p2543_p2), %v1511_v21, 7 }
 0x37e   : > { %2964 = vmatprep.subr.bf16.mxu0 (!%p2543_p2), %v2963_v56  ;;  %v2971_v59 = vpack.c.bf16 (!%p2543_p2), %v1323_v4, %v1322_v61  ;;  %v2975_v11 = vpack.c.bf16 (!%p2543_p2), %v1325_v9, %v1324_v6  ;;  %v1326_v36 = vld [vmem:[%s3448_s25 + $0x40] sm:$0xff] (!%p2543_p2)  ;;  %v1327_v33 = vld [vmem:[%s3448_s25 + $0x48] sm:$0xff] (!%p2543_p2)  ;;  %v1328_v58 = vld [vmem:[%s3448_s25 + $0x50] sm:$0xff] (!%p2543_p2)  ;;  %v3895_v52 = vand.u32 (!%p2543_p2), 127, %v1511_v21 }
 0x37f   : > { %2966 = vmatpush3.bf16.xpose.msra.mxu0 (!%p2543_p2), %v2963_v56  ;;  %2819 = vmatprep.mubr.f32.mxu0 (!%p2543_p2), %v1350_v25  ;;  %v2979_v18 = vpack.c.bf16 (!%p2543_p2), %v1327_v33, %v1326_v36  ;;  %v1329_v8 = vld [vmem:[%s3448_s25 + $0x58] sm:$0xff] (!%p2543_p2)  ;;  %v1330_v29 = vld [vmem:[%s3448_s25 + $0x60] sm:$0xff] (!%p2543_p2)  ;;  %v1331_v35 = vld [vmem:[%s3448_s25 + $0x68] sm:$0xff] (!%p2543_p2)  ;;  %v1515_v3 = vadd.s32 (!%p2543_p2), 24, %v3893_v45  ;;  %v1513_v37 = vadd.s32 (!%p2543_p2), 8, %v3893_v45  ;;  %v1514_v55 = vadd.s32 (!%p2543_p2), 16, %v3893_v45 }
 0x380   : > { %2968 = vmatprep.subr.bf16.mxu0 (!%p2543_p2), %v2967_v27  ;;  %v2983_v12 = vpack.c.bf16 (!%p2543_p2), %v1329_v8, %v1328_v58  ;;  %v2987_v48 = vpack.c.bf16 (!%p2543_p2), %v1331_v35, %v1330_v29  ;;  %v1332_v42 = vld [vmem:[%s3448_s25 + $0x70] sm:$0xff] (!%p2543_p2)  ;;  %v1333_v60 = vld [vmem:[%s3448_s25 + $0x78] sm:$0xff] (!%p2543_p2)  ;;  %v1303_v20 = vld [vmem:[%s3442_s11 + $0x8] sm:$0xff] (!%p2543_p2)  ;;  %vm1530_vm2 = vcmp.le.s32.totalorder (!%p2543_p2), %v3895_v52, %v3893_v45  ;;  %v1516_v17 = vadd.s32 (!%p2543_p2), 32, %v3893_v45 }
 0x381   : > { %v2991_v10 = vpack.c.bf16 (!%p2543_p2), %v1333_v60, %v1332_v42  ;;  %v1304_v40 = vld [vmem:[%s3442_s11 + $0x10] sm:$0xff] (!%p2543_p2)  ;;  %v1351_v16 = vmul.f32 (!%p2543_p2), 0.088388346, %v1303_v20  ;;  %v1305_v14 = vld [vmem:[%s3442_s11 + $0x18] sm:$0xff] (!%p2543_p2)  ;;  %v1306_v41 = vld [vmem:[%s3442_s11 + $0x20] sm:$0xff] (!%p2543_p2)  ;;  %vm1533_vm3 = vcmp.le.s32.totalorder (!%p2543_p2), %v3895_v52, %v1515_v3  ;;  %vm1531_vm4 = vcmp.le.s32.totalorder (!%p2543_p2), %v3895_v52, %v1513_v37 }
 0x382   : > { %v1352_v63 = vmul.f32 (!%p2543_p2), 0.088388346, %v1304_v40  ;;  %v1353_v44 = vmul.f32 (!%p2543_p2), 0.088388346, %v1305_v14  ;;  %v1354_v30 = vmul.f32 (!%p2543_p2), 0.088388346, %v1306_v41  ;;  %vm1532_vm5 = vcmp.le.s32.totalorder (!%p2543_p2), %v3895_v52, %v1514_v55 }
 0x383   : > { %v1307_v26 = vld [vmem:[%s3442_s11 + $0x28] sm:$0xff]  ;;  %v1308_v23 = vld [vmem:[%s3442_s11 + $0x30] sm:$0xff]  ;;  %v1309_v2 = vld [vmem:[%s3442_s11 + $0x38] sm:$0xff]  ;;  %v1517_v56 = vadd.s32 40, %v3893_v45  ;;  %vm1534_vm6 = vcmp.le.s32.totalorder %v3895_v52, %v1516_v17  ;;  %v1518_v4 = vadd.s32 48, %v3893_v45  ;;  %v1520_v36 = vadd.s32 64, %v3893_v45 }
 0x384   : > { %v1355_v31 = vmul.f32 0.088388346, %v1307_v26  ;;  %v1356_v0 = vmul.f32 0.088388346, %v1308_v23  ;;  %v1310_v51 = vld [vmem:[%s3442_s11 + $0x40] sm:$0xff]  ;;  %v1311_v38 = vld [vmem:[%s3442_s11 + $0x48] sm:$0xff] }
 0x385   : > { %v1357_v22 = vmul.f32 0.088388346, %v1309_v2  ;;  %v1358_v50 = vmul.f32 0.088388346, %v1310_v51  ;;  %v1312_v39 = vld [vmem:[%s3442_s11 + $0x50] sm:$0xff]  ;;  %v1313_v28 = vld [vmem:[%s3442_s11 + $0x58] sm:$0xff]  ;;  %vm1535_vm7 = vcmp.le.s32.totalorder %v3895_v52, %v1517_v56  ;;  %vm1536_vm8 = vcmp.le.s32.totalorder %v3895_v52, %v1518_v4 }
 0x386   : > { %v1359_v46 = vmul.f32 0.088388346, %v1311_v38  ;;  %v1360_v19 = vmul.f32 0.088388346, %v1312_v39  ;;  %v1314_v47 = vld [vmem:[%s3442_s11 + $0x60] sm:$0xff]  ;;  %v1315_v1 = vld [vmem:[%s3442_s11 + $0x68] sm:$0xff]  ;;  %vm1538_vm10 = vcmp.le.s32.totalorder %v3895_v52, %v1520_v36 }
 0x387   : > { %2970 = vmatpush3.bf16.xpose.msra.mxu0 %v2967_v27  ;;  %v1361_v62 = vmul.f32 0.088388346, %v1313_v28  ;;  %v1362_v43 = vmul.f32 0.088388346, %v1314_v47  ;;  %v1316_v32 = vld [vmem:[%s3442_s11 + $0x70] sm:$0xff]  ;;  %v1317_v34 = vld [vmem:[%s3442_s11 + $0x78] sm:$0xff] }
 0x388   : > { %2972 = vmatprep.subr.bf16.mxu0 %v2971_v59  ;;  %v1363_v5 = vmul.f32 0.088388346, %v1315_v1  ;;  %v1364_v53 = vmul.f32 0.088388346, %v1316_v32  ;;  %v1365_v49 = vmul.f32 0.088388346, %v1317_v34 }
 0x389   : > { %v1522_v29 = vadd.s32 80, %v3893_v45  ;;  %v1524_v40 = vadd.s32 96, %v3893_v45  ;;  %v1527_v23 = vadd.s32 120, %v3893_v45  ;;  %v1334_v39 = vld [vmem:[%s3453_s8] sm:$0xff]  ;;  %v1337_v47 = vld [vmem:[%s3453_s8 + $0x18] sm:$0xff]  ;;  %v1339_v1 = vld [vmem:[%s3453_s8 + $0x28] sm:$0xff] }
 0x38a   : > { %v3992_v3 = vld [vmem:[#allocation2 + $0x8] sm:$0xff]  ;;  %v4009_v4 = vld [vmem:[#allocation2 + $0x20] sm:$0xff] }
 0x38b   : > { %vm1540_vm12 = vcmp.le.s32.totalorder %v3895_v52, %v1522_v29  ;;  %vm1542_vm14 = vcmp.le.s32.totalorder %v3895_v52, %v1524_v40  ;;  %vm1545_vm1 = vcmp.le.s32.totalorder %v3895_v52, %v1527_v23  ;;  %v1343_v55 = vld [vmem:[%s3453_s8 + $0x48] sm:$0xff] }
 0x38f   : > { %2974 = vmatpush3.bf16.xpose.msra.mxu0 %v2971_v59  ;;  %v1519_v59 = vadd.s32 56, %v3893_v45 }
 0x390   : > { %2976 = vmatprep.subr.bf16.mxu0 %v2975_v11 }
 0x391   : > { %vm1537_vm9 = vcmp.le.s32.totalorder %v3895_v52, %v1519_v59  ;;  %v1344_v59 = vld [vmem:[%s3453_s8 + $0x50] sm:$0xff] }
 0x397   : > { %2978 = vmatpush3.bf16.xpose.msra.mxu0 %v2975_v11 }
 0x398   : > { %2980 = vmatprep.subr.bf16.mxu0 %v2979_v18 }
 0x39f   : > { %2982 = vmatpush3.bf16.xpose.msra.mxu0 %v2979_v18  ;;  %v1521_v18 = vadd.s32 72, %v3893_v45 }
 0x3a0   : > { %2984 = vmatprep.subr.bf16.mxu0 %v2983_v12 }
 0x3a1   : > { %vm1539_vm11 = vcmp.le.s32.totalorder %v3895_v52, %v1521_v18 }
 0x3a7   : > { %2986 = vmatpush3.bf16.xpose.msra.mxu0 %v2983_v12 }
 0x3a8   : > { %2988 = vmatprep.subr.bf16.mxu0 %v2987_v48 }
 0x3af   : > { %2990 = vmatpush3.bf16.xpose.msra.mxu0 %v2987_v48  ;;  %v1523_v48 = vadd.s32 88, %v3893_v45 }
 0x3b0   : > { %2992 = vmatprep.subr.bf16.mxu0 %v2991_v10 }
 0x3b1   : > { %vm1541_vm13 = vcmp.le.s32.totalorder %v3895_v52, %v1523_v48 }
 0x3b7   : > { %2994 = vmatpush3.bf16.xpose.msra.mxu0 %v2991_v10  ;;  %v3345_v10 = vmov 0  }
 0x3b8   : > { %3170 = vset.pattern.permute.xlu0 %v3345_v10  ;;  %3171 = vset.pattern.permute.xlu1 %v3345_v10  ;;  %v1347_v10 = vld [vmem:[%s3453_s8 + $0x68] sm:$0xff] }
 0x3be   : > { %2820 = vmatmul.mubr.f32.vlgmr.msra.gmra.mrb[0].mxu0 %v1351_v16 }
 0x3bf   : > { %2822 = vmatprep.mubr.f32.mxu0 %v1352_v63  ;;  %v1525_v63 = vadd.s32 104, %v3893_v45 }
 0x3c1   : > { %vm1543_vm15 = vcmp.le.s32.totalorder %v3895_v52, %v1525_v63 }
 0x3c2   : > { %2823 = vmatmul.mubr.f32.gmra.mrb[2].mxu0 %v1353_v44 }
 0x3c3   : > { %2825 = vmatprep.mubr.f32.mxu0 %v1354_v30  ;;  %v1526_v30 = vadd.s32 112, %v3893_v45 }
 0x3c5   : > { %vm1544_vm0 = vcmp.le.s32.totalorder %v3895_v52, %v1526_v30  ;;  %v3990_v52 = vld [vmem:[#allocation2 + $0x18] sm:$0xff] }
 0x3c6   : > { %2826 = vmatmul.mubr.f32.gmra.mrb[4].mxu0 %v1355_v31 }
 0x3c7   : > { %2828 = vmatprep.mubr.f32.mxu0 %v1356_v0 }
 0x3ca   : > { %2829 = vmatmul.mubr.f32.gmra.mrb[6].mxu0 %v1357_v22 }
 0x3cb   : > { %2831 = vmatprep.mubr.f32.mxu0 %v1358_v50 }
 0x3ce   : > { %2832 = vmatmul.mubr.f32.gmra.mrb[8].mxu0 %v1359_v46  ;;  %v1335_v46 = vld [vmem:[%s3453_s8 + $0x8] sm:$0xff] }
 0x3cf   : > { %2834 = vmatprep.mubr.f32.mxu0 %v1360_v19  ;;  %v1336_v19 = vld [vmem:[%s3453_s8 + $0x10] sm:$0xff]  ;;  %v2995_v28 = vpack.c.bf16 %v1335_v46, %v1334_v39 }
 0x3d1   : > { %2996 = vmatprep.subr.bf16.mxu1 %v2995_v28 }
 0x3d2   : > { %2835 = vmatmul.mubr.f32.gmra.mrb[10].mxu0 %v1361_v62  ;;  %v2999_v62 = vpack.c.bf16 %v1337_v47, %v1336_v19  ;;  %2998 = vmatpush3.bf16.msra.mxu1 %v2995_v28  ;;  %v1571_v19 = vld [vmem:[#allocation2 + $0x48] sm:$0xff]  ;;  %v4052_v47 = vld [vmem:[#allocation2 + $0x50] sm:$0xff] }
 0x3d3   : > { %2837 = vmatprep.mubr.f32.mxu0 %v1362_v43  ;;  %v1338_v43 = vld [vmem:[%s3453_s8 + $0x20] sm:$0xff] }
 0x3d4   : > { %3000 = vmatprep.subr.bf16.mxu1 %v2999_v62  ;;  %v3003_v32 = vpack.c.bf16 %v1339_v1, %v1338_v43 }
 0x3d6   : > { %2838 = vmatmul.mubr.f32.gmra.mrb[12].mxu0 %v1363_v5  ;;  %v1340_v5 = vld [vmem:[%s3453_s8 + $0x30] sm:$0xff]  ;;  %3002 = vmatpush3.bf16.msra.mxu1 %v2999_v62 }
 0x3d7   : > { %2840 = vmatprep.mubr.f32.mxu0 %v1364_v53  ;;  %v1341_v53 = vld [vmem:[%s3453_s8 + $0x38] sm:$0xff]  ;;  %3004 = vmatprep.subr.bf16.mxu1 %v3003_v32 }
 0x3d8   : > { %v3007_v34 = vpack.c.bf16 %v1341_v53, %v1340_v5  ;;  %v1573_v5 = vld [vmem:[#allocation2 + $0x58] sm:$0xff] }
 0x3da   : > { %2841 = vmatmul.mubr.f32.gmra.mrb[14].mxu0 %v1365_v49  ;;  %3006 = vmatpush3.bf16.msra.mxu1 %v3003_v32  ;;  %v3985_v49 = vld [vmem:[#allocation2] sm:$0xff] }
 0x3db   : > { %3008 = vmatprep.subr.bf16.mxu1 %v3007_v34 }
 0x3de   : > { %3010 = vmatpush3.bf16.msra.mxu1 %v3007_v34  ;;  %v4062_v34 = vld [vmem:[#allocation2 + $0x60] sm:$0xff] }
 0x491   : > { %v2821_v24 = vpop.f32.mrb[0].mxu0 }
 0x492   : > { %v1432_v15 = vpop.f32.mrb[1].mxu0  ;;  %v3913_v57 = vsel %vm1531_vm4, %v2821_v24, -1e+30  ;;  %v1342_v24 = vld [vmem:[%s3453_s8 + $0x40] sm:$0xff] }
 0x493   : > { %v3902_v54 = vsel %vm1530_vm2, %v1432_v15, -1e+30  ;;  %vm1882_vm2 = vcmask 7168  }
 0x494   : > { %1578 = vmax.xlane.f32.xlu0 %v3902_v54 }
 0x495   : > { %v2824_v7 = vpop.f32.mrb[2].mxu0 }
 0x496   : > { %v3910_v13 = vsel %vm1533_vm3, %v2824_v7, -1e+30  ;;  %v1442_v27 = vpop.f32.mrb[3].mxu0  ;;  %v3011_v7 = vpack.c.bf16 %v1343_v55, %v1342_v24  ;;  %v1575_v55 = vld [vmem:[#allocation2 + $0x68] sm:$0xff] }
 0x497   : > { %1584 = vmax.xlane.f32.xlu1 %v3910_v13  ;;  %v3916_v61 = vsel %vm1532_vm5, %v1442_v27, -1e+30  ;;  %v4005_v27 = vld [vmem:[#allocation2 + $0x10] sm:$0xff] }
 0x498   : > { %1580 = vmax.xlane.f32.xlu0 %v3913_v57  ;;  %3012 = vmatprep.subr.bf16.mxu1 %v3011_v7 }
 0x499   : > { %v2827_v25 = vpop.f32.mrb[4].mxu0  ;;  %3014 = vmatpush3.bf16.msra.mxu1 %v3011_v7  ;;  %v4073_v7 = vld [vmem:[#allocation2 + $0x70] sm:$0xff] }
 0x49a   : > { %v1452_v6 = vpop.f32.mrb[5].mxu0  ;;  %v3925_v11 = vsel %vm1535_vm7, %v2827_v25, -1e+30 }
 0x49b   : > { %1582 = vmax.xlane.f32.xlu1 %v3916_v61  ;;  %v3923_v9 = vsel %vm1534_vm6, %v1452_v6, -1e+30  ;;  %v1345_v6 = vld [vmem:[%s3453_s8 + $0x58] sm:$0xff] }
 0x49c   : > { %1586 = vmax.xlane.f32.xlu0 %v3923_v9  ;;  %v3015_v18 = vpack.c.bf16 %v1345_v6, %v1344_v59 }
 0x49d   : > { %v2830_v33 = vpop.f32.mrb[6].mxu0 }
 0x49e   : > { %v1462_v58 = vpop.f32.mrb[7].mxu0  ;;  %v3935_v12 = vsel %vm1537_vm9, %v2830_v33, -1e+30  ;;  %3016 = vmatprep.subr.bf16.mxu1 %v3015_v18 }
 0x49f   : > { %1588 = vmax.xlane.f32.xlu1 %v3925_v11  ;;  %v3933_v8 = vsel %vm1536_vm8, %v1462_v58, -1e+30  ;;  %v4019_v58 = vld [vmem:[#allocation2 + $0x28] sm:$0xff]  ;;  %3018 = vmatpush3.bf16.msra.mxu1 %v3015_v18 }
 0x4a0   : > { %1590 = vmax.xlane.f32.xlu0 %v3933_v8 }
 0x4a1   : > { %v2833_v35 = vpop.f32.mrb[8].mxu0 }
 0x4a2   : > { %v1472_v42 = vpop.f32.mrb[9].mxu0  ;;  %v3945_v20 = vsel %vm1539_vm11, %v2833_v35, -1e+30  ;;  %v4026_v35 = vld [vmem:[#allocation2 + $0x30] sm:$0xff] }
 0x4a3   : > { %1592 = vmax.xlane.f32.xlu1 %v3935_v12  ;;  %v3943_v60 = vsel %vm1538_vm10, %v1472_v42, -1e+30  ;;  %v1346_v42 = vld [vmem:[%s3453_s8 + $0x60] sm:$0xff] }
 0x4a4   : > { %1594 = vmax.xlane.f32.xlu0 %v3943_v60  ;;  %v3019_v63 = vpack.c.bf16 %v1347_v10, %v1346_v42 }
 0x4a5   : > { %v2836_v16 = vpop.f32.mrb[10].mxu0 }
 0x4a6   : > { %v1482_v14 = vpop.f32.mrb[11].mxu0  ;;  %v3955_v44 = vsel %vm1541_vm13, %v2836_v16, -1e+30  ;;  %3020 = vmatprep.subr.bf16.mxu1 %v3019_v63 }
 0x4a7   : > { %1596 = vmax.xlane.f32.xlu1 %v3945_v20  ;;  %v3953_v41 = vsel %vm1540_vm12, %v1482_v14, -1e+30  ;;  %v4034_v14 = vld [vmem:[#allocation2 + $0x38] sm:$0xff]  ;;  %3022 = vmatpush3.bf16.msra.mxu1 %v3019_v63 }
 0x4a8   : > { %1598 = vmax.xlane.f32.xlu0 %v3953_v41 }
 0x4a9   : > { %v2839_v26 = vpop.f32.mrb[12].mxu0 }
 0x4aa   : > { %v1492_v31 = vpop.f32.mrb[13].mxu0  ;;  %v3965_v2 = vsel %vm1543_vm15, %v2839_v26, -1e+30  ;;  %v4040_v26 = vld [vmem:[#allocation2 + $0x40] sm:$0xff] }
 0x4ab   : > { %1600 = vmax.xlane.f32.xlu1 %v3955_v44  ;;  %v3963_v0 = vsel %vm1542_vm14, %v1492_v31, -1e+30  ;;  %v1348_v31 = vld [vmem:[%s3453_s8 + $0x70] sm:$0xff] }
 0x4ac   : > { %1602 = vmax.xlane.f32.xlu0 %v3963_v0 }
 0x4ad   : > { %v2842_v51 = vpop.f32.mrb[14].mxu0 }
 0x4ae   : > { %v1502_v22 = vpop.f32.mrb[15].mxu0  ;;  %v3973_v38 = vsel %vm1545_vm1, %v2842_v51, -1e+30  ;;  %v1349_v51 = vld [vmem:[%s3453_s8 + $0x78] sm:$0xff] }
 0x4af   : > { %1604 = vmax.xlane.f32.xlu1 %v3965_v2  ;;  %v3971_v50 = vsel %vm1544_vm0, %v1502_v22, -1e+30  ;;  %v3023_v46 = vpack.c.bf16 %v1349_v51, %v1348_v31 }
 0x4b0   : > { %1606 = vmax.xlane.f32.xlu0 %v3971_v50 }
 0x4b1   : > { %3024 = vmatprep.subr.bf16.mxu1 %v3023_v46 }
 0x4b2   : > { %3026 = vmatpush3.bf16.msra.mxu1 %v3023_v46 }
 0x4b3   : > { %1608 = vmax.xlane.f32.xlu1 %v3973_v38 }
 0x521   : > { %v1579_v21 = vpop.xlane.xlu0 %1578 }
 0x522   : > { %v3988_v45 = vmax.f32 %v3985_v49, %v1579_v21 }
 0x524   : > { %2188 = vst.msk [vmem:[#allocation2] sm:$0xff] %vm1882_vm2, %v3988_v45  ;;  %v1585_v37 = vpop.xlane.xlu1 %1584  ;;  %1676 = vperm.xlu0 %3170, %v3988_v45   ;;  %v1626_v62 = vsub.f32 %v3985_v49, %v3988_v45 }
 0x525   : > { %v4000_v15 = vmax.f32 %v3990_v52, %v1585_v37  ;;  %v1581_v17 = vpop.xlane.xlu0 %1580 }
 0x526   : > { %v4003_v56 = vmax.f32 %v3992_v3, %v1581_v17  ;;  %v1642_v21 = vmul.f32 1.442695, %v1626_v62 }
 0x527   : > { %2191 = vst.msk [vmem:[#allocation2 + $0x18] sm:$0xff] %vm1882_vm2, %v4000_v15  ;;  %v1629_v49 = vsub.f32 %v3990_v52, %v4000_v15 }
 0x528   : > { %2189 = vst.msk [vmem:[#allocation2 + $0x8] sm:$0xff] %vm1882_vm2, %v4003_v56  ;;  %v1583_v25 = vpop.xlane.xlu1 %1582  ;;  %1681 = vperm.xlu1 %3171, %v4003_v56   ;;  %3172 = vpow2.f32 %v1642_v21 }
 0x529   : > { %v4017_v36 = vmax.f32 %v4005_v27, %v1583_v25  ;;  %v1587_v33 = vpop.xlane.xlu0 %1586  ;;  %v1648_v25 = vmul.f32 1.442695, %v1629_v49 }
 0x52a   : > { %v4022_v29 = vmax.f32 %v4009_v4, %v1587_v33  ;;  %v4078_v33 = vld [vmem:[#allocation2 + $0x78] sm:$0xff] }
 0x52b   : > { %2190 = vst.msk [vmem:[#allocation2 + $0x10] sm:$0xff] %vm1882_vm2, %v4017_v36  ;;  %3174 = vpow2.f32 %v1648_v25 }
 0x52c   : > { %v1589_v48 = vpop.xlane.xlu1 %1588  ;;  %1691 = vperm.xlu1 %3171, %v4000_v15   ;;  %2192 = vst.msk [vmem:[#allocation2 + $0x20] sm:$0xff] %vm1882_vm2, %v4022_v29  ;;  %v1630_v46 = vsub.f32 %v4009_v4, %v4022_v29 }
 0x52d   : > { %v1615_v40 = vmax.f32 %v4019_v58, %v1589_v48  ;;  %v1591_v16 = vpop.xlane.xlu0 %1590 }
 0x52e   : > { %v4037_v30 = vmax.f32 %v4026_v35, %v1591_v16  ;;  %v1650_v62 = vmul.f32 1.442695, %v1630_v46 }
 0x52f   : > { %2193 = vst.msk [vmem:[#allocation2 + $0x28] sm:$0xff] %vm1882_vm2, %v1615_v40  ;;  %v1631_v52 = vsub.f32 %v4019_v58, %v1615_v40 }
 0x530   : > { %v1593_v23 = vpop.xlane.xlu1 %1592  ;;  %1686 = vperm.xlu1 %3171, %v4017_v36   ;;  %2194 = vst.msk [vmem:[#allocation2 + $0x30] sm:$0xff] %vm1882_vm2, %v4037_v30 }
 0x531   : > { %v1617_v22 = vmax.f32 %v4034_v14, %v1593_v23  ;;  %v1595_v39 = vpop.xlane.xlu0 %1594  ;;  %v1652_v48 = vmul.f32 1.442695, %v1631_v52 }
 0x532   : > { %v4049_v28 = vmax.f32 %v4040_v26, %v1595_v39 }
 0x533   : > { %2195 = vst.msk [vmem:[#allocation2 + $0x38] sm:$0xff] %vm1882_vm2, %v1617_v22  ;;  %v1633_v42 = vsub.f32 %v4034_v14, %v1617_v22  ;;  %3176 = vpow2.f32 %v1652_v48 }
 0x534   : > { %v1597_v43 = vpop.xlane.xlu1 %1596  ;;  %1701 = vperm.xlu1 %3171, %v1615_v40   ;;  %2196 = vst.msk [vmem:[#allocation2 + $0x40] sm:$0xff] %vm1882_vm2, %v4049_v28  ;;  %v1627_v40 = vsub.f32 %v3992_v3, %v4003_v56  ;;  %v1628_v3 = vsub.f32 %v4005_v27, %v4017_v36  ;;  %v4103_v56 = vpop.eup %3172 }
 0x535   : > { %v1619_v1 = vmax.f32 %v1571_v19, %v1597_v43  ;;  %v1599_v32 = vpop.xlane.xlu0 %1598  ;;  %v1656_v14 = vmul.f32 1.442695, %v1633_v42  ;;  %v1632_v43 = vsub.f32 %v4026_v35, %v4037_v30 }
 0x536   : > { %v4059_v53 = vmax.f32 %v4052_v47, %v1599_v32  ;;  %v1644_v31 = vmul.f32 1.442695, %v1627_v40  ;;  %v1646_v39 = vmul.f32 1.442695, %v1628_v3  ;;  %v1634_v32 = vsub.f32 %v4040_v26, %v4049_v28 }
 0x537   : > { %2197 = vst.msk [vmem:[#allocation2 + $0x48] sm:$0xff] %vm1882_vm2, %v1619_v1  ;;  %1721 = vperm.xlu0 %3170, %v1619_v1   ;;  %v1635_v23 = vsub.f32 %v1571_v19, %v1619_v1  ;;  %3178 = vpow2.f32 %v1656_v14  ;;  %v4109_v19 = vpop.eup %3174 }
 0x538   : > { %v1601_v45 = vpop.xlane.xlu1 %1600  ;;  %1696 = vperm.xlu1 %3171, %v4022_v29   ;;  %2198 = vst.msk [vmem:[#allocation2 + $0x50] sm:$0xff] %vm1882_vm2, %v4059_v53  ;;  %3180 = vpow2.f32 %v1644_v31  ;;  %v1654_v29 = vmul.f32 1.442695, %v1632_v43  ;;  %v1658_v35 = vmul.f32 1.442695, %v1634_v32 }
 0x539   : > { %v1621_v37 = vmax.f32 %v1573_v5, %v1601_v45  ;;  %v1603_v24 = vpop.xlane.xlu0 %1602  ;;  %v1660_v51 = vmul.f32 1.442695, %v1635_v23 }
 0x53a   : > { %v4070_v17 = vmax.f32 %v4062_v34, %v1603_v24 }
 0x53b   : > { %2199 = vst.msk [vmem:[#allocation2 + $0x58] sm:$0xff] %vm1882_vm2, %v1621_v37  ;;  %1731 = vperm.xlu0 %3170, %v1621_v37   ;;  %3182 = vpow2.f32 %v1660_v51 }
 0x53c   : > { %v1605_v15 = vpop.xlane.xlu1 %1604  ;;  %1711 = vperm.xlu1 %3171, %v1617_v22   ;;  %2200 = vst.msk [vmem:[#allocation2 + $0x60] sm:$0xff] %vm1882_vm2, %v4070_v17  ;;  %v1637_v22 = vsub.f32 %v1573_v5, %v1621_v37  ;;  %3184 = vpow2.f32 %v1646_v39 }
 0x53d   : > { %v1623_v59 = vmax.f32 %v1575_v55, %v1605_v15  ;;  %v1607_v6 = vpop.xlane.xlu0 %1606  ;;  %v4115_v1 = vpop.eup %3176 }
 0x53e   : > { %v4081_v18 = vmax.f32 %v4073_v7, %v1607_v6  ;;  %v1664_v27 = vmul.f32 1.442695, %v1637_v22 }
 0x53f   : > { %2201 = vst.msk [vmem:[#allocation2 + $0x68] sm:$0xff] %vm1882_vm2, %v1623_v59  ;;  %1741 = vperm.xlu0 %3170, %v1623_v59   ;;  %v1639_v36 = vsub.f32 %v1575_v55, %v1623_v59 }
 0x540   : > { %1706 = vperm.xlu1 %3171, %v4037_v30   ;;  %v1609_v58 = vpop.xlane.xlu1 %1608  ;;  %v1640_v10 = vsub.f32 %v4073_v7, %v4081_v18  ;;  %2202 = vst.msk [vmem:[#allocation2 + $0x70] sm:$0xff] %vm1882_vm2, %v4081_v18  ;;  %3186 = vpow2.f32 %v1664_v27  ;;  %v1636_v30 = vsub.f32 %v4052_v47, %v4059_v53 }
 0x541   : > { %v4093_v16 = vmax.f32 %v4078_v33, %v1609_v58  ;;  %v1668_v4 = vmul.f32 1.442695, %v1639_v36  ;;  %3188 = vpow2.f32 %v1650_v62  ;;  %v4121_v5 = vpop.eup %3178 }
 0x542   : > { %v4123_v21 = vpop.eup %3180  ;;  %v1662_v26 = vmul.f32 1.442695, %v1636_v30 }
 0x543   : > { %v1641_v63 = vsub.f32 %v4078_v33, %v4093_v16  ;;  %2203 = vst.msk [vmem:[#allocation2 + $0x78] sm:$0xff] %vm1882_vm2, %v4093_v16  ;;  %1751 = vperm.xlu0 %3170, %v4093_v16   ;;  %3190 = vpow2.f32 %v1668_v4 }
 0x544   : > { %1716 = vperm.xlu1 %3171, %v4049_v28   ;;  %3192 = vpow2.f32 %v1654_v29  ;;  %v1638_v28 = vsub.f32 %v4062_v34, %v4070_v17 }
 0x545   : > { %v4129_v49 = vpop.eup %3182  ;;  %3194 = vpow2.f32 %v1658_v35 }
 0x546   : > { %v4131_v45 = vpop.eup %3184  ;;  %3196 = vpow2.f32 %v1662_v26  ;;  %v1666_v47 = vmul.f32 1.442695, %v1638_v28 }
 0x547   : > { %1917 = vperm.xlu0 %3170, %v4103_v56  }
 0x548   : > { %1726 = vperm.xlu1 %3171, %v4059_v53   ;;  %3198 = vpow2.f32 %v1666_v47 }
 0x54a   : > { %v4137_v37 = vpop.eup %3186 }
 0x54b   : > { %1932 = vperm.xlu0 %3170, %v4109_v19   ;;  %v4139_v24 = vpop.eup %3188 }
 0x54c   : > { %1736 = vperm.xlu1 %3171, %v4070_v17  }
 0x54d   : > { %v4143_v53 = vpop.eup %3190 }
 0x54e   : > { %v4145_v55 = vpop.eup %3192 }
 0x54f   : > { %1942 = vperm.xlu0 %3170, %v4115_v1   ;;  %v4149_v34 = vpop.eup %3194 }
 0x550   : > { %1746 = vperm.xlu1 %3171, %v4081_v18   ;;  %v4152_v17 = vpop.eup %3196 }
 0x552   : > { %v4155_v25 = vpop.eup %3198 }
 0x553   : > { %1952 = vperm.xlu0 %3170, %v4121_v5  }
 0x554   : > { %1922 = vperm.xlu1 %3171, %v4123_v21  }
 0x557   : > { %1962 = vperm.xlu0 %3170, %v4129_v49  }
 0x558   : > { %1927 = vperm.xlu1 %3171, %v4131_v45  }
 0x55b   : > { %1972 = vperm.xlu0 %3170, %v4137_v37  }
 0x55c   : > { %1937 = vperm.xlu1 %3171, %v4139_v24  }
 0x55f   : > { %1982 = vperm.xlu0 %3170, %v4143_v53  }
 0x560   : > { %1947 = vperm.xlu1 %3171, %v4145_v55  }
 0x564   : > { %1957 = vperm.xlu1 %3171, %v4149_v34  }
 0x568   : > { %1967 = vperm.xlu1 %3171, %v4152_v17  }
 0x56c   : > { %1977 = vperm.xlu1 %3171, %v4155_v25  }
 0x5a3   : > { %v1677_v52 = vpop.permute.xlu0 %1676 }
 0x5a4   : > { %v1754_v15 = vsub.f32 %v3902_v54, %v1677_v52 }
 0x5a6   : > { %v1770_v59 = vmul.f32 1.442695, %v1754_v15 }
 0x5a7   : > { %v1682_v6 = vpop.permute.xlu1 %1681 }
 0x5a8   : > { %3200 = vpow2.f32 %v1770_v59  ;;  %v1755_v48 = vsub.f32 %v3913_v57, %v1682_v6 }
 0x5aa   : > { %v1772_v42 = vmul.f32 1.442695, %v1755_v48 }
 0x5ab   : > { %v1692_v58 = vpop.permute.xlu1 %1691 }
 0x5ac   : > { %3202 = vpow2.f32 %v1772_v42  ;;  %v1757_v40 = vsub.f32 %v3910_v13, %v1692_v58 }
 0x5ae   : > { %v1776_v14 = vmul.f32 1.442695, %v1757_v40 }
 0x5af   : > { %v1687_v23 = vpop.permute.xlu1 %1686 }
 0x5b0   : > { %3204 = vpow2.f32 %v1776_v14  ;;  %v1756_v31 = vsub.f32 %v3916_v61, %v1687_v23 }
 0x5b2   : > { %v3201_v3 = vpop.eup %3200  ;;  %v1774_v51 = vmul.f32 1.442695, %v1756_v31 }
 0x5b3   : > { %v1702_v22 = vpop.permute.xlu1 %1701  ;;  %1834 = vadd.xlane.f32.xlu1 %v3201_v3  ;;  %2875 = vmatprep.mubr.f32.mxu1 %v3201_v3 }
 0x5b4   : > { %3206 = vpow2.f32 %v1774_v51  ;;  %v1759_v54 = vsub.f32 %v3925_v11, %v1702_v22 }
 0x5b6   : > { %v3203_v39 = vpop.eup %3202  ;;  %v1780_v57 = vmul.f32 1.442695, %v1759_v54  ;;  %v1722_v46 = vpop.permute.xlu0 %1721 }
 0x5b7   : > { %v1697_v27 = vpop.permute.xlu1 %1696  ;;  %1836 = vadd.xlane.f32.xlu0 %v3203_v39  ;;  %2876 = vmatmul.mubr.f32.vlgmr.msra.gmra.mrb[0].mxu1 %v3203_v39  ;;  %v1763_v29 = vsub.f32 %v3945_v20, %v1722_v46 }
 0x5b8   : > { %3208 = vpow2.f32 %v1780_v57  ;;  %v1758_v13 = vsub.f32 %v3923_v9, %v1697_v27 }
 0x5b9   : > { %v1788_v9 = vmul.f32 1.442695, %v1763_v29 }
 0x5ba   : > { %v3205_v36 = vpop.eup %3204  ;;  %v1778_v62 = vmul.f32 1.442695, %v1758_v13  ;;  %v1732_v61 = vpop.permute.xlu0 %1731 }
 0x5bb   : > { %v1712_v43 = vpop.permute.xlu1 %1711  ;;  %1840 = vadd.xlane.f32.xlu1 %v3205_v36  ;;  %v1765_v28 = vsub.f32 %v3955_v44, %v1732_v61 }
 0x5bc   : > { %3210 = vpow2.f32 %v1778_v62  ;;  %v1761_v4 = vsub.f32 %v3935_v12, %v1712_v43  ;;  %v1672_v62 = vmul.f32 1.442695, %v1641_v63 }
 0x5bd   : > { %v1792_v20 = vmul.f32 1.442695, %v1765_v28 }
 0x5be   : > { %v3207_v11 = vpop.eup %3206  ;;  %v1784_v32 = vmul.f32 1.442695, %v1761_v4  ;;  %v1742_v30 = vpop.permute.xlu0 %1741 }
 0x5bf   : > { %v1707_v35 = vpop.permute.xlu1 %1706  ;;  %1838 = vadd.xlane.f32.xlu0 %v3207_v11  ;;  %2878 = vmatprep.mubr.f32.mxu1 %v3207_v11  ;;  %v1767_v59 = vsub.f32 %v3965_v2, %v1742_v30 }
 0x5c0   : > { %3212 = vpow2.f32 %v1784_v32  ;;  %v1760_v26 = vsub.f32 %v3933_v8, %v1707_v35  ;;  %2879 = vmatmul.mubr.f32.gmra.mrb[2].mxu1 %v3205_v36  ;;  %v1670_v36 = vmul.f32 1.442695, %v1640_v10 }
 0x5c1   : > { %v1796_v44 = vmul.f32 1.442695, %v1767_v59 }
 0x5c2   : > { %v3209_v47 = vpop.eup %3208  ;;  %v1782_v52 = vmul.f32 1.442695, %v1760_v26  ;;  %v1752_v48 = vpop.permute.xlu0 %1751 }
 0x5c3   : > { %v1717_v15 = vpop.permute.xlu1 %1716  ;;  %1844 = vadd.xlane.f32.xlu1 %v3209_v47  ;;  %v1769_v40 = vsub.f32 %v3973_v38, %v1752_v48 }
 0x5c4   : > { %3214 = vpow2.f32 %v1782_v52  ;;  %v1762_v12 = vsub.f32 %v3943_v60, %v1717_v15  ;;  %v1803_v15 = vld [vmem:[#allocation3 + $0x8] sm:$0xff] }
 0x5c5   : > { %3216 = vpow2.f32 %v1788_v9  ;;  %v1800_v31 = vmul.f32 1.442695, %v1769_v40  ;;  %v1802_v9 = vld [vmem:[#allocation3] sm:$0xff] }
 0x5c6   : > { %v3211_v6 = vpop.eup %3210  ;;  %v1786_v42 = vmul.f32 1.442695, %v1762_v12  ;;  %v4188_v7 = vpop.permute.xlu0 %1917  ;;  %v1818_v28 = vmul.f32 %v4103_v56, %v1802_v9  ;;  %v1812_v9 = vld [vmem:[#allocation3 + $0x50] sm:$0xff] }
 0x5c7   : > { %v1727_v58 = vpop.permute.xlu1 %1726  ;;  %1842 = vadd.xlane.f32.xlu0 %v3211_v6  ;;  %2881 = vmatprep.mubr.f32.mxu1 %v3211_v6  ;;  %v1805_v6 = vld [vmem:[#allocation3 + $0x18] sm:$0xff] }
 0x5c8   : > { %3218 = vpow2.f32 %v1786_v42  ;;  %v1764_v8 = vsub.f32 %v3953_v41, %v1727_v58  ;;  %2882 = vmatmul.mubr.f32.gmra.mrb[4].mxu1 %v3209_v47  ;;  %v1821_v42 = vmul.f32 %v4109_v19, %v1805_v6 }
 0x5c9   : > { %3220 = vpow2.f32 %v1792_v20  ;;  %v1819_v20 = vmul.f32 %v4123_v21, %v1803_v15  ;;  %v1828_v15 = vmul.f32 %v4152_v17, %v1812_v9  ;;  %v1816_v17 = vld [vmem:[#allocation3 + $0x70] sm:$0xff] }
 0x5ca   : > { %v3213_v14 = vpop.eup %3212  ;;  %v1790_v60 = vmul.f32 1.442695, %v1764_v8  ;;  %v4192_v10 = vpop.permute.xlu0 %1932  ;;  %v1804_v8 = vld [vmem:[#allocation3 + $0x10] sm:$0xff] }
 0x5cb   : > { %v1737_v23 = vpop.permute.xlu1 %1736  ;;  %1848 = vadd.xlane.f32.xlu1 %v3213_v14  ;;  %v1820_v56 = vmul.f32 %v4131_v45, %v1804_v8 }
 0x5cc   : > { %3222 = vpow2.f32 %v1790_v60  ;;  %v1766_v2 = vsub.f32 %v3963_v0, %v1737_v23 }
 0x5cd   : > { %3224 = vpow2.f32 %v1796_v44 }
 0x5ce   : > { %v3215_v3 = vpop.eup %3214  ;;  %v1794_v51 = vmul.f32 1.442695, %v1766_v2  ;;  %v4196_v33 = vpop.permute.xlu0 %1942  ;;  %v1806_v2 = vld [vmem:[#allocation3 + $0x20] sm:$0xff] }
 0x5cf   : > { %v3217_v22 = vpop.eup %3216  ;;  %1846 = vadd.xlane.f32.xlu0 %v3215_v3  ;;  %v1747_v54 = vpop.permute.xlu1 %1746  ;;  %2884 = vmatprep.mubr.f32.mxu1 %v3215_v3  ;;  %v1822_v19 = vmul.f32 %v4139_v24, %v1806_v2 }
 0x5d0   : > { %3226 = vpow2.f32 %v1794_v51  ;;  %v1768_v41 = vsub.f32 %v3971_v50, %v1747_v54  ;;  %1852 = vadd.xlane.f32.xlu1 %v3217_v22  ;;  %2885 = vmatmul.mubr.f32.gmra.mrb[6].mxu1 %v3213_v14  ;;  %v1807_v14 = vld [vmem:[#allocation3 + $0x28] sm:$0xff]  ;;  %v1809_v51 = vld [vmem:[#allocation3 + $0x38] sm:$0xff] }
 0x5d1   : > { %3228 = vpow2.f32 %v1800_v31  ;;  %v1823_v21 = vmul.f32 %v4115_v1, %v1807_v14  ;;  %v1825_v45 = vmul.f32 %v4121_v5, %v1809_v51  ;;  %v1902_v51 = vld [vmem:[#allocation4 + $0x18] sm:$0xff] }
 0x5d2   : > { %v3219_v38 = vpop.eup %3218  ;;  %v1798_v39 = vmul.f32 1.442695, %v1768_v41  ;;  %v4200_v63 = vpop.permute.xlu0 %1952  ;;  %v1808_v41 = vld [vmem:[#allocation3 + $0x30] sm:$0xff] }
 0x5d3   : > { %v3221_v57 = vpop.eup %3220  ;;  %1850 = vadd.xlane.f32.xlu0 %v3219_v38  ;;  %2887 = vmatprep.mubr.f32.mxu1 %v3219_v38  ;;  %v4186_v4 = vpop.permute.xlu1 %1922  ;;  %v1824_v1 = vmul.f32 %v4145_v55, %v1808_v41 }
 0x5d4   : > { %3230 = vpow2.f32 %v1798_v39  ;;  %1856 = vadd.xlane.f32.xlu1 %v3221_v57  ;;  %2888 = vmatmul.mubr.f32.gmra.mrb[8].mxu1 %v3217_v22  ;;  %v1811_v39 = vld [vmem:[#allocation3 + $0x48] sm:$0xff] }
 0x5d5   : > { %3232 = vpow2.f32 %v1670_v36 }
 0x5d6   : > { %v3223_v0 = vpop.eup %3222  ;;  %3234 = vpow2.f32 %v1672_v62  ;;  %v4204_v32 = vpop.permute.xlu0 %1962 }
 0x5d7   : > { %v3225_v46 = vpop.eup %3224  ;;  %1854 = vadd.xlane.f32.xlu0 %v3223_v0  ;;  %2890 = vmatprep.mubr.f32.mxu1 %v3223_v0  ;;  %v4190_v18 = vpop.permute.xlu1 %1927 }
 0x5d8   : > { %1860 = vadd.xlane.f32.xlu1 %v3225_v46  ;;  %2891 = vmatmul.mubr.f32.gmra.mrb[10].mxu1 %v3221_v57  ;;  %v1827_v57 = vmul.f32 %v4129_v49, %v1811_v39 }
 0x5da   : > { %v3227_v27 = vpop.eup %3226  ;;  %v4208_v30 = vpop.permute.xlu0 %1972 }
 0x5db   : > { %v3229_v13 = vpop.eup %3228  ;;  %1858 = vadd.xlane.f32.xlu0 %v3227_v27  ;;  %2893 = vmatprep.mubr.f32.mxu1 %v3227_v27  ;;  %v4194_v29 = vpop.permute.xlu1 %1937 }
 0x5dc   : > { %1864 = vadd.xlane.f32.xlu1 %v3229_v13  ;;  %2894 = vmatmul.mubr.f32.gmra.mrb[12].mxu1 %v3225_v46  ;;  %v1810_v46 = vld [vmem:[#allocation3 + $0x40] sm:$0xff] }
 0x5dd   : > { %v1826_v5 = vmul.f32 %v4149_v34, %v1810_v46  ;;  %v1814_v34 = vld [vmem:[#allocation3 + $0x60] sm:$0xff] }
 0x5de   : > { %v3231_v50 = vpop.eup %3230  ;;  %v4213_v47 = vpop.permute.xlu0 %1982 }
 0x5df   : > { %1862 = vadd.xlane.f32.xlu0 %v3231_v50  ;;  %2896 = vmatprep.mubr.f32.mxu1 %v3231_v50  ;;  %v4180_v61 = vpop.eup %3232  ;;  %v4198_v16 = vpop.permute.xlu1 %1947 }
 0x5e0   : > { %2897 = vmatmul.mubr.f32.gmra.mrb[14].mxu1 %v3229_v13  ;;  %v4183_v43 = vpop.eup %3234  ;;  %v1813_v13 = vld [vmem:[#allocation3 + $0x58] sm:$0xff] }
 0x5e1   : > { %v1829_v36 = vmul.f32 %v4137_v37, %v1813_v13 }
 0x5e3   : > { %v4202_v11 = vpop.permute.xlu1 %1957 }
 0x5e7   : > { %v4206_v35 = vpop.permute.xlu1 %1967 }
 0x5eb   : > { %v4210_v26 = vpop.permute.xlu1 %1977 }
 0x5ed   : > { %1987 = vperm.xlu1 %3171, %v4180_v61  }
 0x5f5   : > { %1992 = vperm.xlu0 %3170, %v4183_v43  }
 0x640   : > { %v1835_v52 = vpop.xlane.xlu1 %1834 }
 0x641   : > { %v1866_v12 = vadd.f32 %v1835_v52, %v1818_v28  ;;  %v1815_v52 = vld [vmem:[#allocation3 + $0x68] sm:$0xff] }
 0x643   : > { %1883 = vst.msk [vmem:[#allocation3] sm:$0xff] %vm1882_vm2, %v1866_v12  ;;  %v1831_v12 = vmul.f32 %v4143_v53, %v1815_v52  ;;  %v1832_v53 = vmul.f32 %v4180_v61, %v1816_v17  ;;  %v1901_v61 = vld [vmem:[#allocation4 + $0x10] sm:$0xff] }
 0x644   : > { %v1837_v59 = vpop.xlane.xlu0 %1836 }
 0x645   : > { %v1867_v48 = vadd.f32 %v1837_v59, %v1819_v20 }
 0x647   : > { %1884 = vst.msk [vmem:[#allocation3 + $0x8] sm:$0xff] %vm1882_vm2, %v1867_v48  ;;  %v1817_v48 = vld [vmem:[#allocation3 + $0x78] sm:$0xff] }
 0x648   : > { %v1841_v58 = vpop.xlane.xlu1 %1840 }
 0x649   : > { %v1869_v44 = vadd.f32 %v1841_v58, %v1821_v42  ;;  %v1830_v42 = vmul.f32 %v4155_v25, %v1814_v34  ;;  %v1833_v58 = vmul.f32 %v4183_v43, %v1817_v48  ;;  %v1900_v25 = vld [vmem:[#allocation4 + $0x8] sm:$0xff]  ;;  %v1911_v48 = vld [vmem:[#allocation4 + $0x60] sm:$0xff] }
 0x64b   : > { %1886 = vst.msk [vmem:[#allocation3 + $0x18] sm:$0xff] %vm1882_vm2, %v1869_v44 }
 0x64c   : > { %v1839_v40 = vpop.xlane.xlu0 %1838 }
 0x64d   : > { %v1868_v60 = vadd.f32 %v1839_v40, %v1820_v56 }
 0x64f   : > { %1885 = vst.msk [vmem:[#allocation3 + $0x10] sm:$0xff] %vm1882_vm2, %v1868_v60 }
 0x650   : > { %v1845_v23 = vpop.xlane.xlu1 %1844 }
 0x651   : > { %v1871_v31 = vadd.f32 %v1845_v23, %v1823_v21  ;;  %v1899_v21 = vld [vmem:[#allocation4] sm:$0xff]  ;;  %v1996_v23 = vmul.f32 %v4186_v4, %v1900_v25  ;;  %v1904_v4 = vld [vmem:[#allocation4 + $0x28] sm:$0xff] }
 0x652   : > { %v1995_v43 = vmul.f32 %v4188_v7, %v1899_v21  ;;  %v1903_v7 = vld [vmem:[#allocation4 + $0x20] sm:$0xff] }
 0x653   : > { %1888 = vst.msk [vmem:[#allocation3 + $0x28] sm:$0xff] %vm1882_vm2, %v1871_v31 }
 0x654   : > { %v1843_v3 = vpop.xlane.xlu0 %1842 }
 0x655   : > { %v1870_v22 = vadd.f32 %v1843_v3, %v1822_v19 }
 0x657   : > { %1887 = vst.msk [vmem:[#allocation3 + $0x20] sm:$0xff] %vm1882_vm2, %v1870_v22  ;;  %v1998_v22 = vmul.f32 %v4192_v10, %v1902_v51  ;;  %v1906_v10 = vld [vmem:[#allocation4 + $0x38] sm:$0xff] }
 0x658   : > { %v1849_v54 = vpop.xlane.xlu1 %1848  ;;  %v2002_v13 = vmul.f32 %v4200_v63, %v1906_v10 }
 0x659   : > { %v1873_v38 = vadd.f32 %v1849_v54, %v1825_v45  ;;  %v1997_v45 = vmul.f32 %v4190_v18, %v1901_v61  ;;  %v1905_v18 = vld [vmem:[#allocation4 + $0x30] sm:$0xff] }
 0x65b   : > { %1890 = vst.msk [vmem:[#allocation3 + $0x38] sm:$0xff] %vm1882_vm2, %v1873_v38 }
 0x65c   : > { %v1847_v0 = vpop.xlane.xlu0 %1846 }
 0x65d   : > { %v1853_v24 = vpop.xlane.xlu1 %1852  ;;  %v1872_v27 = vadd.f32 %v1847_v0, %v1824_v1  ;;  %v2000_v1 = vmul.f32 %v4196_v33, %v1904_v4 }
 0x65e   : > { %v1875_v50 = vadd.f32 %v1853_v24, %v1827_v57  ;;  %v1999_v57 = vmul.f32 %v4194_v29, %v1903_v7 }
 0x65f   : > { %1889 = vst.msk [vmem:[#allocation3 + $0x30] sm:$0xff] %vm1882_vm2, %v1872_v27 }
 0x660   : > { %1892 = vst.msk [vmem:[#allocation3 + $0x48] sm:$0xff] %vm1882_vm2, %v1875_v50  ;;  %v1851_v62 = vpop.xlane.xlu0 %1850  ;;  %v1908_v50 = vld [vmem:[#allocation4 + $0x48] sm:$0xff] }
 0x661   : > { %v1857_v28 = vpop.xlane.xlu1 %1856  ;;  %v1874_v55 = vadd.f32 %v1851_v62, %v1826_v5  ;;  %v2001_v5 = vmul.f32 %v4198_v16, %v1905_v18  ;;  %v1907_v62 = vld [vmem:[#allocation4 + $0x40] sm:$0xff]  ;;  %v2004_v29 = vmul.f32 %v4204_v32, %v1908_v50  ;;  %v1912_v16 = vld [vmem:[#allocation4 + $0x68] sm:$0xff] }
 0x662   : > { %v1877_v49 = vadd.f32 %v1857_v28, %v1829_v36  ;;  %v2003_v52 = vmul.f32 %v4202_v11, %v1907_v62  ;;  %v2008_v11 = vmul.f32 %v4213_v47, %v1912_v16 }
 0x663   : > { %1891 = vst.msk [vmem:[#allocation3 + $0x40] sm:$0xff] %vm1882_vm2, %v1874_v55  ;;  %v1910_v55 = vld [vmem:[#allocation4 + $0x58] sm:$0xff] }
 0x664   : > { %1894 = vst.msk [vmem:[#allocation3 + $0x58] sm:$0xff] %vm1882_vm2, %v1877_v49  ;;  %v1855_v20 = vpop.xlane.xlu0 %1854  ;;  %v2006_v34 = vmul.f32 %v4208_v30, %v1910_v55  ;;  %v1913_v30 = vld [vmem:[#allocation4 + $0x70] sm:$0xff] }
 0x665   : > { %v1861_v59 = vpop.xlane.xlu1 %1860  ;;  %v1876_v6 = vadd.f32 %v1855_v20, %v1828_v15  ;;  %v1909_v15 = vld [vmem:[#allocation4 + $0x50] sm:$0xff] }
 0x666   : > { %v1879_v37 = vadd.f32 %v1861_v59, %v1831_v12  ;;  %v2005_v59 = vmul.f32 %v4206_v35, %v1909_v15 }
 0x667   : > { %1893 = vst.msk [vmem:[#allocation3 + $0x50] sm:$0xff] %vm1882_vm2, %v1876_v6 }
 0x668   : > { %1896 = vst.msk [vmem:[#allocation3 + $0x68] sm:$0xff] %vm1882_vm2, %v1879_v37  ;;  %v1859_v8 = vpop.xlane.xlu0 %1858 }
 0x669   : > { %v1865_v44 = vpop.xlane.xlu1 %1864  ;;  %v1878_v56 = vadd.f32 %v1859_v8, %v1830_v42  ;;  %v1914_v8 = vld [vmem:[#allocation4 + $0x78] sm:$0xff] }
 0x66a   : > { %v1881_v40 = vadd.f32 %v1865_v44, %v1833_v58  ;;  %v2007_v58 = vmul.f32 %v4210_v26, %v1911_v48 }
 0x66b   : > { %1895 = vst.msk [vmem:[#allocation3 + $0x60] sm:$0xff] %vm1882_vm2, %v1878_v56 }
 0x66c   : > { %1898 = vst.msk [vmem:[#allocation3 + $0x78] sm:$0xff] %vm1882_vm2, %v1881_v40  ;;  %v1863_v14 = vpop.xlane.xlu0 %1862 }
 0x66d   : > { %v1880_v60 = vadd.f32 %v1863_v14, %v1832_v53  ;;  %v1988_v56 = vpop.permute.xlu1 %1987 }
 0x66f   : > { %1897 = vst.msk [vmem:[#allocation3 + $0x70] sm:$0xff] %vm1882_vm2, %v1880_v60  ;;  %v2009_v60 = vmul.f32 %v1988_v56, %v1913_v30 }
 0x674   : > { %v1993_v17 = vpop.permute.xlu0 %1992 }
 0x675   : > { %v2010_v14 = vmul.f32 %v1993_v17, %v1914_v8 }
 0x68a   : > { %v2877_v2 = vpop.f32.mrb[0].mxu1 }
 0x68b   : > { %v2157_v31 = vadd.f32 %v2877_v2, %v1996_v23  ;;  %v2077_v19 = vpop.f32.mrb[1].mxu1 }
 0x68c   : > { %v2156_v3 = vadd.f32 %v2077_v19, %v1995_v43 }
 0x68d   : > { %2173 = vst [vmem:[#allocation4 + $0x8] sm:$0xff] %v2157_v31 }
 0x68e   : > { %2172 = vst [vmem:[#allocation4] sm:$0xff] %v2156_v3 }
 0x693   : > { %v2880_v54 = vpop.f32.mrb[2].mxu1 }
 0x694   : > { %v2159_v41 = vadd.f32 %v2880_v54, %v1998_v22  ;;  %v2087_v38 = vpop.f32.mrb[3].mxu1 }
 0x695   : > { %v2158_v39 = vadd.f32 %v2087_v38, %v1997_v45 }
 0x696   : > { %2175 = vst [vmem:[#allocation4 + $0x18] sm:$0xff] %v2159_v41 }
 0x697   : > { %2174 = vst [vmem:[#allocation4 + $0x10] sm:$0xff] %v2158_v39 }
 0x69b   : > { %v2883_v0 = vpop.f32.mrb[4].mxu1 }
 0x69c   : > { %v2161_v46 = vadd.f32 %v2883_v0, %v2000_v1  ;;  %v2097_v24 = vpop.f32.mrb[5].mxu1 }
 0x69d   : > { %v2160_v27 = vadd.f32 %v2097_v24, %v1999_v57 }
 0x69e   : > { %2177 = vst [vmem:[#allocation4 + $0x28] sm:$0xff] %v2161_v46 }
 0x69f   : > { %2176 = vst [vmem:[#allocation4 + $0x20] sm:$0xff] %v2160_v27 }
 0x6a3   : > { %v2886_v36 = vpop.f32.mrb[6].mxu1 }
 0x6a4   : > { %v2163_v9 = vadd.f32 %v2886_v36, %v2002_v13  ;;  %v2107_v28 = vpop.f32.mrb[7].mxu1 }
 0x6a5   : > { %v2162_v33 = vadd.f32 %v2107_v28, %v2001_v5 }
 0x6a6   : > { %2179 = vst [vmem:[#allocation4 + $0x38] sm:$0xff] %v2163_v9 }
 0x6a7   : > { %2178 = vst [vmem:[#allocation4 + $0x30] sm:$0xff] %v2162_v33  ;;  %v2889_v49 = vpop.f32.mrb[8].mxu1 }
 0x6a8   : > { %v2165_v12 = vadd.f32 %v2889_v49, %v2004_v29  ;;  %v2117_v20 = vpop.f32.mrb[9].mxu1 }
 0x6a9   : > { %v2164_v63 = vadd.f32 %v2117_v20, %v2003_v52 }
 0x6aa   : > { %2181 = vst [vmem:[#allocation4 + $0x48] sm:$0xff] %v2165_v12 }
 0x6ab   : > { %2180 = vst [vmem:[#allocation4 + $0x40] sm:$0xff] %v2164_v63  ;;  %v2892_v6 = vpop.f32.mrb[10].mxu1 }
 0x6ac   : > { %v2167_v32 = vadd.f32 %v2892_v6, %v2006_v34  ;;  %v2127_v37 = vpop.f32.mrb[11].mxu1 }
 0x6ad   : > { %v2166_v42 = vadd.f32 %v2127_v37, %v2005_v59 }
 0x6ae   : > { %2183 = vst [vmem:[#allocation4 + $0x58] sm:$0xff] %v2167_v32 }
 0x6af   : > { %2182 = vst [vmem:[#allocation4 + $0x50] sm:$0xff] %v2166_v42  ;;  %v2895_v44 = vpop.f32.mrb[12].mxu1 }
 0x6b0   : > { %v2169_v40 = vadd.f32 %v2895_v44, %v2008_v11  ;;  %v2137_v53 = vpop.f32.mrb[13].mxu1 }
 0x6b1   : > { %v2168_v35 = vadd.f32 %v2137_v53, %v2007_v58 }
 0x6b2   : > { %2185 = vst [vmem:[#allocation4 + $0x68] sm:$0xff] %v2169_v40 }
 0x6b3   : > { %2184 = vst [vmem:[#allocation4 + $0x60] sm:$0xff] %v2168_v35  ;;  %v2898_v25 = vpop.f32.mrb[14].mxu1 }
 0x6b4   : > { %v2171_v21 = vadd.f32 %v2898_v25, %v2010_v14  ;;  %v2147_v23 = vpop.f32.mrb[15].mxu1 }
 0x6b5   : > { %v2170_v47 = vadd.f32 %v2147_v23, %v2009_v60 }
 0x6b6   : > { %2187 = vst [vmem:[#allocation4 + $0x78] sm:$0xff] %v2171_v21 }
 0x6b7   : > { %2186 = vst [vmem:[#allocation4 + $0x70] sm:$0xff] %v2170_v47 }
 0x6b8 PF: > { %p2544_p3 = scmp.ne.s32.totalorder %s3308_s12, 1 }
 0x6b9   : > { %v2210_v26 = vld [vmem:[#allocation3 + $0x10] sm:$0xff] (!%p2544_p3)  ;;  %v2208_v43 = vld [vmem:[#allocation3] sm:$0xff] (!%p2544_p3)  ;;  %v2211_v2 = vld [vmem:[#allocation3 + $0x18] sm:$0xff] (!%p2544_p3)  ;;  %v3346_v31 = vmov (!%p2544_p3), 0  }
 0x6ba   : > { %2207 = sbr.rel (%p2544_p3) target bundleno = 1893 (0x765), region = 48  ;;  %3237 = vset.pattern.permute.xlu1 (!%p2544_p3), %v3346_v31  ;;  %3236 = vset.pattern.permute.xlu0 (!%p2544_p3), %v3346_v31  ;;  %3238 = vrcp.f32 (!%p2544_p3), %v2210_v26  ;;  %v2209_v19 = vld [vmem:[#allocation3 + $0x8] sm:$0xff] (!%p2544_p3)  ;;  %v2212_v51 = vld [vmem:[#allocation3 + $0x20] sm:$0xff] (!%p2544_p3)  ;;  %v2215_v61 = vld [vmem:[#allocation3 + $0x38] sm:$0xff] (!%p2544_p3) }
 0x6bb   : > { %3240 = vrcp.f32 (!%p2544_p3), %v2208_v43  ;;  %v2213_v3 = vld [vmem:[#allocation3 + $0x28] sm:$0xff] (!%p2544_p3)  ;;  %v2214_v22 = vld [vmem:[#allocation3 + $0x30] sm:$0xff] (!%p2544_p3)  ;;  %v2216_v39 = vld [vmem:[#allocation3 + $0x40] sm:$0xff] (!%p2544_p3) }
 0x6bc   : > { %3242 = vrcp.f32 (!%p2544_p3), %v2211_v2  ;;  %v2217_v41 = vld [vmem:[#allocation3 + $0x48] sm:$0xff] (!%p2544_p3)  ;;  %v2219_v7 = vld [vmem:[#allocation3 + $0x58] sm:$0xff] (!%p2544_p3)  ;;  %v2218_v57 = vld [vmem:[#allocation3 + $0x50] sm:$0xff] (!%p2544_p3) }
 0x6bd   : > { %3244 = vrcp.f32 (!%p2544_p3), %v2209_v19  ;;  %v2221_v46 = vld [vmem:[#allocation3 + $0x68] sm:$0xff] (!%p2544_p3)  ;;  %v2220_v27 = vld [vmem:[#allocation3 + $0x60] sm:$0xff] (!%p2544_p3)  ;;  %v2223_v18 = vld [vmem:[#allocation3 + $0x78] sm:$0xff] (!%p2544_p3) }
 0x6be   : > { %3246 = vrcp.f32 (!%p2544_p3), %v2213_v3  ;;  %v2222_v50 = vld [vmem:[#allocation3 + $0x70] sm:$0xff] (!%p2544_p3)  ;;  %v2240_v52 = vld [vmem:[#allocation4] sm:$0xff] (!%p2544_p3)  ;;  %v2243_v63 = vld [vmem:[#allocation4 + $0x18] sm:$0xff] (!%p2544_p3) }
 0x6bf   : > { %3248 = vrcp.f32 (!%p2544_p3), %v2212_v51  ;;  %v2242_v55 = vld [vmem:[#allocation4 + $0x10] sm:$0xff] (!%p2544_p3)  ;;  %v2241_v34 = vld [vmem:[#allocation4 + $0x8] sm:$0xff] (!%p2544_p3)  ;;  %v2244_v37 = vld [vmem:[#allocation4 + $0x20] sm:$0xff] (!%p2544_p3) }
 0x6c0   : > { %3250 = vrcp.f32 (!%p2544_p3), %v2215_v61  ;;  %v2245_v32 = vld [vmem:[#allocation4 + $0x28] sm:$0xff] (!%p2544_p3)  ;;  %v2247_v17 = vld [vmem:[#allocation4 + $0x38] sm:$0xff] (!%p2544_p3)  ;;  %v2246_v44 = vld [vmem:[#allocation4 + $0x30] sm:$0xff] (!%p2544_p3) }
 0x6c1   : > { %3252 = vrcp.f32 %v2214_v22  ;;  %v2249_v35 = vld [vmem:[#allocation4 + $0x48] sm:$0xff]  ;;  %v2248_v14 = vld [vmem:[#allocation4 + $0x40] sm:$0xff]  ;;  %v2251_v47 = vld [vmem:[#allocation4 + $0x58] sm:$0xff] }
 0x6c2   : > { %3254 = vrcp.f32 %v2217_v41  ;;  %v2250_v26 = vld [vmem:[#allocation4 + $0x50] sm:$0xff]  ;;  %v2253_v3 = vld [vmem:[#allocation4 + $0x68] sm:$0xff]  ;;  %v2252_v51 = vld [vmem:[#allocation4 + $0x60] sm:$0xff] }
 0x6c3   : > { %3256 = vrcp.f32 %v2216_v39  ;;  %v2255_v41 = vld [vmem:[#allocation4 + $0x78] sm:$0xff] }
 0x6c4   : > { %v3239_v45 = vpop.eup %3238  ;;  %3258 = vrcp.f32 %v2219_v7 }
 0x6c5   : > { %v3241_v54 = vpop.eup %3240  ;;  %2268 = vperm.xlu1 %3237, %v3239_v45   ;;  %3260 = vrcp.f32 %v2218_v57 }
 0x6c6   : > { %v3243_v38 = vpop.eup %3242  ;;  %2258 = vperm.xlu0 %3236, %v3241_v54   ;;  %3262 = vrcp.f32 %v2221_v46 }
 0x6c7   : > { %v3245_v4 = vpop.eup %3244  ;;  %3264 = vrcp.f32 %v2220_v27 }
 0x6c8   : > { %v3247_v1 = vpop.eup %3246  ;;  %3266 = vrcp.f32 %v2223_v18 }
 0x6c9   : > { %2273 = vperm.xlu1 %3237, %v3243_v38   ;;  %v3249_v0 = vpop.eup %3248  ;;  %3268 = vrcp.f32 %v2222_v50  ;;  %v2254_v38 = vld [vmem:[#allocation4 + $0x70] sm:$0xff] }
 0x6ca   : > { %2263 = vperm.xlu0 %3236, %v3245_v4   ;;  %v3251_v24 = vpop.eup %3250 }
 0x6cb   : > { %v3253_v10 = vpop.eup %3252 }
 0x6cc   : > { %v3255_v13 = vpop.eup %3254 }
 0x6cd   : > { %2283 = vperm.xlu1 %3237, %v3247_v1   ;;  %v3257_v5 = vpop.eup %3256 }
 0x6ce   : > { %2278 = vperm.xlu0 %3236, %v3249_v0   ;;  %v3259_v36 = vpop.eup %3258 }
 0x6cf   : > { %v3261_v62 = vpop.eup %3260 }
 0x6d0   : > { %v3263_v9 = vpop.eup %3262 }
 0x6d1   : > { %2293 = vperm.xlu1 %3237, %v3251_v24   ;;  %v3265_v28 = vpop.eup %3264 }
 0x6d2   : > { %2288 = vperm.xlu0 %3236, %v3253_v10   ;;  %v3267_v33 = vpop.eup %3266 }
 0x6d3   : > { %v3269_v29 = vpop.eup %3268 }
 0x6d5   : > { %2303 = vperm.xlu1 %3237, %v3255_v13  }
 0x6d6   : > { %2298 = vperm.xlu0 %3236, %v3257_v5  }
 0x6d9   : > { %2313 = vperm.xlu1 %3237, %v3259_v36  }
 0x6da   : > { %2308 = vperm.xlu0 %3236, %v3261_v62  }
 0x6dd   : > { %2323 = vperm.xlu1 %3237, %v3263_v9  }
 0x6de   : > { %2318 = vperm.xlu0 %3236, %v3265_v28  }
 0x6e1   : > { %2333 = vperm.xlu1 %3237, %v3267_v33  }
 0x6e2   : > { %2328 = vperm.xlu0 %3236, %v3269_v29  }
 0x744   : > { %v2269_v49 = vpop.permute.xlu1 %2268 }
 0x745   : > { %v2338_v15 = vmul.f32 %v2269_v49, %v2242_v55  ;;  %v2259_v12 = vpop.permute.xlu0 %2258 }
 0x746   : > { %v2336_v20 = vmul.f32 %v2259_v12, %v2240_v52 }
 0x747   : > { %2354 = vst [vmem:[%s3459_s4 + $0x10] sm:$0xff] %v2338_v15 }
 0x748   : > { %2352 = vst [vmem:[%s3459_s4] sm:$0xff] %v2336_v20  ;;  %v2274_v16 = vpop.permute.xlu1 %2273 }
 0x749   : > { %v2339_v59 = vmul.f32 %v2274_v16, %v2243_v63  ;;  %v2264_v6 = vpop.permute.xlu0 %2263 }
 0x74a   : > { %v2337_v48 = vmul.f32 %v2264_v6, %v2241_v34 }
 0x74b   : > { %2355 = vst [vmem:[%s3459_s4 + $0x18] sm:$0xff] %v2339_v59 }
 0x74c   : > { %2353 = vst [vmem:[%s3459_s4 + $0x8] sm:$0xff] %v2337_v48  ;;  %v2284_v42 = vpop.permute.xlu1 %2283 }
 0x74d   : > { %v2341_v11 = vmul.f32 %v2284_v42, %v2245_v32  ;;  %v2279_v58 = vpop.permute.xlu0 %2278 }
 0x74e   : > { %v2340_v8 = vmul.f32 %v2279_v58, %v2244_v37 }
 0x74f   : > { %2357 = vst [vmem:[%s3459_s4 + $0x28] sm:$0xff] %v2341_v11 }
 0x750   : > { %2356 = vst [vmem:[%s3459_s4 + $0x20] sm:$0xff] %v2340_v8  ;;  %v2294_v30 = vpop.permute.xlu1 %2293 }
 0x751   : > { %v2343_v56 = vmul.f32 %v2294_v30, %v2247_v17  ;;  %v2289_v40 = vpop.permute.xlu0 %2288 }
 0x752   : > { %v2342_v53 = vmul.f32 %v2289_v40, %v2246_v44 }
 0x753   : > { %2359 = vst [vmem:[%s3459_s4 + $0x38] sm:$0xff] %v2343_v56 }
 0x754   : > { %2358 = vst [vmem:[%s3459_s4 + $0x30] sm:$0xff] %v2342_v53  ;;  %v2304_v60 = vpop.permute.xlu1 %2303 }
 0x755   : > { %v2345_v25 = vmul.f32 %v2304_v60, %v2249_v35  ;;  %v2299_v21 = vpop.permute.xlu0 %2298 }
 0x756   : > { %v2344_v23 = vmul.f32 %v2299_v21, %v2248_v14 }
 0x757   : > { %2361 = vst [vmem:[%s3459_s4 + $0x48] sm:$0xff] %v2345_v25 }
 0x758   : > { %2360 = vst [vmem:[%s3459_s4 + $0x40] sm:$0xff] %v2344_v23  ;;  %v2314_v43 = vpop.permute.xlu1 %2313 }
 0x759   : > { %v2347_v2 = vmul.f32 %v2314_v43, %v2251_v47  ;;  %v2309_v31 = vpop.permute.xlu0 %2308 }
 0x75a   : > { %v2346_v19 = vmul.f32 %v2309_v31, %v2250_v26 }
 0x75b   : > { %2363 = vst [vmem:[%s3459_s4 + $0x58] sm:$0xff] %v2347_v2 }
 0x75c   : > { %2362 = vst [vmem:[%s3459_s4 + $0x50] sm:$0xff] %v2346_v19  ;;  %v2324_v61 = vpop.permute.xlu1 %2323 }
 0x75d   : > { %v2349_v22 = vmul.f32 %v2324_v61, %v2253_v3  ;;  %v2319_v45 = vpop.permute.xlu0 %2318 }
 0x75e   : > { %v2348_v54 = vmul.f32 %v2319_v45, %v2252_v51 }
 0x75f   : > { %2365 = vst [vmem:[%s3459_s4 + $0x68] sm:$0xff] %v2349_v22 }
 0x760   : > { %2364 = vst [vmem:[%s3459_s4 + $0x60] sm:$0xff] %v2348_v54  ;;  %v2334_v39 = vpop.permute.xlu1 %2333 }
 0x761   : > { %v2351_v4 = vmul.f32 %v2334_v39, %v2255_v41  ;;  %v2329_v7 = vpop.permute.xlu0 %2328 }
 0x762   : > { %v2350_v1 = vmul.f32 %v2329_v7, %v2254_v38 }
 0x763   : > { %2367 = vst [vmem:[%s3459_s4 + $0x78] sm:$0xff] %v2351_v4 }
 0x764   : > { %2366 = vst [vmem:[%s3459_s4 + $0x70] sm:$0xff] %v2350_v1 }
 0x765 PF: > { %s13_s20 = sadd.s32 1, %s3340_s20   ;;  %s4314_s0 = sld [smem:[#allocation5_spill]] }
 0x766   : > { %p10_p4 = scmp.ge.s32.totalorder %s13_s20, 18   ;;  %s4315_s21 = sld [smem:[#allocation6_spill]] }
 0x767   : > { %s4316_s22 = sld [smem:[#allocation7_spill]]  ;;  %s4317_s23 = sld [smem:[#allocation8_spill]] }
 0x768   : > { %s4318_s12 = smov %s3324_s16  ;;  %s4319_s13 = smov %s3328_s17 }
 0x769   : > { %s4320_s14 = smov %s3332_s18  ;;  %s4321_s15 = smov %s3336_s19 }
 0x76a   :  { %12 = sbr.rel (!%p10_p4) target bundleno = 5 (0x5), region = 84 }
 0x76b   : > { %s4322_s16 = smov %s4314_s0 }
 0x76c   : > { %s4323_s17 = smov %s4315_s21 }
 0x76d   : > { %s4324_s18 = smov %s4316_s22  ;;  %s4325_s19 = smov %s4317_s23 }

</bundles_post_ra>
